<compile_context>
chip_gen: v5e
topology: v5e:2x2
jax: 0.10.0
libtpu: 0.0.40
codegen_flags: <defaults>
</compile_context>

<pallas_src>
import functools

import jax
import jax.numpy as jnp
from jax import lax
from jax.experimental import pallas as pl
from jax.experimental.pallas import tpu as pltpu

LANE = 128     # lane width: per-tap channel stride in the im2col slab
ALIGN = 16     # bf16 sublane tile height: interior column offset in pad scratch


def _round_up(x, m):
    return (x + m - 1) // m * m


def _vmem_limit_bytes():
    # v5e/v6e have 128 MiB VMEM per core, v7x only 64 MiB: leave headroom for
    # compiler-internal scratch instead of claiming the whole chip.
    try:
        cap = pltpu.get_tpu_info().vmem_capacity_bytes
    except Exception:
        cap = 64 * 1024 * 1024
    return int(max(32 * 1024 * 1024, min(96 * 1024 * 1024, cap * 3 // 4)))


def _down_kernel(Hp, Wp, Cin, CinP, CmidP, CoutP, RB,
                 x_ref, w1_ref, t1_ref, w2_ref, t2_ref, o_ref,
                 pad1, pad2, col1, col2):
    bf16 = jnp.bfloat16
    WPAD = ALIGN + Wp + 1
    nblk = Hp // RB

    # ---- re-init scratch every step (scratch is per-core under "parallel") --
    # pad1 is zeroed whole (its interior channel tail [Cin, CinP) must be zero
    # for the lane-padded taps).  pad2's interior is fully overwritten by conv1
    # across all CmidP lanes, so only its read border is zeroed.
    pad1[...] = jnp.zeros_like(pad1)
    zrow = jnp.zeros((WPAD, CmidP), bf16)
    pad2[0] = zrow
    pad2[Hp + 1] = zrow
    zcol = jnp.zeros((Hp + 2, 1, CmidP), bf16)
    pad2[:, ALIGN - 1:ALIGN, :] = zcol
    pad2[:, ALIGN + Wp:ALIGN + Wp + 1, :] = zcol

    # ---- 2x2 max pool: elementwise max of the 4 window-offset slabs ---------
    pooled = jnp.maximum(
        jnp.maximum(x_ref[0, 0, 0], x_ref[0, 0, 1]),
        jnp.maximum(x_ref[0, 1, 0], x_ref[0, 1, 1]))        # (Hp, Wp, Cin) bf16
    pad1[1:Hp + 1, ALIGN:ALIGN + Wp, 0:Cin] = pooled

    def conv_block(pad_ref, col_ref, w_ref, t_ref, cinp, r0):
        """3x3 conv + folded-BN shift + ReLU for output rows [r0, r0 + RB)."""
        # im2col: 9 lane-aligned dense tap copies into the (RB, Wp, 9*cinp)
        # bf16 slab (tap k sits at lane offset k*cinp, cinp % 128 == 0).
        for dy in range(3):
            for dx in range(3):
                k = dy * 3 + dx
                col_ref[:, :, k * cinp:(k + 1) * cinp] = (
                    pad_ref[pl.ds(r0 + dy, RB), pl.ds(ALIGN - 1 + dx, Wp), :])
        # Single MXU matmul, contraction depth K = 9*cinp (bf16 in, f32 acc).
        a = col_ref[...].reshape(RB * Wp, 9 * cinp)
        acc = jnp.dot(a, w_ref[...], preferred_element_type=jnp.float32)
        return jnp.maximum(acc + t_ref[...], 0.0)            # (RB*Wp, co) f32

    # ---- conv1 -> pad2 interior (row-block loop) -----------------------------
    def body1(i, c):
        r0 = pl.multiple_of(i * RB, RB)
        y1 = conv_block(pad1, col1, w1_ref, t1_ref, CinP, r0)
        pad2[pl.ds(1 + r0, RB), pl.ds(ALIGN, Wp), :] = (
            y1.reshape(RB, Wp, CmidP).astype(bf16))
        return c
    lax.fori_loop(0, nblk, body1, 0, unroll=nblk <= 4)

    # ---- conv2 -> output (lane-dense CoutP stores) ----------------------------
    def body2(i, c):
        r0 = pl.multiple_of(i * RB, RB)
        y2 = conv_block(pad2, col2, w2_ref, t2_ref, CmidP, r0)
        o_ref[:, pl.ds(r0, RB), :, :] = (
            y2.reshape(1, RB, Wp, CoutP).astype(o_ref.dtype))
        return c
    lax.fori_loop(0, nblk, body2, 0, unroll=nblk <= 4)


def down_forward(x_nchw, kparams):
    """x_nchw: (N, Cin, H, W) float32.  Returns (N, Cout, H//2, W//2) float32."""
    w1, t1, w2, t2, Cout = kparams
    N, Cin, H, W = x_nchw.shape
    assert H % 2 == 0 and W % 2 == 0, "MaxPool2d(2) fused kernel needs even H, W"
    Hp, Wp = H // 2, W // 2
    CinP = w1.shape[0] // 9
    CmidP = w1.shape[1]
    CoutP = w2.shape[1]
    assert w2.shape[0] == 9 * CmidP and CinP >= Cin

    # Row-block size: target M = RB*Wp ~ 1024 im2col rows per matmul (amortizes
    # the per-block MXU drain / epilogue), snapped down to a divisor of Hp so
    # every fori_loop iteration has identical static shapes.
    rb_target = max(1, min(Hp, 1024 // max(Wp, 1)))
    RB = 1
    for d in range(rb_target, 0, -1):
        if Hp % d == 0:
            RB = d
            break

    # glue: NCHW f32 -> (N, 2, 2, Hp, Wp, Cin) bf16 (cast+transpose+reshape fuse
    # into a single HBM copy pass at half the f32 byte count).
    x = x_nchw.astype(jnp.bfloat16)
    x = jnp.transpose(x, (0, 2, 3, 1)).reshape(N, Hp, 2, Wp, 2, Cin)
    x = jnp.transpose(x, (0, 2, 4, 1, 3, 5))

    WPAD = ALIGN + Wp + 1
    kernel = functools.partial(_down_kernel, Hp, Wp, Cin, CinP, CmidP, CoutP, RB)
    out = pl.pallas_call(
        kernel,
        out_shape=jax.ShapeDtypeStruct((N, Hp, Wp, CoutP), jnp.float32),
        grid_spec=pltpu.PrefetchScalarGridSpec(
            num_scalar_prefetch=0,
            grid=(N,),
            in_specs=[
                pl.BlockSpec((1, 2, 2, Hp, Wp, Cin),
                             lambda n: (n, 0, 0, 0, 0, 0)),
                # TODO(synk): single-buffer these grid-invariant operands
                # (pipeline_mode=pl.Buffered(1)) to reclaim half their VMEM.
                pl.BlockSpec((9 * CinP, CmidP), lambda n: (0, 0)),
                pl.BlockSpec((1, CmidP), lambda n: (0, 0)),
                pl.BlockSpec((9 * CmidP, CoutP), lambda n: (0, 0)),
                pl.BlockSpec((1, CoutP), lambda n: (0, 0)),
            ],
            out_specs=pl.BlockSpec((1, Hp, Wp, CoutP), lambda n: (n, 0, 0, 0)),
            scratch_shapes=[
                pltpu.VMEM((Hp + 2, WPAD, CinP), jnp.bfloat16),    # pad1
                pltpu.VMEM((Hp + 2, WPAD, CmidP), jnp.bfloat16),   # pad2
                pltpu.VMEM((RB, Wp, 9 * CinP), jnp.bfloat16),      # col1
                pltpu.VMEM((RB, Wp, 9 * CmidP), jnp.bfloat16),     # col2
            ],
        ),
        compiler_params=pltpu.CompilerParams(
            dimension_semantics=("parallel",),
            vmem_limit_bytes=_vmem_limit_bytes()),
    )(x, w1, t1, w2, t2)

    out = out[..., :Cout]                                    # strip lane padding
    return jnp.transpose(out, (0, 3, 1, 2))                  # NHWC -> NCHW


def init_params(key, cin, cout, cmid=None, eps=1e-5):
    """Deterministic synthetic parameters: PyTorch layout for the reference,
    kernel layout (bf16, BN-scale folded, lane-padded channels) for Pallas."""
    if cmid is None:
        cmid = cout
    ks = jax.random.split(key, 8)

    def one_block(kw, kb, kg, kbeta, ci, co, ci_pad, co_pad):
        w_pt = 0.1 * jax.random.normal(kw, (co, ci, 3, 3), jnp.float32)  # OIHW
        bias = 0.1 * jax.random.normal(kb, (co,), jnp.float32)
        gamma = 1.0 + 0.1 * jax.random.normal(kg, (co,), jnp.float32)
        beta = 0.1 * jax.random.normal(kbeta, (co,), jnp.float32)
        mean = jnp.zeros((co,), jnp.float32)      # fresh BN running stats
        var = jnp.ones((co,), jnp.float32)
        scale = gamma / jnp.sqrt(var + eps)
        shift = (bias - mean) * scale + beta
        # kernel format: HWIO taps as (9, ci, co), BN scale folded into the
        # weights, per-tap input-channel stride padded to ci_pad (lane-aligned
        # im2col tap offsets), output channels padded to co_pad, bf16 for MXU.
        w9 = (jnp.transpose(w_pt, (2, 3, 1, 0)).reshape(9, ci, co)
              * scale[None, None, :])
        w9 = jnp.pad(w9, ((0, 0), (0, ci_pad - ci), (0, co_pad - co)))
        w_k = w9.reshape(9 * ci_pad, co_pad).astype(jnp.bfloat16)
        t_k = jnp.pad(shift, (0, co_pad - co)).reshape(1, co_pad)
        return (w_pt, scale, shift), (w_k, t_k)

    cin_p = _round_up(cin, LANE)
    cmid_p = _round_up(cmid, LANE)
    cout_p = _round_up(cout, LANE)
    ref1, ker1 = one_block(ks[0], ks[1], ks[2], ks[3], cin, cmid, cin_p, cmid_p)
    ref2, ker2 = one_block(ks[4], ks[5], ks[6], ks[7], cmid, cout, cmid_p, cout_p)

    ref_params = (*ref1, *ref2)                  # w1_pt, s1, t1, w2_pt, s2, t2
    kernel_params = (ker1[0], ker1[1], ker2[0], ker2[1], cout)
    return ref_params, kernel_params


def ref_forward(x_nchw, w1_pt, s1, t1, w2_pt, s2, t2):
    """Plain-JAX reference with identical (eval-mode BN) semantics."""
    x = jnp.transpose(x_nchw, (0, 2, 3, 1))                     # NHWC
    x = jax.lax.reduce_window(x, -jnp.inf, jax.lax.max,
                              (1, 2, 2, 1), (1, 2, 2, 1), "VALID")

    def block(x, w_pt, s, t):
        w = jnp.transpose(w_pt, (2, 3, 1, 0))                   # HWIO
        y = jax.lax.conv_general_dilated(
            x, w, (1, 1), "SAME",
            dimension_numbers=("NHWC", "HWIO", "NHWC"))
        return jnp.maximum(y * s.reshape(1, 1, 1, -1) + t.reshape(1, 1, 1, -1),
                           0.0)

    x = block(x, w1_pt, s1, t1)
    x = block(x, w2_pt, s2, t2)
    return jnp.transpose(x, (0, 3, 1, 2))                       # NCHW


if __name__ == "__main__":
    key = jax.random.PRNGKey(0)
    kx, kp = jax.random.split(key)

    N, Cin, H, W = 2, 4, 16, 16
    Cout = 8
    x = jax.random.normal(kx, (N, Cin, H, W), jnp.float32)

    ref_params, kernel_params = init_params(kp, Cin, Cout)

    out = down_forward(x, kernel_params)
    out = jax.block_until_ready(out)

    assert out.shape == (N, Cout, H // 2, W // 2), out.shape

    ref = ref_forward(x, *ref_params)
    max_err = float(jnp.max(jnp.abs(out - ref)))
    assert jnp.allclose(out, ref, atol=2e-2, rtol=2e-2), max_err

    print("KERNEL_OK")
</pallas_src>

<mosaic_0001>
module attributes {stable_mosaic.version = 11 : i64} {
  func.func @_down_kernel(%arg0: i32, %arg1: memref<1x2x2x8x8x4xbf16, #tpu.memory_space<vmem>>, %arg2: memref<1152x128xbf16, #tpu.memory_space<vmem>>, %arg3: memref<1x128xf32, #tpu.memory_space<vmem>>, %arg4: memref<1152x128xbf16, #tpu.memory_space<vmem>>, %arg5: memref<1x128xf32, #tpu.memory_space<vmem>>, %arg6: memref<1x8x8x128xf32, #tpu.memory_space<vmem>>, %arg7: memref<10x25x128xbf16, #tpu.memory_space<vmem>>, %arg8: memref<10x25x128xbf16, #tpu.memory_space<vmem>>, %arg9: memref<8x8x1152xbf16, #tpu.memory_space<vmem>>, %arg10: memref<8x8x1152xbf16, #tpu.memory_space<vmem>>) attributes {dimension_semantics = [#tpu.dimension_semantics<parallel>], iteration_bounds = array<i64: 2>, scalar_prefetch = 0 : i64, scratch_operands = 4 : i64, tpu.core_type = #tpu.core_type<tc>, window_params = [{transform_indices = @transform_0, window_bounds = array<i64: 1, 2, 2, 8, 8, 4>}, {pipeline_mode = #tpu.pipeline_mode<synchronous>, transform_indices = @transform_1, window_bounds = array<i64: 1152, 128>}, {pipeline_mode = #tpu.pipeline_mode<synchronous>, transform_indices = @transform_2, window_bounds = array<i64: 1, 128>}, {pipeline_mode = #tpu.pipeline_mode<synchronous>, transform_indices = @transform_3, window_bounds = array<i64: 1152, 128>}, {pipeline_mode = #tpu.pipeline_mode<synchronous>, transform_indices = @transform_4, window_bounds = array<i64: 1, 128>}, {transform_indices = @transform_5, window_bounds = array<i64: 1, 8, 8, 128>}]} {
    %cst = arith.constant 0.000000e+00 : bf16
    %0 = vector.broadcast %cst : bf16 to vector<10x25x128xbf16>
    %c0 = arith.constant 0 : index
    %c0_0 = arith.constant 0 : index
    %c0_1 = arith.constant 0 : index
    %1 = vector.load %arg7[%c0, %c0_0, %c0_1] : memref<10x25x128xbf16, #tpu.memory_space<vmem>>, vector<10x25x128xbf16>
    tpu.vector_store %arg7[%c0, %c0_0, %c0_1], %0 {strides = array<i32>} : memref<10x25x128xbf16, #tpu.memory_space<vmem>>, vector<10x25x128xbf16>,
    %cst_2 = arith.constant 0.000000e+00 : bf16
    %2 = vector.broadcast %cst_2 : bf16 to vector<25x128xbf16>
    %c0_3 = arith.constant 0 : index
    %c0_4 = arith.constant 0 : index
    %c0_5 = arith.constant 0 : index
    %3 = vector.load %arg8[%c0_3, %c0_4, %c0_5] : memref<10x25x128xbf16, #tpu.memory_space<vmem>>, vector<1x25x128xbf16>
    %4 = vector.shape_cast %3 : vector<1x25x128xbf16> to vector<25x128xbf16>
    %5 = vector.shape_cast %2 : vector<25x128xbf16> to vector<1x25x128xbf16>
    tpu.vector_store %arg8[%c0_3, %c0_4, %c0_5], %5 {strides = array<i32>} : memref<10x25x128xbf16, #tpu.memory_space<vmem>>, vector<1x25x128xbf16>,
    %c9 = arith.constant 9 : index
    %c0_6 = arith.constant 0 : index
    %c0_7 = arith.constant 0 : index
    %6 = vector.load %arg8[%c9, %c0_6, %c0_7] : memref<10x25x128xbf16, #tpu.memory_space<vmem>>, vector<1x25x128xbf16>
    %7 = vector.shape_cast %6 : vector<1x25x128xbf16> to vector<25x128xbf16>
    %8 = vector.shape_cast %2 : vector<25x128xbf16> to vector<1x25x128xbf16>
    tpu.vector_store %arg8[%c9, %c0_6, %c0_7], %8 {strides = array<i32>} : memref<10x25x128xbf16, #tpu.memory_space<vmem>>, vector<1x25x128xbf16>,
    %cst_8 = arith.constant 0.000000e+00 : bf16
    %9 = vector.broadcast %cst_8 : bf16 to vector<10x1x128xbf16>
    %c0_9 = arith.constant 0 : index
    %c15 = arith.constant 15 : index
    %c0_10 = arith.constant 0 : index
    %10 = vector.load %arg8[%c0_9, %c15, %c0_10] : memref<10x25x128xbf16, #tpu.memory_space<vmem>>, vector<10x1x128xbf16>
    tpu.vector_store %arg8[%c0_9, %c15, %c0_10], %9 {strides = array<i32>} : memref<10x25x128xbf16, #tpu.memory_space<vmem>>, vector<10x1x128xbf16>,
    %c0_11 = arith.constant 0 : index
    %c24 = arith.constant 24 : index
    %c0_12 = arith.constant 0 : index
    %11 = vector.load %arg8[%c0_11, %c24, %c0_12] : memref<10x25x128xbf16, #tpu.memory_space<vmem>>, vector<10x1x128xbf16>
    tpu.vector_store %arg8[%c0_11, %c24, %c0_12], %9 {strides = array<i32>} : memref<10x25x128xbf16, #tpu.memory_space<vmem>>, vector<10x1x128xbf16>,
    %c0_13 = arith.constant 0 : index
    %c0_14 = arith.constant 0 : index
    %c0_15 = arith.constant 0 : index
    %c0_16 = arith.constant 0 : index
    %c0_17 = arith.constant 0 : index
    %c0_18 = arith.constant 0 : index
    %12 = vector.load %arg1[%c0_13, %c0_14, %c0_15, %c0_16, %c0_17, %c0_18] : memref<1x2x2x8x8x4xbf16, #tpu.memory_space<vmem>>, vector<1x1x1x8x8x4xbf16>
    %13 = vector.shape_cast %12 : vector<1x1x1x8x8x4xbf16> to vector<8x8x4xbf16>
    %c0_19 = arith.constant 0 : index
    %c0_20 = arith.constant 0 : index
    %c1 = arith.constant 1 : index
    %c0_21 = arith.constant 0 : index
    %c0_22 = arith.constant 0 : index
    %c0_23 = arith.constant 0 : index
    %14 = vector.load %arg1[%c0_19, %c0_20, %c1, %c0_21, %c0_22, %c0_23] : memref<1x2x2x8x8x4xbf16, #tpu.memory_space<vmem>>, vector<1x1x1x8x8x4xbf16>
    %15 = vector.shape_cast %14 : vector<1x1x1x8x8x4xbf16> to vector<8x8x4xbf16>
    %16 = arith.maximumf %13, %15 : vector<8x8x4xbf16>
    %c0_24 = arith.constant 0 : index
    %c1_25 = arith.constant 1 : index
    %c0_26 = arith.constant 0 : index
    %c0_27 = arith.constant 0 : index
    %c0_28 = arith.constant 0 : index
    %c0_29 = arith.constant 0 : index
    %17 = vector.load %arg1[%c0_24, %c1_25, %c0_26, %c0_27, %c0_28, %c0_29] : memref<1x2x2x8x8x4xbf16, #tpu.memory_space<vmem>>, vector<1x1x1x8x8x4xbf16>
    %18 = vector.shape_cast %17 : vector<1x1x1x8x8x4xbf16> to vector<8x8x4xbf16>
    %c0_30 = arith.constant 0 : index
    %c1_31 = arith.constant 1 : index
    %c1_32 = arith.constant 1 : index
    %c0_33 = arith.constant 0 : index
    %c0_34 = arith.constant 0 : index
    %c0_35 = arith.constant 0 : index
    %19 = vector.load %arg1[%c0_30, %c1_31, %c1_32, %c0_33, %c0_34, %c0_35] : memref<1x2x2x8x8x4xbf16, #tpu.memory_space<vmem>>, vector<1x1x1x8x8x4xbf16>
    %20 = vector.shape_cast %19 : vector<1x1x1x8x8x4xbf16> to vector<8x8x4xbf16>
    %21 = arith.maximumf %18, %20 : vector<8x8x4xbf16>
    %22 = arith.maximumf %16, %21 : vector<8x8x4xbf16>
    %c1_36 = arith.constant 1 : index
    %c16 = arith.constant 16 : index
    %c0_37 = arith.constant 0 : index
    %23 = vector.load %arg7[%c1_36, %c16, %c0_37] : memref<10x25x128xbf16, #tpu.memory_space<vmem>>, vector<8x8x4xbf16>
    tpu.vector_store %arg7[%c1_36, %c16, %c0_37], %22 {strides = array<i32>} : memref<10x25x128xbf16, #tpu.memory_space<vmem>>, vector<8x8x4xbf16>,
    %c0_i32 = arith.constant 0 : i32
    %c8_i32 = arith.constant 8 : i32
    %24 = arith.muli %c0_i32, %c8_i32 : i32
    %25 = tpu.assume_multiple %24, 8 : i32
    %c0_i32_38 = arith.constant 0 : i32
    %26 = arith.addi %25, %c0_i32_38 : i32
    %27 = arith.index_cast %26 : i32 to index
    %c15_39 = arith.constant 15 : index
    %c0_40 = arith.constant 0 : index
    %28 = vector.load %arg7[%27, %c15_39, %c0_40] : memref<10x25x128xbf16, #tpu.memory_space<vmem>>, vector<8x8x128xbf16>
    %c0_41 = arith.constant 0 : index
    %c0_42 = arith.constant 0 : index
    %c0_43 = arith.constant 0 : index
    %29 = vector.load %arg9[%c0_41, %c0_42, %c0_43] : memref<8x8x1152xbf16, #tpu.memory_space<vmem>>, vector<8x8x128xbf16>
    tpu.vector_store %arg9[%c0_41, %c0_42, %c0_43], %28 {strides = array<i32>} : memref<8x8x1152xbf16, #tpu.memory_space<vmem>>, vector<8x8x128xbf16>,
    %c0_i32_44 = arith.constant 0 : i32
    %30 = arith.addi %25, %c0_i32_44 : i32
    %31 = arith.index_cast %30 : i32 to index
    %c16_45 = arith.constant 16 : index
    %c0_46 = arith.constant 0 : index
    %32 = vector.load %arg7[%31, %c16_45, %c0_46] : memref<10x25x128xbf16, #tpu.memory_space<vmem>>, vector<8x8x128xbf16>
    %c0_47 = arith.constant 0 : index
    %c0_48 = arith.constant 0 : index
    %c128 = arith.constant 128 : index
    %33 = vector.load %arg9[%c0_47, %c0_48, %c128] : memref<8x8x1152xbf16, #tpu.memory_space<vmem>>, vector<8x8x128xbf16>
    tpu.vector_store %arg9[%c0_47, %c0_48, %c128], %32 {strides = array<i32>} : memref<8x8x1152xbf16, #tpu.memory_space<vmem>>, vector<8x8x128xbf16>,
    %c0_i32_49 = arith.constant 0 : i32
    %34 = arith.addi %25, %c0_i32_49 : i32
    %35 = arith.index_cast %34 : i32 to index
    %c17 = arith.constant 17 : index
    %c0_50 = arith.constant 0 : index
    %36 = vector.load %arg7[%35, %c17, %c0_50] : memref<10x25x128xbf16, #tpu.memory_space<vmem>>, vector<8x8x128xbf16>
    %c0_51 = arith.constant 0 : index
    %c0_52 = arith.constant 0 : index
    %c256 = arith.constant 256 : index
    %37 = vector.load %arg9[%c0_51, %c0_52, %c256] : memref<8x8x1152xbf16, #tpu.memory_space<vmem>>, vector<8x8x128xbf16>
    tpu.vector_store %arg9[%c0_51, %c0_52, %c256], %36 {strides = array<i32>} : memref<8x8x1152xbf16, #tpu.memory_space<vmem>>, vector<8x8x128xbf16>,
    %c1_i32 = arith.constant 1 : i32
    %38 = arith.addi %25, %c1_i32 : i32
    %39 = arith.index_cast %38 : i32 to index
    %c15_53 = arith.constant 15 : index
    %c0_54 = arith.constant 0 : index
    %40 = vector.load %arg7[%39, %c15_53, %c0_54] : memref<10x25x128xbf16, #tpu.memory_space<vmem>>, vector<8x8x128xbf16>
    %c0_55 = arith.constant 0 : index
    %c0_56 = arith.constant 0 : index
    %c384 = arith.constant 384 : index
    %41 = vector.load %arg9[%c0_55, %c0_56, %c384] : memref<8x8x1152xbf16, #tpu.memory_space<vmem>>, vector<8x8x128xbf16>
    tpu.vector_store %arg9[%c0_55, %c0_56, %c384], %40 {strides = array<i32>} : memref<8x8x1152xbf16, #tpu.memory_space<vmem>>, vector<8x8x128xbf16>,
    %c1_i32_57 = arith.constant 1 : i32
    %42 = arith.addi %25, %c1_i32_57 : i32
    %43 = arith.index_cast %42 : i32 to index
    %c16_58 = arith.constant 16 : index
    %c0_59 = arith.constant 0 : index
    %44 = vector.load %arg7[%43, %c16_58, %c0_59] : memref<10x25x128xbf16, #tpu.memory_space<vmem>>, vector<8x8x128xbf16>
    %c0_60 = arith.constant 0 : index
    %c0_61 = arith.constant 0 : index
    %c512 = arith.constant 512 : index
    %45 = vector.load %arg9[%c0_60, %c0_61, %c512] : memref<8x8x1152xbf16, #tpu.memory_space<vmem>>, vector<8x8x128xbf16>
    tpu.vector_store %arg9[%c0_60, %c0_61, %c512], %44 {strides = array<i32>} : memref<8x8x1152xbf16, #tpu.memory_space<vmem>>, vector<8x8x128xbf16>,
    %c1_i32_62 = arith.constant 1 : i32
    %46 = arith.addi %25, %c1_i32_62 : i32
    %47 = arith.index_cast %46 : i32 to index
    %c17_63 = arith.constant 17 : index
    %c0_64 = arith.constant 0 : index
    %48 = vector.load %arg7[%47, %c17_63, %c0_64] : memref<10x25x128xbf16, #tpu.memory_space<vmem>>, vector<8x8x128xbf16>
    %c0_65 = arith.constant 0 : index
    %c0_66 = arith.constant 0 : index
    %c640 = arith.constant 640 : index
    %49 = vector.load %arg9[%c0_65, %c0_66, %c640] : memref<8x8x1152xbf16, #tpu.memory_space<vmem>>, vector<8x8x128xbf16>
    tpu.vector_store %arg9[%c0_65, %c0_66, %c640], %48 {strides = array<i32>} : memref<8x8x1152xbf16, #tpu.memory_space<vmem>>, vector<8x8x128xbf16>,
    %c2_i32 = arith.constant 2 : i32
    %50 = arith.addi %25, %c2_i32 : i32
    %51 = arith.index_cast %50 : i32 to index
    %c15_67 = arith.constant 15 : index
    %c0_68 = arith.constant 0 : index
    %52 = vector.load %arg7[%51, %c15_67, %c0_68] : memref<10x25x128xbf16, #tpu.memory_space<vmem>>, vector<8x8x128xbf16>
    %c0_69 = arith.constant 0 : index
    %c0_70 = arith.constant 0 : index
    %c768 = arith.constant 768 : index
    %53 = vector.load %arg9[%c0_69, %c0_70, %c768] : memref<8x8x1152xbf16, #tpu.memory_space<vmem>>, vector<8x8x128xbf16>
    tpu.vector_store %arg9[%c0_69, %c0_70, %c768], %52 {strides = array<i32>} : memref<8x8x1152xbf16, #tpu.memory_space<vmem>>, vector<8x8x128xbf16>,
    %c2_i32_71 = arith.constant 2 : i32
    %54 = arith.addi %25, %c2_i32_71 : i32
    %55 = arith.index_cast %54 : i32 to index
    %c16_72 = arith.constant 16 : index
    %c0_73 = arith.constant 0 : index
    %56 = vector.load %arg7[%55, %c16_72, %c0_73] : memref<10x25x128xbf16, #tpu.memory_space<vmem>>, vector<8x8x128xbf16>
    %c0_74 = arith.constant 0 : index
    %c0_75 = arith.constant 0 : index
    %c896 = arith.constant 896 : index
    %57 = vector.load %arg9[%c0_74, %c0_75, %c896] : memref<8x8x1152xbf16, #tpu.memory_space<vmem>>, vector<8x8x128xbf16>
    tpu.vector_store %arg9[%c0_74, %c0_75, %c896], %56 {strides = array<i32>} : memref<8x8x1152xbf16, #tpu.memory_space<vmem>>, vector<8x8x128xbf16>,
    %c2_i32_76 = arith.constant 2 : i32
    %58 = arith.addi %25, %c2_i32_76 : i32
    %59 = arith.index_cast %58 : i32 to index
    %c17_77 = arith.constant 17 : index
    %c0_78 = arith.constant 0 : index
    %60 = vector.load %arg7[%59, %c17_77, %c0_78] : memref<10x25x128xbf16, #tpu.memory_space<vmem>>, vector<8x8x128xbf16>
    %c0_79 = arith.constant 0 : index
    %c0_80 = arith.constant 0 : index
    %c1024 = arith.constant 1024 : index
    %61 = vector.load %arg9[%c0_79, %c0_80, %c1024] : memref<8x8x1152xbf16, #tpu.memory_space<vmem>>, vector<8x8x128xbf16>
    tpu.vector_store %arg9[%c0_79, %c0_80, %c1024], %60 {strides = array<i32>} : memref<8x8x1152xbf16, #tpu.memory_space<vmem>>, vector<8x8x128xbf16>,
    %c0_81 = arith.constant 0 : index
    %c0_82 = arith.constant 0 : index
    %c0_83 = arith.constant 0 : index
    %62 = vector.load %arg9[%c0_81, %c0_82, %c0_83] : memref<8x8x1152xbf16, #tpu.memory_space<vmem>>, vector<8x8x1152xbf16>
    %63 = vector.shape_cast %62 : vector<8x8x1152xbf16> to vector<64x1152xbf16>
    %c0_84 = arith.constant 0 : index
    %c0_85 = arith.constant 0 : index
    %64 = vector.load %arg2[%c0_84, %c0_85] : memref<1152x128xbf16, #tpu.memory_space<vmem>>, vector<1152x128xbf16>
    %cst_86 = arith.constant dense<0.000000e+00> : vector<64x128xf32>
    %65 = tpu.matmul %63, %64, %cst_86 {dimension_numbers = #tpu.dot_dimension_numbers<[1], [0], [0], [1], [0, 0, 1, 1], [], []>} : vector<64x1152xbf16>, vector<1152x128xbf16>, vector<64x128xf32> -> vector<64x128xf32>
    %c0_87 = arith.constant 0 : index
    %c0_88 = arith.constant 0 : index
    %66 = vector.load %arg3[%c0_87, %c0_88] : memref<1x128xf32, #tpu.memory_space<vmem>>, vector<1x128xf32>
    %67 = vector.broadcast %66 : vector<1x128xf32> to vector<64x128xf32>
    %68 = arith.addf %65, %67 : vector<64x128xf32>
    %cst_89 = arith.constant 0.000000e+00 : f32
    %69 = vector.broadcast %cst_89 : f32 to vector<64x128xf32>
    %70 = arith.maximumf %68, %69 : vector<64x128xf32>
    %71 = vector.shape_cast %70 : vector<64x128xf32> to vector<8x8x128xf32>
    %72 = arith.truncf %71 : vector<8x8x128xf32> to vector<8x8x128xbf16>
    %c1_i32_90 = arith.constant 1 : i32
    %73 = arith.addi %c1_i32_90, %25 : i32
    %74 = arith.index_cast %73 : i32 to index
    %c16_91 = arith.constant 16 : index
    %c0_92 = arith.constant 0 : index
    %75 = vector.load %arg8[%74, %c16_91, %c0_92] : memref<10x25x128xbf16, #tpu.memory_space<vmem>>, vector<8x8x128xbf16>
    tpu.vector_store %arg8[%74, %c16_91, %c0_92], %72 {strides = array<i32>} : memref<10x25x128xbf16, #tpu.memory_space<vmem>>, vector<8x8x128xbf16>,
    %c1_i32_93 = arith.constant 1 : i32
    %c0_i32_94 = arith.constant 0 : i32
    %c8_i32_95 = arith.constant 8 : i32
    %76 = arith.muli %c0_i32_94, %c8_i32_95 : i32
    %77 = tpu.assume_multiple %76, 8 : i32
    %c0_i32_96 = arith.constant 0 : i32
    %78 = arith.addi %77, %c0_i32_96 : i32
    %79 = arith.index_cast %78 : i32 to index
    %c15_97 = arith.constant 15 : index
    %c0_98 = arith.constant 0 : index
    %80 = vector.load %arg8[%79, %c15_97, %c0_98] : memref<10x25x128xbf16, #tpu.memory_space<vmem>>, vector<8x8x128xbf16>
    %c0_99 = arith.constant 0 : index
    %c0_100 = arith.constant 0 : index
    %c0_101 = arith.constant 0 : index
    %81 = vector.load %arg10[%c0_99, %c0_100, %c0_101] : memref<8x8x1152xbf16, #tpu.memory_space<vmem>>, vector<8x8x128xbf16>
    tpu.vector_store %arg10[%c0_99, %c0_100, %c0_101], %80 {strides = array<i32>} : memref<8x8x1152xbf16, #tpu.memory_space<vmem>>, vector<8x8x128xbf16>,
    %c0_i32_102 = arith.constant 0 : i32
    %82 = arith.addi %77, %c0_i32_102 : i32
    %83 = arith.index_cast %82 : i32 to index
    %c16_103 = arith.constant 16 : index
    %c0_104 = arith.constant 0 : index
    %84 = vector.load %arg8[%83, %c16_103, %c0_104] : memref<10x25x128xbf16, #tpu.memory_space<vmem>>, vector<8x8x128xbf16>
    %c0_105 = arith.constant 0 : index
    %c0_106 = arith.constant 0 : index
    %c128_107 = arith.constant 128 : index
    %85 = vector.load %arg10[%c0_105, %c0_106, %c128_107] : memref<8x8x1152xbf16, #tpu.memory_space<vmem>>, vector<8x8x128xbf16>
    tpu.vector_store %arg10[%c0_105, %c0_106, %c128_107], %84 {strides = array<i32>} : memref<8x8x1152xbf16, #tpu.memory_space<vmem>>, vector<8x8x128xbf16>,
    %c0_i32_108 = arith.constant 0 : i32
    %86 = arith.addi %77, %c0_i32_108 : i32
    %87 = arith.index_cast %86 : i32 to index
    %c17_109 = arith.constant 17 : index
    %c0_110 = arith.constant 0 : index
    %88 = vector.load %arg8[%87, %c17_109, %c0_110] : memref<10x25x128xbf16, #tpu.memory_space<vmem>>, vector<8x8x128xbf16>
    %c0_111 = arith.constant 0 : index
    %c0_112 = arith.constant 0 : index
    %c256_113 = arith.constant 256 : index
    %89 = vector.load %arg10[%c0_111, %c0_112, %c256_113] : memref<8x8x1152xbf16, #tpu.memory_space<vmem>>, vector<8x8x128xbf16>
    tpu.vector_store %arg10[%c0_111, %c0_112, %c256_113], %88 {strides = array<i32>} : memref<8x8x1152xbf16, #tpu.memory_space<vmem>>, vector<8x8x128xbf16>,
    %c1_i32_114 = arith.constant 1 : i32
    %90 = arith.addi %77, %c1_i32_114 : i32
    %91 = arith.index_cast %90 : i32 to index
    %c15_115 = arith.constant 15 : index
    %c0_116 = arith.constant 0 : index
    %92 = vector.load %arg8[%91, %c15_115, %c0_116] : memref<10x25x128xbf16, #tpu.memory_space<vmem>>, vector<8x8x128xbf16>
    %c0_117 = arith.constant 0 : index
    %c0_118 = arith.constant 0 : index
    %c384_119 = arith.constant 384 : index
    %93 = vector.load %arg10[%c0_117, %c0_118, %c384_119] : memref<8x8x1152xbf16, #tpu.memory_space<vmem>>, vector<8x8x128xbf16>
    tpu.vector_store %arg10[%c0_117, %c0_118, %c384_119], %92 {strides = array<i32>} : memref<8x8x1152xbf16, #tpu.memory_space<vmem>>, vector<8x8x128xbf16>,
    %c1_i32_120 = arith.constant 1 : i32
    %94 = arith.addi %77, %c1_i32_120 : i32
    %95 = arith.index_cast %94 : i32 to index
    %c16_121 = arith.constant 16 : index
    %c0_122 = arith.constant 0 : index
    %96 = vector.load %arg8[%95, %c16_121, %c0_122] : memref<10x25x128xbf16, #tpu.memory_space<vmem>>, vector<8x8x128xbf16>
    %c0_123 = arith.constant 0 : index
    %c0_124 = arith.constant 0 : index
    %c512_125 = arith.constant 512 : index
    %97 = vector.load %arg10[%c0_123, %c0_124, %c512_125] : memref<8x8x1152xbf16, #tpu.memory_space<vmem>>, vector<8x8x128xbf16>
    tpu.vector_store %arg10[%c0_123, %c0_124, %c512_125], %96 {strides = array<i32>} : memref<8x8x1152xbf16, #tpu.memory_space<vmem>>, vector<8x8x128xbf16>,
    %c1_i32_126 = arith.constant 1 : i32
    %98 = arith.addi %77, %c1_i32_126 : i32
    %99 = arith.index_cast %98 : i32 to index
    %c17_127 = arith.constant 17 : index
    %c0_128 = arith.constant 0 : index
    %100 = vector.load %arg8[%99, %c17_127, %c0_128] : memref<10x25x128xbf16, #tpu.memory_space<vmem>>, vector<8x8x128xbf16>
    %c0_129 = arith.constant 0 : index
    %c0_130 = arith.constant 0 : index
    %c640_131 = arith.constant 640 : index
    %101 = vector.load %arg10[%c0_129, %c0_130, %c640_131] : memref<8x8x1152xbf16, #tpu.memory_space<vmem>>, vector<8x8x128xbf16>
    tpu.vector_store %arg10[%c0_129, %c0_130, %c640_131], %100 {strides = array<i32>} : memref<8x8x1152xbf16, #tpu.memory_space<vmem>>, vector<8x8x128xbf16>,
    %c2_i32_132 = arith.constant 2 : i32
    %102 = arith.addi %77, %c2_i32_132 : i32
    %103 = arith.index_cast %102 : i32 to index
    %c15_133 = arith.constant 15 : index
    %c0_134 = arith.constant 0 : index
    %104 = vector.load %arg8[%103, %c15_133, %c0_134] : memref<10x25x128xbf16, #tpu.memory_space<vmem>>, vector<8x8x128xbf16>
    %c0_135 = arith.constant 0 : index
    %c0_136 = arith.constant 0 : index
    %c768_137 = arith.constant 768 : index
    %105 = vector.load %arg10[%c0_135, %c0_136, %c768_137] : memref<8x8x1152xbf16, #tpu.memory_space<vmem>>, vector<8x8x128xbf16>
    tpu.vector_store %arg10[%c0_135, %c0_136, %c768_137], %104 {strides = array<i32>} : memref<8x8x1152xbf16, #tpu.memory_space<vmem>>, vector<8x8x128xbf16>,
    %c2_i32_138 = arith.constant 2 : i32
    %106 = arith.addi %77, %c2_i32_138 : i32
    %107 = arith.index_cast %106 : i32 to index
    %c16_139 = arith.constant 16 : index
    %c0_140 = arith.constant 0 : index
    %108 = vector.load %arg8[%107, %c16_139, %c0_140] : memref<10x25x128xbf16, #tpu.memory_space<vmem>>, vector<8x8x128xbf16>
    %c0_141 = arith.constant 0 : index
    %c0_142 = arith.constant 0 : index
    %c896_143 = arith.constant 896 : index
    %109 = vector.load %arg10[%c0_141, %c0_142, %c896_143] : memref<8x8x1152xbf16, #tpu.memory_space<vmem>>, vector<8x8x128xbf16>
    tpu.vector_store %arg10[%c0_141, %c0_142, %c896_143], %108 {strides = array<i32>} : memref<8x8x1152xbf16, #tpu.memory_space<vmem>>, vector<8x8x128xbf16>,
    %c2_i32_144 = arith.constant 2 : i32
    %110 = arith.addi %77, %c2_i32_144 : i32
    %111 = arith.index_cast %110 : i32 to index
    %c17_145 = arith.constant 17 : index
    %c0_146 = arith.constant 0 : index
    %112 = vector.load %arg8[%111, %c17_145, %c0_146] : memref<10x25x128xbf16, #tpu.memory_space<vmem>>, vector<8x8x128xbf16>
    %c0_147 = arith.constant 0 : index
    %c0_148 = arith.constant 0 : index
    %c1024_149 = arith.constant 1024 : index
    %113 = vector.load %arg10[%c0_147, %c0_148, %c1024_149] : memref<8x8x1152xbf16, #tpu.memory_space<vmem>>, vector<8x8x128xbf16>
    tpu.vector_store %arg10[%c0_147, %c0_148, %c1024_149], %112 {strides = array<i32>} : memref<8x8x1152xbf16, #tpu.memory_space<vmem>>, vector<8x8x128xbf16>,
    %c0_150 = arith.constant 0 : index
    %c0_151 = arith.constant 0 : index
    %c0_152 = arith.constant 0 : index
    %114 = vector.load %arg10[%c0_150, %c0_151, %c0_152] : memref<8x8x1152xbf16, #tpu.memory_space<vmem>>, vector<8x8x1152xbf16>
    %115 = vector.shape_cast %114 : vector<8x8x1152xbf16> to vector<64x1152xbf16>
    %c0_153 = arith.constant 0 : index
    %c0_154 = arith.constant 0 : index
    %116 = vector.load %arg4[%c0_153, %c0_154] : memref<1152x128xbf16, #tpu.memory_space<vmem>>, vector<1152x128xbf16>
    %cst_155 = arith.constant dense<0.000000e+00> : vector<64x128xf32>
    %117 = tpu.matmul %115, %116, %cst_155 {dimension_numbers = #tpu.dot_dimension_numbers<[1], [0], [0], [1], [0, 0, 1, 1], [], []>} : vector<64x1152xbf16>, vector<1152x128xbf16>, vector<64x128xf32> -> vector<64x128xf32>
    %c0_156 = arith.constant 0 : index
    %c0_157 = arith.constant 0 : index
    %118 = vector.load %arg5[%c0_156, %c0_157] : memref<1x128xf32, #tpu.memory_space<vmem>>, vector<1x128xf32>
    %119 = vector.broadcast %118 : vector<1x128xf32> to vector<64x128xf32>
    %120 = arith.addf %117, %119 : vector<64x128xf32>
    %cst_158 = arith.constant 0.000000e+00 : f32
    %121 = vector.broadcast %cst_158 : f32 to vector<64x128xf32>
    %122 = arith.maximumf %120, %121 : vector<64x128xf32>
    %123 = vector.shape_cast %122 : vector<64x128xf32> to vector<1x8x8x128xf32>
    %c0_159 = arith.constant 0 : index
    %124 = arith.index_cast %77 : i32 to index
    %c0_160 = arith.constant 0 : index
    %c0_161 = arith.constant 0 : index
    %125 = vector.load %arg6[%c0_159, %124, %c0_160, %c0_161] : memref<1x8x8x128xf32, #tpu.memory_space<vmem>>, vector<1x8x8x128xf32>
    tpu.vector_store %arg6[%c0_159, %124, %c0_160, %c0_161], %123 {strides = array<i32>} : memref<1x8x8x128xf32, #tpu.memory_space<vmem>>, vector<1x8x8x128xf32>,
    %c1_i32_162 = arith.constant 1 : i32
    return
  }
  func.func @transform_0(%arg0: i32) -> (i32, i32, i32, i32, i32, i32) {
    %c0_i32 = arith.constant 0 : i32
    %c0_i32_0 = arith.constant 0 : i32
    %c0_i32_1 = arith.constant 0 : i32
    %c0_i32_2 = arith.constant 0 : i32
    %c0_i32_3 = arith.constant 0 : i32
    %c0_i32_4 = arith.constant 0 : i32
    return %arg0, %c0_i32, %c0_i32_0, %c0_i32_1, %c0_i32_2, %c0_i32_3 : i32, i32, i32, i32, i32, i32
  }
  func.func @transform_1(%arg0: i32) -> (i32, i32) {
    %c0_i32 = arith.constant 0 : i32
    %c0_i32_0 = arith.constant 0 : i32
    %c0_i32_1 = arith.constant 0 : i32
    return %c0_i32, %c0_i32_0 : i32, i32
  }
  func.func @transform_2(%arg0: i32) -> (i32, i32) {
    %c0_i32 = arith.constant 0 : i32
    %c0_i32_0 = arith.constant 0 : i32
    %c0_i32_1 = arith.constant 0 : i32
    return %c0_i32, %c0_i32_0 : i32, i32
  }
  func.func @transform_3(%arg0: i32) -> (i32, i32) {
    %c0_i32 = arith.constant 0 : i32
    %c0_i32_0 = arith.constant 0 : i32
    %c0_i32_1 = arith.constant 0 : i32
    return %c0_i32, %c0_i32_0 : i32, i32
  }
  func.func @transform_4(%arg0: i32) -> (i32, i32) {
    %c0_i32 = arith.constant 0 : i32
    %c0_i32_0 = arith.constant 0 : i32
    %c0_i32_1 = arith.constant 0 : i32
    return %c0_i32, %c0_i32_0 : i32, i32
  }
  func.func @transform_5(%arg0: i32) -> (i32, i32, i32, i32) {
    %c0_i32 = arith.constant 0 : i32
    %c0_i32_0 = arith.constant 0 : i32
    %c0_i32_1 = arith.constant 0 : i32
    %c0_i32_2 = arith.constant 0 : i32
    return %arg0, %c0_i32, %c0_i32_0, %c0_i32_1 : i32, i32, i32, i32
  }
}

</mosaic_0001>

<bundles_post_ra>
// kernel: tpu_custom_call.1
= control target key start
LH: loop header
LB: loop body
LE: loop exit
PB: predicated region body
PF: predicated region fallthrough
CT: control target
= control target key end

     0   :  { %10 = vsyncpa [#allocation7], 0  ;;  %s7110_s0 = inlined_call_operand.vmem [shape: bf16[2,2,2,8,8,4], index: 0, kind: input, shape index: {}]   ;;  %s7111_s1 = inlined_call_operand.hbm [shape: bf16[1152,128], index: 1, kind: input, shape index: {}]   ;;  %s7112_s2 = inlined_call_operand.vmem [shape: f32[1,128], index: 2, kind: input, shape index: {}]   ;;  %s7113_s3 = inlined_call_operand.hbm [shape: bf16[1152,128], index: 3, kind: input, shape index: {}]   ;;  %s7114_s4 = inlined_call_operand.vmem [shape: f32[1,128], index: 4, kind: input, shape index: {}]   ;;  %s7115_s5 = inlined_call_operand.hbm [shape: f32[2,8,8,128], index: 5, kind: output, shape index: {}]  }
   0x1   :  { %11 = vsyncpa [#allocation10], 0 }
   0x2   :  { %12 = vsyncpa [#allocation8], 0 }
   0x3   :  { %14 = vsyncpa [#allocation8 + $0x1], 0  ;;  %s6113_s18 = smov 0   ;;  %s6115_s19 = smov 0  }
   0x4   :  { %s6117_s20 = smov 0   ;;  %s6119_s21 = smov 0  }
   0x5 LB: > { %s6134_s22 = sadd.s32 4294967295, %s6074_s21   ;;  %s4612_s23 = sadd.s32 4294967294, %s6074_s21   ;;  %s6074_s21 = sphi %s6119_s21, %s7136_s21   ;;  %s6070_s20 = sphi %s6117_s20, %s7135_s20   ;;  %s6066_s19 = sphi %s6115_s19, %s7134_s19   ;;  %s6062_s18 = sphi %s6113_s18, %s7133_s18  }
   0x6   : > { %s6138_s24 = sadd.s32 1, %s6074_s21   ;;  %s137_s25 = sadd.s32 1, %s6070_s20 }
   0x7   : > { %s134_s26 = ssub.s32 %s6074_s21, %s6138_s24  ;;  %p147_p0 = scmp.ne.s32.totalorder %s6070_s20, %s6066_s19 }
   0x8   : > { %p135_p1 = scmp.eq.s32.totalorder %s134_s26, 0  ;;  %p148_p2 = scmp.eq.s32.totalorder %s6134_s22, 1 }
   0x9   : > { %p153_p3 = scmp.ne.s32.totalorder %s6066_s19, %s6062_s18  ;;  %p154_p4 = scmp.eq.s32.totalorder %s4612_s23, 1 }
   0xa   : > { %s6149_s27 = scalar_select %p135_p1, %s6070_s20, %s137_s25  }
   0xb   : > { %p6151_p5 = por %p148_p2, %p147_p0  ;;  %p6155_p6 = por %p154_p4, %p153_p3 }
   0xc   : > { %p4613_p7 = scmp.ge.s32.totalorder %s6074_s21, 1  ;;  %p161_p8 = scmp.lt.s32.totalorder %s6074_s21, 3 }
   0xd   : > { %p5898_p9 = scmp.eq.s32.totalorder %s6134_s22, 0  ;;  %s172_s8 = sshll.u32 %s7111_s1, 4  ;;  %s173_s8 = int_to_ptr.hbm [resolvable:$true] %s172_s8 }
   0xe   : > { %p6162_p10 = pnand %p4613_p7, %p161_p8  ;;  %s6076_s9 = smov [#allocation6]  }
   0xf   : > { %s174_s10 = sshll.u32 %s6076_s9, 4  ;;  %s189_s13 = sshll.u32 %s7113_s3, 4  ;;  %s175_s10 = int_to_ptr.vmem [resolvable:$true] %s174_s10  ;;  %s190_s13 = int_to_ptr.hbm [resolvable:$true] %s189_s13 }
  0x10   : > { %p5887_p11 = pneg %p6162_p10  ;;  %s6077_s14 = smov 64  }
  0x11   : > { %s6078_s15 = smov 4   ;;  %s6079_s16 = smov [#allocation9]  }
  0x12   : > { %p5888_p12 = pnand %p5898_p9, %p5887_p11  ;;  %s191_s17 = sshll.u32 %s6079_s16, 4  ;;  %s192_s17 = int_to_ptr.vmem [resolvable:$true] %s191_s17 }
  0x13   : > { %218 = sbr.rel (%p6162_p10) target bundleno = 710 (0x2c6), region = 40 }
  0x14   : > { %5890 = dma.hbm_to_vmem [thread:$0]  (!%p5888_p12), %s173_s8, 9216, %s175_s10, [#allocation7], %s6077_s14, %s6077_s14, %s6078_s15  }
  0x15   : > { %5893 = dma.hbm_to_vmem [thread:$0]  (!%p5888_p12), %s190_s13, 9216, %s192_s17, [#allocation10], %s6077_s14, %s6077_s14, %s6078_s15  }
  0x18   : > { %6049 = dma.done.wait (%p5898_p9), [#allocation7], 9216  }
  0x19   : > { %6051 = vsyncadd (%p5898_p9), [#allocation7], 4294958080 }
  0x1a   : > { %6053 = dma.done.wait (%p5898_p9), [#allocation10], 9216  }
  0x1b   : > { %6055 = vsyncadd (%p5898_p9), [#allocation10], 4294958080  ;;  %p252_p13 = scmp.lt.s32.totalorder %s6134_s22, 1  ;;  %v6080_v0 = vmov 0   ;;  %v5608_v1 = vld [vmem:[#allocation6 + $0x38] sm:$0xff]  ;;  %v5607_v3 = vld [vmem:[#allocation6 + $0x30] sm:$0xff] }
  0x1c   : > { %286 = vst [vmem:[#allocation2 + $0x44] sm:$0xf] %v6080_v0  ;;  %v5616_v2 = vld [vmem:[#allocation6 + $0x78] sm:$0xff]  ;;  %5861 = vmatpush.bf16.msra.mxu2 %v5608_v1  ;;  %v5615_v4 = vld [vmem:[#allocation6 + $0x70] sm:$0xff]  ;;  %2246 = vmatpush.bf16.msra.mxu0 %v5608_v1  ;;  %v5606_v5 = vld [vmem:[#allocation6 + $0x28] sm:$0xff]  ;;  %vm529_vm0 = vcmask 27648  }
  0x1d   : > { %s253_s23 = scalar_select %p252_p13, %s6134_s22, 1  ;;  %287 = vst [vmem:[#allocation2 + $0x48] sm:$0xf] %v6080_v0  ;;  %5869 = vmatpush.bf16.msra.mxu3 %v5616_v2  ;;  %2275 = vmatpush.bf16.msra.mxu1 %v5616_v2  ;;  %v5614_v6 = vld [vmem:[#allocation6 + $0x68] sm:$0xff]  ;;  %v5605_v23 = vld [vmem:[#allocation6 + $0x20] sm:$0xff]  ;;  %v5604_v40 = vld [vmem:[#allocation6 + $0x18] sm:$0xff] }
  0x1e   : > { %292 = vst [vmem:[#allocation2 + $0x54] sm:$0xf] %v6080_v0  ;;  %v5613_v24 = vld [vmem:[#allocation6 + $0x60] sm:$0xff]  ;;  %v5612_v41 = vld [vmem:[#allocation6 + $0x58] sm:$0xff]  ;;  %vm262_vm1 = vsmask.f32 256 }
  0x1f   : > { %s5564_s25 = sshll.u32 %s253_s23, 7  ;;  %293 = vst [vmem:[#allocation2 + $0x58] sm:$0xf] %v6080_v0  ;;  %vm557_vm2 = vsmask.f32 4368  ;;  %v5603_v45 = vld [vmem:[#allocation6 + $0x10] sm:$0xff] }
  0x20   : > { %s6193_s6 = scalar_lea.vmem %s7110_s0, %s5564_s25  ;;  %5862 = vmatpush.bf16.msra.mxu2 %v5607_v3  ;;  %2247 = vmatpush.bf16.msra.mxu0 %v5607_v3  ;;  %259 = vst [vmem:[#allocation2 + $0x4] sm:$0xf] %v6080_v0  ;;  %v5611_v50 = vld [vmem:[#allocation6 + $0x50] sm:$0xff]  ;;  %v5602_v2 = vld [vmem:[#allocation6 + $0x8] sm:$0xff]  ;;  %vm6307_vm3 = vmor %vm262_vm1, %vm557_vm2  ;;  %vm261_vm4 = vcmask 1040384   ;;  %vm334_vm9 = vcmask 1043459  }
  0x21   : > { %v6198_v7 = vld [vmem:[%s6193_s6 + $0x8] sm:$0xff]   ;;  %v6201_v8 = vld [vmem:[%s6193_s6 + $0x10] sm:$0xff]   ;;  %5870 = vmatpush.bf16.msra.mxu3 %v5615_v4  ;;  %2276 = vmatpush.bf16.msra.mxu1 %v5615_v4  ;;  %v6230_v27 = vld [vmem:[%s6193_s6] sm:$0xff]   ;;  %260 = vst [vmem:[#allocation2 + $0x8] sm:$0xf] %v6080_v0  ;;  %s249_s11 = sand.u32 1, %s6066_s19  }
  0x22   : > { %v5789_v9 = vunpack.c.h.bf16 %v6198_v7  ;;  %v5792_v10 = vunpack.c.l.bf16 %v6201_v8  ;;  %v6206_v11 = vld [vmem:[%s6193_s6 + $0x28] sm:$0xff]   ;;  %v6209_v12 = vld [vmem:[%s6193_s6 + $0x30] sm:$0xff]   ;;  %v6234_v30 = vld [vmem:[%s6193_s6 + $0x20] sm:$0xff]   ;;  %268 = vst [vmem:[#allocation2 + $0x14] sm:$0xf] %v6080_v0  ;;  %v5784_v36 = vunpack.c.l.bf16 %v6230_v27  ;;  %v5793_v51 = vunpack.c.h.bf16 %v6201_v8  ;;  %s4620_s12 = sshll.u32 %s249_s11, 6 }
  0x23   : > { %v6212_v13 = vld [vmem:[%s6193_s6 + $0x48] sm:$0xff]   ;;  %v5805_v14 = vunpack.c.h.bf16 %v6206_v11  ;;  %v5808_v15 = vunpack.c.l.bf16 %v6209_v12  ;;  %v6218_v17 = vld [vmem:[%s6193_s6 + $0x50] sm:$0xff]   ;;  %v6237_v31 = vld [vmem:[%s6193_s6 + $0x40] sm:$0xff]   ;;  %269 = vst [vmem:[#allocation2 + $0x18] sm:$0xf] %v6080_v0  ;;  %v5800_v37 = vunpack.c.l.bf16 %v6234_v30  ;;  %v5809_v52 = vunpack.c.h.bf16 %v6209_v12  ;;  %s7041_s13 = scalar_lea.vmem [#allocation11], %s4620_s12 }
  0x24   : > { %v5821_v16 = vunpack.c.h.bf16 %v6212_v13  ;;  %v6221_v18 = vld [vmem:[%s6193_s6 + $0x68] sm:$0xff]   ;;  %v6224_v19 = vld [vmem:[%s6193_s6 + $0x70] sm:$0xff]   ;;  %v5824_v20 = vunpack.c.l.bf16 %v6218_v17  ;;  %5863 = vmatpush.bf16.msra.mxu2 %v5606_v5  ;;  %v6240_v32 = vld [vmem:[%s6193_s6 + $0x60] sm:$0xff]   ;;  %2248 = vmatpush.bf16.msra.mxu0 %v5606_v5  ;;  %v5816_v38 = vunpack.c.l.bf16 %v6237_v31  ;;  %274 = vst [vmem:[#allocation2 + $0x24] sm:$0xf] %v6080_v0  ;;  %v5825_v63 = vunpack.c.h.bf16 %v6218_v17  ;;  %s5781_s14 = sshll.u32 %s6134_s22, 6 }
  0x25   : > { %v5837_v21 = vunpack.c.h.bf16 %v6221_v18  ;;  %v5840_v22 = vunpack.c.l.bf16 %v6224_v19  ;;  %v433_v25 = vmax.f32 %v5789_v9, %v5805_v14  ;;  %v434_v26 = vmax.f32 %v5792_v10, %v5808_v15  ;;  %5871 = vmatpush.bf16.msra.mxu3 %v5614_v6  ;;  %2277 = vmatpush.bf16.msra.mxu1 %v5614_v6  ;;  %v549_v35 = vld [vmem:[#allocation2 + $0x44] sm:$0x8]  ;;  %275 = vst [vmem:[#allocation2 + $0x28] sm:$0xf] %v6080_v0  ;;  %v6253_v46 = vld [vmem:[#allocation2 + $0x54] sm:$0x8]  ;;  %vm6333_vm5 = vmand %vm261_vm4, %vm262_vm1  ;;  %s4520_s17 = scalar_lea.hbm %s7115_s5, %s5781_s14 }
  0x26   : > { %v5832_v39 = vunpack.c.l.bf16 %v6240_v32  ;;  %v612_v44 = vshrl.u32 %v549_v35, 16  ;;  %v430_v47 = vmax.f32 %v5784_v36, %v5800_v37  ;;  %v6256_v49 = vld [vmem:[%s6193_s6 + $0x18] sm:$0xff]   ;;  %280 = vst [vmem:[#allocation2 + $0x34] sm:$0xf] %v6080_v0  ;;  %v625_v58 = vshrl.u32 %v6253_v46, 16  ;;  %v5610_v3 = vld [vmem:[#allocation6 + $0x48] sm:$0xff] }
  0x27   : > { %v483_v28 = vmax.f32 %v5821_v16, %v5837_v21  ;;  %v484_v29 = vmax.f32 %v5824_v20, %v5840_v22  ;;  %v6262_v53 = vld [vmem:[%s6193_s6 + $0x38] sm:$0xff]   ;;  %281 = vst [vmem:[#allocation2 + $0x38] sm:$0xf] %v6080_v0  ;;  %v541_v59 = vld [vmem:[#allocation2 + $0x4] sm:$0x8]  ;;  %v5796_v60 = vunpack.c.l.bf16 %v6256_v49  ;;  %v6286_v5 = vmax.f32 %v5793_v51, %v5809_v52  ;;  %v5623_v52 = vld [vmem:[#allocation6 + $0xb0] sm:$0xff] }
  0x28   : > { %5864 = vmatpush.bf16.msra.mxu2 %v5605_v23  ;;  %2249 = vmatpush.bf16.msra.mxu0 %v5605_v23  ;;  %v480_v48 = vmax.f32 %v5816_v38, %v5832_v39  ;;  %v6265_v54 = vld [vmem:[%s6193_s6 + $0x58] sm:$0xff]   ;;  %v6268_v55 = vld [vmem:[#allocation2 + $0x8] sm:$0xf]  ;;  %v6273_v57 = vrot.slane %v612_v44, 11  ;;  %298 = vst [vmem:[#allocation2 + $0x64] sm:$0xf] %v6080_v0  ;;  %v5812_v62 = vunpack.c.l.bf16 %v6262_v53  ;;  %v5841_v6 = vunpack.c.h.bf16 %v6224_v19 }
  0x29   : > { %v515_v33 = vmax.f32 %v433_v25, %v483_v28  ;;  %v516_v34 = vmax.f32 %v434_v26, %v484_v29  ;;  %5872 = vmatpush.bf16.msra.mxu3 %v5613_v24  ;;  %2278 = vmatpush.bf16.msra.mxu1 %v5613_v24  ;;  %v6271_v56 = vld [vmem:[%s6193_s6 + $0x78] sm:$0xff]   ;;  %299 = vst [vmem:[#allocation2 + $0x68] sm:$0xf] %v6080_v0  ;;  %v5828_v1 = vunpack.c.l.bf16 %v6265_v54  ;;  %v565_v4 = vshrl.u32 %v6268_v55, 16  ;;  %v5601_v16 = vld [vmem:[#allocation6] sm:$0xff]  ;;  %s4521_s23 = sshll.u32 %s7041_s13, 4  ;;  %s4522_s23 = int_to_ptr.vmem [resolvable:$true] %s4521_s23 }
  0x2a   : > { %v6279_v61 = vmax.f32 %v430_v47, %v480_v48  ;;  %304 = vst [vmem:[#allocation2 + $0x74] sm:$0xf] %v6080_v0  ;;  %v5844_v8 = vunpack.c.l.bf16 %v6271_v56  ;;  %v560_v10 = vshrl.u32 %v541_v59, 16  ;;  %v5785_v12 = vunpack.c.h.bf16 %v6230_v27  ;;  %v6298_v25 = vld [vmem:[#allocation2 + $0x14] sm:$0x8]  ;;  %v5609_v27 = vld [vmem:[#allocation6 + $0x40] sm:$0xff] }
  0x2b   : > { %v523_v42 = vpack.c.bf16 %v515_v33, %v515_v33  ;;  %v524_v43 = vpack.c.bf16 %v516_v34, %v516_v34  ;;  %305 = vst [vmem:[#allocation2 + $0x78] sm:$0xf] %v6080_v0  ;;  %v5788_v14 = vunpack.c.l.bf16 %v6198_v7  ;;  %v5801_v15 = vunpack.c.h.bf16 %v6234_v30  ;;  %v5624_v33 = vld [vmem:[#allocation6 + $0xb8] sm:$0xff]  ;;  %s4523_s25 = sshll.u32 %s4520_s17, 4  ;;  %s4509_s22 = scalar_lea.sflag [#allocation8], %s249_s11  ;;  %s4524_s25 = int_to_ptr.hbm [resolvable:$true] %s4523_s25 }
  0x2c   : > { %5865 = vmatpush.bf16.msra.mxu2 %v5604_v40  ;;  %2250 = vmatpush.bf16.msra.mxu0 %v5604_v40  ;;  %310 = vst [vmem:[#allocation2 + $0x84] sm:$0xf] %v6080_v0  ;;  %v5804_v19 = vunpack.c.l.bf16 %v6206_v11  ;;  %v5817_v22 = vunpack.c.h.bf16 %v6237_v31  ;;  %v5820_v7 = vunpack.c.l.bf16 %v6212_v13  ;;  %v5833_v26 = vunpack.c.h.bf16 %v6240_v32  ;;  %v5632_v37 = vld [vmem:[#allocation6 + $0xf8] sm:$0xff]  ;;  %s6018_s26 = sshra.s32 %s4524_s25, 4  ;;  %s6024_s8 = scalar_lea.hbm %s7115_s5, 128  ;;  %s6019_s26 = int_to_ptr.hbm [resolvable:$true] %s6018_s26 }
  0x2d   : > { %533 = vst.msk [vmem:[#allocation2 + $0x48] sm:$0xf] %vm529_vm0, %v523_v42  ;;  %5873 = vmatpush.bf16.msra.mxu3 %v5612_v41  ;;  %2279 = vmatpush.bf16.msra.mxu1 %v5612_v41  ;;  %v567_v29 = vrot.slane %v565_v4, 7  ;;  %v568_v11 = vshll.u32 %v6268_v55, 16  ;;  %v5836_v30 = vunpack.c.l.bf16 %v6221_v18  ;;  %v4652_v13 = vrot.slane %v625_v58, 11  ;;  %v5640_v42 = vld [vmem:[#allocation6 + $0x138] sm:$0xff]  ;;  %p6025_p3 = scmp.lt.s32.totalorder %s6019_s26, %s7115_s5 }
  0x2e   : > { %534 = vst.msk [vmem:[#allocation2 + $0x58] sm:$0xf] %vm529_vm0, %v524_v43  ;;  %v436_v34 = vmax.f32 %v5796_v60, %v5812_v62  ;;  %v485_v35 = vmax.f32 %v5825_v63, %v5841_v6  ;;  %v4647_v18 = vrot.slane %v560_v10, 11  ;;  %v486_v38 = vmax.f32 %v5828_v1, %v5844_v8  ;;  %v5648_v55 = vld [vmem:[#allocation6 + $0x178] sm:$0xff]  ;;  %v5631_v60 = vld [vmem:[#allocation6 + $0xf0] sm:$0xff]  ;;  %v5630_v10 = vld [vmem:[#allocation6 + $0xe8] sm:$0xff] }
  0x2f   : > { %311 = vst [vmem:[#allocation2 + $0x88] sm:$0xf] %v6080_v0  ;;  %v431_v39 = vmax.f32 %v5785_v12, %v5801_v15  ;;  %v573_v41 = vshrl.u32 %v6298_v25, 16  ;;  %v553_v43 = vld [vmem:[#allocation2 + $0x64] sm:$0x8]  ;;  %v432_v44 = vmax.f32 %v5788_v14, %v5804_v19  ;;  %v570_v47 = vor.u32 %v568_v11, %v567_v29  ;;  %v5639_v1 = vld [vmem:[#allocation6 + $0x130] sm:$0xff] }
  0x30   : > { %5866 = vmatpush.bf16.msra.mxu2 %v5603_v45  ;;  %2251 = vmatpush.bf16.msra.mxu0 %v5603_v45  ;;  %316 = vst [vmem:[#allocation2 + $0x94] sm:$0xf] %v6080_v0  ;;  %v481_v45 = vmax.f32 %v5817_v22, %v5833_v26  ;;  %v482_v48 = vmax.f32 %v5820_v7, %v5836_v30  ;;  %v638_v63 = vshrl.u32 %v553_v43, 16  ;;  %v679_v8 = vld [vmem:[#allocation2 + $0x8] sm:$0xf]  ;;  %v5629_v25 = vld [vmem:[#allocation6 + $0xe0] sm:$0xff] }
  0x31   : > { %5874 = vmatpush.bf16.msra.mxu3 %v5611_v50  ;;  %2280 = vmatpush.bf16.msra.mxu1 %v5611_v50  ;;  %317 = vst [vmem:[#allocation2 + $0x98] sm:$0xf] %v6080_v0  ;;  %v517_v58 = vmax.f32 %v6286_v5, %v485_v35  ;;  %v518_v62 = vmax.f32 %v436_v34, %v486_v38  ;;  %v6327_v6 = vrot.slane %v573_v41, 11  ;;  %v5638_v12 = vld [vmem:[#allocation6 + $0x128] sm:$0xff]  ;;  %v547_v19 = vld [vmem:[#allocation2 + $0x34] sm:$0x8] }
  0x32   : > { %322 = vst [vmem:[#allocation3 + $0x4] sm:$0xf] %v6080_v0  ;;  %v513_v4 = vmax.f32 %v431_v39, %v481_v45  ;;  %v571_v5 = vsel %vm6307_vm3, %v4647_v18, %v570_v47  ;;  %v6330_v15 = vrot.slane %v638_v63, 11  ;;  %v270_v26 = vld [vmem:[#allocation2 + $0x1c] sm:$0x1]  ;;  %v5637_v11 = vld [vmem:[#allocation6 + $0x120] sm:$0xff] }
  0x33   : > { %323 = vst [vmem:[#allocation3 + $0x8] sm:$0xf] %v6080_v0  ;;  %v526_v14 = vpack.c.bf16 %v518_v62, %v518_v62  ;;  %v5620_v34 = vld [vmem:[#allocation6 + $0x98] sm:$0xff]  ;;  %v271_v39 = vsel %vm6333_vm5, 0, %v270_v26  ;;  %vm711_vm6 = vsmask.f32 3328 }
  0x34   : > { %v550_v9 = vld [vmem:[#allocation2 + $0x48] sm:$0xf]  ;;  %5867 = vmatpush.bf16.msra.mxu2 %v5602_v2  ;;  %2252 = vmatpush.bf16.msra.mxu0 %v5602_v2  ;;  %329 = vst [vmem:[#allocation3 + $0x94] sm:$0xf] %v6080_v0  ;;  %v555_v2 = vld [vmem:[#allocation2 + $0x74] sm:$0x8] }
  0x35   : > { %v552_v17 = vld [vmem:[#allocation2 + $0x58] sm:$0xf]  ;;  %v617_v20 = vshrl.u32 %v550_v9, 16  ;;  %v620_v21 = vshll.u32 %v550_v9, 16  ;;  %5875 = vmatpush.bf16.msra.mxu3 %v5610_v3  ;;  %2281 = vmatpush.bf16.msra.mxu1 %v5610_v3  ;;  %v683_v51 = vld [vmem:[#allocation2 + $0x48] sm:$0xf]  ;;  %v514_v9 = vmax.f32 %v432_v44, %v482_v48 }
  0x36   : > { %v630_v23 = vshrl.u32 %v552_v17, 16  ;;  %v633_v24 = vshll.u32 %v552_v17, 16  ;;  %v684_v59 = vld [vmem:[#allocation2 + $0x58] sm:$0xf]  ;;  %330 = vst [vmem:[#allocation3 + $0x98] sm:$0xf] %v6080_v0  ;;  %v525_v0 = vpack.c.bf16 %v517_v58, %v517_v58 }
  0x37   : > { %v619_v28 = vrot.slane %v617_v20, 7  ;;  %v5647_v3 = vld [vmem:[#allocation6 + $0x170] sm:$0xff]  ;;  %691 = vst [vmem:[#allocation4 + $0x94] sm:$0xf] %v683_v51  ;;  %v545_v17 = vld [vmem:[#allocation2 + $0x24] sm:$0x8]  ;;  %v522_v7 = vpack.c.bf16 %v514_v9, %v514_v9 }
  0x38   : > { %v632_v32 = vrot.slane %v630_v23, 7  ;;  %5868 = vmatpush.bf16.msra.mxu2 %v5601_v16  ;;  %2253 = vmatpush.bf16.msra.mxu0 %v5601_v16  ;;  %692 = vst [vmem:[#allocation4 + $0xb8] sm:$0xf] %v684_v59  ;;  %v651_v16 = vshrl.u32 %v555_v2, 16  ;;  %v5621_v20 = vld [vmem:[#allocation6 + $0xa0] sm:$0xff]  ;;  %v586_v30 = vshrl.u32 %v545_v17, 16 }
  0x39   : > { %v622_v36 = vor.u32 %v620_v21, %v619_v28  ;;  %5876 = vmatpush.bf16.msra.mxu3 %v5609_v27  ;;  %2282 = vmatpush.bf16.msra.mxu1 %v5609_v27  ;;  %671 = vst [vmem:[#allocation4] sm:$0xf] %v571_v5  ;;  %v521_v21 = vpack.c.bf16 %v513_v4, %v513_v4  ;;  %v264_v23 = vld [vmem:[#allocation2 + $0xc] sm:$0x1]  ;;  %v695_v28 = vld [vmem:[#allocation2 + $0x8] sm:$0xf] }
  0x3a   : > { %v635_v40 = vor.u32 %v633_v24, %v632_v32  ;;  %687 = vst [vmem:[#allocation4 + $0x4] sm:$0xf] %v679_v8  ;;  %v265_v32 = vsel %vm6333_vm5, 0, %v264_v23  ;;  %v715_v35 = vshrl.u32 %v695_v28, 16  ;;  %v6342_v18 = vrot.slane %v651_v16, 11  ;;  %v5628_v38 = vld [vmem:[#allocation6 + $0xd8] sm:$0xff] }
  0x3b   : > { %v623_v46 = vsel %vm6307_vm3, %v6273_v57, %v622_v36  ;;  %v520_v57 = vpack.c.bf16 %v6279_v61, %v6279_v61  ;;  %v5622_v61 = vld [vmem:[#allocation6 + $0xa8] sm:$0xff]  ;;  %535 = vst.msk [vmem:[#allocation2 + $0x68] sm:$0xf] %vm529_vm0, %v525_v0  ;;  %v718_v36 = vshll.u32 %v695_v28, 16  ;;  %v6347_v45 = vrot.slane %v586_v30, 11  ;;  %v5636_v47 = vld [vmem:[#allocation6 + $0x118] sm:$0xff] }
  0x3c   : > { %v636_v50 = vsel %vm6307_vm3, %v4652_v13, %v635_v40  ;;  %675 = vst [vmem:[#allocation4 + $0x90] sm:$0xf] %v623_v46  ;;  %2304 = vmatpush.bf16.msrb.mxu2 %v5624_v33  ;;  %2362 = vmatpush.bf16.msrb.mxu0 %v5640_v42  ;;  %v599_v13 = vshrl.u32 %v547_v19, 16  ;;  %v5619_v48 = vld [vmem:[#allocation6 + $0x90] sm:$0xff]  ;;  %v5626_v30 = vld [vmem:[#allocation6 + $0xc8] sm:$0xff]  ;;  %s6020_s30 = scalar_lea.hbm %s6019_s26, 64 }
  0x3d   : > { %676 = vst [vmem:[#allocation4 + $0xb4] sm:$0xf] %v636_v50  ;;  %2333 = vmatpush.bf16.msrb.mxu3 %v5632_v37  ;;  %2391 = vmatpush.bf16.msrb.mxu1 %v5648_v55  ;;  %v717_v50 = vrot.slane %v715_v35, 4  ;;  %v720_v51 = vrot.slane %v718_v36, 5  ;;  %v5627_v59 = vld [vmem:[#allocation6 + $0xd0] sm:$0xff]  ;;  %v5634_v35 = vld [vmem:[#allocation6 + $0x108] sm:$0xff]  ;;  %p6021_p0 = scmp.ne.s32.totalorder %s6019_s26, %s6020_s30  ;;  %p6026_p4 = scmp.lt.s32.totalorder %s6024_s8, %s6020_s30 }
  0x3e   : > { %530 = vst.msk [vmem:[#allocation2 + $0x18] sm:$0xf] %vm529_vm0, %v520_v57  ;;  %v5583_v33 = vld [vmem:[#allocation4 + $0x94] sm:$0xf]  ;;  %v6349_v46 = vrot.slane %v599_v13, 11  ;;  %v5645_v13 = vld [vmem:[#allocation6 + $0x160] sm:$0xff] }
  0x3f   : > { %536 = vst.msk [vmem:[#allocation2 + $0x78] sm:$0xf] %vm529_vm0, %v526_v14  ;;  %v4747_v37 = vld [vmem:[#allocation4 + $0xb4] sm:$0xf0]  ;;  %v5635_v28 = vld [vmem:[#allocation6 + $0x110] sm:$0xff]  ;;  %v5617_v36 = vld [vmem:[#allocation6 + $0x80] sm:$0xff]  ;;  %p6022_p1 = pnand %p6021_p0, %p6151_p5  ;;  %p6027_p7 = por %p6026_p4, %p6025_p3 }
  0x40   : > { %2305 = vmatpush.bf16.msrb.mxu2 %v5623_v52  ;;  %2363 = vmatpush.bf16.msrb.mxu0 %v5639_v1  ;;  %531 = vst.msk [vmem:[#allocation2 + $0x28] sm:$0xf] %vm529_vm0, %v521_v21  ;;  %v4750_v40 = vor.u32 %v5583_v33, %v4747_v37  ;;  %vm712_vm7 = vsmask.f32 7440  ;;  %vm335_vm10 = vsmask.f32 7950 }
  0x41   : > { %2334 = vmatpush.bf16.msrb.mxu3 %v5631_v60  ;;  %2392 = vmatpush.bf16.msrb.mxu1 %v5647_v3  ;;  %532 = vst.msk [vmem:[#allocation2 + $0x38] sm:$0xf] %vm529_vm0, %v522_v7  ;;  %v5565_v57 = vld [vmem:[#allocation4 + $0x4] sm:$0xf]  ;;  %vm6366_vm8 = vmor %vm711_vm6, %vm712_vm7  ;;  %p6023_p2 = pneg %p6022_p1 }
  0x42   : > { %266 = vst [vmem:[#allocation2 + $0xc] sm:$0x1] %v265_v32  ;;  %2293 = vmatmul.bf16.vlgmr.msra.gmra.mxu3 %v4750_v40  ;;  %v554_v55 = vld [vmem:[#allocation2 + $0x68] sm:$0xf]  ;;  %v4673_v32 = vld [vmem:[#allocation4] sm:$0xf]  ;;  %vm6552_vm11 = vmand %vm334_vm9, %vm335_vm10 }
  0x43   : > { %v4745_v24 = vld [vmem:[#allocation4 + $0x90] sm:$0xf]  ;;  %272 = vst [vmem:[#allocation2 + $0x1c] sm:$0x1] %v271_v39  ;;  %v685_v58 = vld [vmem:[#allocation2 + $0x68] sm:$0xf]  ;;  %p6028_p8 = pnand %p6027_p7, %p6023_p2 }
  0x44   : > { %v5587_v27 = vld [vmem:[#allocation4 + $0xb0] sm:$0xf0]  ;;  %2306 = vmatpush.bf16.msrb.mxu2 %v5622_v61  ;;  %2364 = vmatpush.bf16.msrb.mxu0 %v5638_v12  ;;  %v643_v62 = vshrl.u32 %v554_v55, 16  ;;  %v646_v63 = vshll.u32 %v554_v55, 16  ;;  %693 = vst [vmem:[#allocation4 + $0xdc] sm:$0xf] %v685_v58 }
  0x45   : > { %v4746_v29 = vor.u32 %v5587_v27, %v4745_v24  ;;  %2335 = vmatpush.bf16.msrb.mxu3 %v5630_v10  ;;  %v544_v41 = vld [vmem:[#allocation2 + $0x18] sm:$0xf]  ;;  %v721_v10 = vor.u32 %v720_v51, %v717_v50  ;;  %v5625_v39 = vld [vmem:[#allocation6 + $0xc0] sm:$0xff] }
  0x46   : > { %v680_v42 = vld [vmem:[#allocation2 + $0x18] sm:$0xf]  ;;  %v578_v43 = vshrl.u32 %v544_v41, 16  ;;  %v581_v44 = vshll.u32 %v544_v41, 16  ;;  %v645_v8 = vrot.slane %v643_v62, 7 }
  0x47   : > { %2264 = vmatmul.bf16.vlgmr.msra.gmra.mxu2 %v4746_v29  ;;  %688 = vst [vmem:[#allocation4 + $0x28] sm:$0xf] %v680_v42  ;;  %v556_v60 = vld [vmem:[#allocation2 + $0x78] sm:$0xf]  ;;  %v546_v5 = vld [vmem:[#allocation2 + $0x28] sm:$0xf] }
  0x48   : > { %2307 = vmatpush.bf16.msrb.mxu2 %v5621_v20  ;;  %2365 = vmatpush.bf16.msrb.mxu0 %v5637_v11  ;;  %v580_v52 = vrot.slane %v578_v43, 7  ;;  %v686_v1 = vld [vmem:[#allocation2 + $0x78] sm:$0xf]  ;;  %v656_v3 = vshrl.u32 %v556_v60, 16  ;;  %v659_v4 = vshll.u32 %v556_v60, 16  ;;  %v591_v61 = vshrl.u32 %v546_v5, 16 }
  0x49   : > { %2336 = vmatpush.bf16.msrb.mxu3 %v5629_v25  ;;  %694 = vst [vmem:[#allocation4 + $0x100] sm:$0xf] %v686_v1  ;;  %v548_v9 = vld [vmem:[#allocation2 + $0x38] sm:$0xf]  ;;  %v594_v14 = vshll.u32 %v546_v5, 16  ;;  %v5646_v20 = vld [vmem:[#allocation6 + $0x168] sm:$0xff]  ;;  %v648_v19 = vor.u32 %v646_v63, %v645_v8 }
  0x4a   : > { %v583_v2 = vor.u32 %v581_v44, %v580_v52  ;;  %v658_v0 = vrot.slane %v656_v3, 7  ;;  %v604_v16 = vshrl.u32 %v548_v9, 16  ;;  %v681_v17 = vld [vmem:[#allocation2 + $0x28] sm:$0xf]  ;;  %v593_v23 = vrot.slane %v591_v61, 7  ;;  %2393 = vmatpush.bf16.msrb.mxu1 %v5646_v20  ;;  %v5644_v40 = vld [vmem:[#allocation6 + $0x158] sm:$0xff] }
  0x4b   : > { %v607_v24 = vshll.u32 %v548_v9, 16  ;;  %v682_v27 = vld [vmem:[#allocation2 + $0x38] sm:$0xf]  ;;  %689 = vst [vmem:[#allocation4 + $0x4c] sm:$0xf] %v681_v17  ;;  %v5618_v11 = vld [vmem:[#allocation6 + $0x88] sm:$0xff] }
  0x4c   : > { %2308 = vmatpush.bf16.msrb.mxu2 %v5620_v34  ;;  %2366 = vmatpush.bf16.msrb.mxu0 %v5636_v47  ;;  %v584_v12 = vsel %vm6307_vm3, %v6327_v6, %v583_v2  ;;  %v661_v7 = vor.u32 %v659_v4, %v658_v0  ;;  %v606_v26 = vrot.slane %v604_v16, 7  ;;  %v649_v6 = vsel %vm6307_vm3, %v6330_v15, %v648_v19  ;;  %v5633_v42 = vld [vmem:[#allocation6 + $0x100] sm:$0xff]  ;;  %v696_v43 = vld [vmem:[#allocation2 + $0xc] sm:$0x1]  ;;  %v697_v47 = vld [vmem:[#allocation2 + $0x18] sm:$0xf] }
  0x4d   : > { %2337 = vmatpush.bf16.msrb.mxu3 %v5628_v38  ;;  %672 = vst [vmem:[#allocation4 + $0x24] sm:$0xf] %v584_v12  ;;  %v596_v29 = vor.u32 %v594_v14, %v593_v23  ;;  %v722_v37 = vrot.slane %v721_v10, 4  ;;  %v5592_v38 = vld [vmem:[#allocation4 + $0xdc] sm:$0xf]  ;;  %v724_v51 = vshll.u32 %v696_v43, 16 }
  0x4e   : > { %v4675_v21 = vld [vmem:[#allocation4 + $0x24] sm:$0xf0]  ;;  %690 = vst [vmem:[#allocation4 + $0x70] sm:$0xf] %v682_v27  ;;  %v662_v33 = vsel %vm6307_vm3, %v6342_v18, %v661_v7  ;;  %v609_v34 = vor.u32 %v607_v24, %v606_v26  ;;  %2394 = vmatpush.bf16.msrb.mxu1 %v5645_v13  ;;  %v729_v52 = vshrl.u32 %v697_v47, 16  ;;  %v732_v55 = vshll.u32 %v697_v47, 16 }
  0x4f   : > { %v4678_v25 = vor.u32 %v5565_v57, %v4675_v21  ;;  %677 = vst [vmem:[#allocation4 + $0xd8] sm:$0xf] %v649_v6  ;;  %v597_v15 = vsel %vm6307_vm3, %v6347_v45, %v596_v29  ;;  %v5656_v58 = vld [vmem:[#allocation6 + $0x1b8] sm:$0xff]  ;;  %v846_v57 = vld [vmem:[#allocation2 + $0x14] sm:$0x8]  ;;  %v726_v2 = vrot.slane %v724_v51, 5 }
  0x50   : > { %2309 = vmatpush.bf16.msrb.mxu2 %v5619_v48  ;;  %2367 = vmatpush.bf16.msrb.mxu0 %v5635_v28  ;;  %678 = vst [vmem:[#allocation4 + $0xfc] sm:$0xf] %v662_v33  ;;  %v4783_v41 = vld [vmem:[#allocation4 + $0xfc] sm:$0xf0]  ;;  %v610_v18 = vsel %vm6307_vm3, %v6349_v46, %v609_v34  ;;  %v698_v48 = vld [vmem:[#allocation2 + $0x1c] sm:$0x1] }
  0x51   : > { %2338 = vmatpush.bf16.msrb.mxu3 %v5627_v59  ;;  %2283 = vmatmul.bf16.vlgmr.msra.gmra.mxu1 %v4678_v25  ;;  %673 = vst [vmem:[#allocation4 + $0x48] sm:$0xf] %v597_v15  ;;  %v4786_v44 = vor.u32 %v5592_v38, %v4783_v41  ;;  %v738_v59 = vshll.u32 %v698_v48, 16  ;;  %v5643_v60 = vld [vmem:[#allocation6 + $0x150] sm:$0xff]  ;;  %v731_v3 = vrot.slane %v729_v52, 4  ;;  %v734_v4 = vrot.slane %v732_v55, 5 }
  0x52   : > { %674 = vst [vmem:[#allocation4 + $0x6c] sm:$0xf] %v610_v18  ;;  %2395 = vmatpush.bf16.msrb.mxu1 %v5644_v40  ;;  %v5574_v63 = vld [vmem:[#allocation4 + $0x4c] sm:$0xf]  ;;  %v5664_v5 = vld [vmem:[#allocation6 + $0x1f8] sm:$0xff]  ;;  %v863_v61 = vshrl.u32 %v846_v57, 16  ;;  %v727_v12 = vsel %vm6366_vm8, %v722_v37, %v726_v2 }
  0x53   : > { %2298 = vmatmul.bf16.gmra.mxu3 %v4786_v44  ;;  %v847_v9 = vld [vmem:[#allocation2 + $0x18] sm:$0xf]  ;;  %v735_v0 = vor.u32 %v734_v4, %v731_v3  ;;  %v740_v14 = vrot.slane %v738_v59, 5  ;;  %v848_v16 = vld [vmem:[#allocation2 + $0x24] sm:$0x8]  ;;  %v5642_v7 = vld [vmem:[#allocation6 + $0x148] sm:$0xff]  ;;  %v5813_v4 = vunpack.c.h.bf16 %v6262_v53 }
  0x54   : > { %2310 = vmatpush.bf16.msrb.mxu2 %v5618_v11  ;;  %v5569_v50 = vld [vmem:[#allocation4 + $0x20] sm:$0xf0]  ;;  %2368 = vmatpush.bf16.msrb.mxu0 %v5634_v35  ;;  %v849_v17 = vld [vmem:[#allocation2 + $0x28] sm:$0xf]  ;;  %834 = vst [vmem:[#allocation4 + $0x8] sm:$0xf] %v727_v12 }
  0x55   : > { %2339 = vmatpush.bf16.msrb.mxu3 %v5626_v30  ;;  %v4674_v45 = vor.u32 %v5569_v50, %v4673_v32  ;;  %v4711_v1 = vld [vmem:[#allocation4 + $0x6c] sm:$0xf0]  ;;  %v4655_v20 = vrot.slane %v863_v61, 11  ;;  %v868_v21 = vshrl.u32 %v847_v9, 16  ;;  %v736_v19 = vrot.slane %v735_v0, 4  ;;  %v5672_v35 = vld [vmem:[#allocation6 + $0x238] sm:$0xff] }
  0x56   : > { %v4781_v62 = vld [vmem:[#allocation4 + $0xd8] sm:$0xf]  ;;  %2396 = vmatpush.bf16.msrb.mxu1 %v5643_v60  ;;  %v871_v23 = vshll.u32 %v847_v9, 16  ;;  %v876_v24 = vshrl.u32 %v848_v16, 16  ;;  %v4714_v28 = vor.u32 %v5574_v63, %v4711_v1  ;;  %v881_v29 = vshrl.u32 %v849_v17, 16  ;;  %v5655_v13 = vld [vmem:[#allocation6 + $0x1b0] sm:$0xff] }
  0x57   : > { %2254 = vmatmul.bf16.vlgmr.msra.gmra.mxu0 %v4674_v45  ;;  %v5596_v8 = vld [vmem:[#allocation4 + $0xf8] sm:$0xf0]  ;;  %v982_v25 = vld [vmem:[#allocation2 + $0x18] sm:$0xf]  ;;  %v870_v6 = vrot.slane %v868_v21, 7  ;;  %v884_v11 = vshll.u32 %v849_v17, 16  ;;  %v741_v32 = vsel %vm6366_vm8, %v736_v19, %v740_v14  ;;  %v5829_v61 = vunpack.c.h.bf16 %v6265_v54 }
  0x58   : > { %2311 = vmatpush.bf16.msrb.mxu2 %v5617_v36  ;;  %2369 = vmatpush.bf16.msrb.mxu0 %v5633_v42  ;;  %v4782_v10 = vor.u32 %v5596_v8, %v4781_v62  ;;  %v6372_v26 = vld [vmem:[#allocation4 + $0x48] sm:$0xf]  ;;  %v4656_v33 = vrot.slane %v876_v24, 11  ;;  %990 = vst [vmem:[#allocation4 + $0x10] sm:$0xf] %v982_v25  ;;  %v5663_v34 = vld [vmem:[#allocation6 + $0x1f0] sm:$0xff]  ;;  %v5797_v62 = vunpack.c.h.bf16 %v6256_v49  ;;  %v5845_v16 = vunpack.c.h.bf16 %v6271_v56 }
  0x59   : > { %2340 = vmatpush.bf16.msrb.mxu3 %v5625_v39  ;;  %v5578_v27 = vld [vmem:[#allocation4 + $0x68] sm:$0xf0]  ;;  %v983_v30 = vld [vmem:[#allocation2 + $0x28] sm:$0xf]  ;;  %835 = vst [vmem:[#allocation4 + $0x2c] sm:$0xf] %v741_v32  ;;  %v873_v36 = vor.u32 %v871_v23, %v870_v6 }
  0x5a   : > { %2269 = vmatmul.bf16.gmra.mxu2 %v4782_v10  ;;  %v883_v37 = vrot.slane %v881_v29, 7  ;;  %2397 = vmatpush.bf16.msrb.mxu1 %v5642_v7  ;;  %v5641_v38 = vld [vmem:[#allocation6 + $0x140] sm:$0xff]  ;;  %v276_v15 = vld [vmem:[#allocation2 + $0x2c] sm:$0x1]  ;;  %991 = vst [vmem:[#allocation4 + $0x34] sm:$0xf] %v983_v30  ;;  %v4710_v47 = vor.u32 %v5578_v27, %v6372_v26  ;;  %v437_v23 = vmax.f32 %v5797_v62, %v5813_v4 }
  0x5b   : > { %v277_v39 = vsel %vm6333_vm5, 0, %v276_v15  ;;  %v998_v40 = vld [vmem:[#allocation2 + $0x18] sm:$0xf]  ;;  %v5654_v41 = vld [vmem:[#allocation6 + $0x1a8] sm:$0xff]  ;;  %v874_v18 = vsel %vm6307_vm3, %v4655_v20, %v873_v36  ;;  %v999_v43 = vld [vmem:[#allocation2 + $0x1c] sm:$0x1] }
  0x5c   : > { %2420 = vmatpush.bf16.msra.mxu2 %v5656_v58  ;;  %2478 = vmatpush.bf16.msra.mxu0 %v5672_v35  ;;  %v886_v42 = vor.u32 %v884_v11, %v883_v37  ;;  %278 = vst [vmem:[#allocation2 + $0x2c] sm:$0x1] %v277_v39  ;;  %v1000_v44 = vld [vmem:[#allocation2 + $0x28] sm:$0xf]  ;;  %v1015_v48 = vshrl.u32 %v998_v40, 16  ;;  %v1018_v50 = vshll.u32 %v998_v40, 16 }
  0x5d   : > { %2449 = vmatpush.bf16.msra.mxu3 %v5664_v5  ;;  %974 = vst [vmem:[#allocation4 + $0xc] sm:$0xf] %v874_v18  ;;  %v1024_v51 = vshll.u32 %v999_v43, 16  ;;  %v1029_v52 = vshrl.u32 %v1000_v44, 16  ;;  %v1032_v55 = vshll.u32 %v1000_v44, 16  ;;  %v5662_v56 = vld [vmem:[#allocation6 + $0x1e8] sm:$0xff] }
  0x5e   : > { %v887_v45 = vsel %vm6307_vm3, %v4656_v33, %v886_v42  ;;  %2398 = vmatpush.bf16.msrb.mxu1 %v5641_v38  ;;  %v282_v58 = vld [vmem:[#allocation2 + $0x3c] sm:$0x1]  ;;  %v1017_v59 = vrot.slane %v1015_v48, 4  ;;  %v1020_v57 = vrot.slane %v1018_v50, 5  ;;  %v4681_v63 = vld [vmem:[#allocation4 + $0x8] sm:$0xf]  ;;  %v487_v33 = vmax.f32 %v5829_v61, %v5845_v16 }
  0x5f   : > { %975 = vst [vmem:[#allocation4 + $0x30] sm:$0xf] %v887_v45  ;;  %v283_v60 = vsel %vm6333_vm5, 0, %v282_v58  ;;  %v1026_v1 = vrot.slane %v1024_v51, 5  ;;  %v1031_v2 = vrot.slane %v1029_v52, 4  ;;  %v1034_v3 = vrot.slane %v1032_v55, 5 }
  0x60   : > { %2421 = vmatpush.bf16.msra.mxu2 %v5655_v13  ;;  %v5570_v5 = vld [vmem:[#allocation4 + $0x28] sm:$0xf0]  ;;  %v1021_v8 = vor.u32 %v1020_v57, %v1017_v59  ;;  %284 = vst [vmem:[#allocation2 + $0x3c] sm:$0x1] %v283_v60  ;;  %v699_v9 = vld [vmem:[#allocation2 + $0x28] sm:$0xf]  ;;  %v6393_v42 = vmax.f32 %v437_v23, %v487_v33 }
  0x61   : > { %2450 = vmatpush.bf16.msra.mxu3 %v5663_v34  ;;  %2288 = vmatmul.bf16.gmra.mxu1 %v4714_v28  ;;  %v1035_v10 = vor.u32 %v1034_v3, %v1031_v2  ;;  %v701_v12 = vld [vmem:[#allocation2 + $0x38] sm:$0xf]  ;;  %v743_v0 = vshrl.u32 %v699_v9, 16  ;;  %v746_v14 = vshll.u32 %v699_v9, 16  ;;  %v4682_v49 = vor.u32 %v5570_v5, %v4681_v63  ;;  %v850_v29 = vld [vmem:[#allocation2 + $0x34] sm:$0x8] }
  0x62   : > { %v1022_v20 = vrot.slane %v1021_v8, 4  ;;  %v757_v19 = vshrl.u32 %v701_v12, 16  ;;  %v760_v6 = vshll.u32 %v701_v12, 16  ;;  %v889_v32 = vshrl.u32 %v850_v29, 16  ;;  %v851_v37 = vld [vmem:[#allocation2 + $0x38] sm:$0xf] }
  0x63   : > { %v1001_v17 = vld [vmem:[#allocation2 + $0x2c] sm:$0x1]  ;;  %v1036_v24 = vrot.slane %v1035_v10, 4  ;;  %v745_v7 = vrot.slane %v743_v0, 4  ;;  %v748_v26 = vrot.slane %v746_v14, 5  ;;  %v897_v48 = vshll.u32 %v851_v37, 16 }
  0x64   : > { %2422 = vmatpush.bf16.msra.mxu2 %v5654_v41  ;;  %v700_v21 = vld [vmem:[#allocation2 + $0x2c] sm:$0x1]  ;;  %v1038_v25 = vshll.u32 %v1001_v17, 16  ;;  %v1027_v54 = vsel %vm6366_vm8, %v1022_v20, %v1026_v1  ;;  %v759_v28 = vrot.slane %v757_v19, 4  ;;  %v762_v36 = vrot.slane %v760_v6, 5  ;;  %v5671_v50 = vld [vmem:[#allocation6 + $0x230] sm:$0xff] }
  0x65   : > { %v5566_v53 = vld [vmem:[#allocation4 + $0xc] sm:$0xf]  ;;  %v752_v27 = vshll.u32 %v700_v21, 16  ;;  %1134 = vst [vmem:[#allocation4 + $0x14] sm:$0xf] %v1027_v54  ;;  %v749_v13 = vor.u32 %v748_v26, %v745_v7  ;;  %2451 = vmatpush.bf16.msra.mxu3 %v5662_v56  ;;  %v4657_v18 = vrot.slane %v889_v32, 11  ;;  %2479 = vmatpush.bf16.msra.mxu0 %v5671_v50 }
  0x66   : > { %v4683_v11 = vld [vmem:[#allocation4 + $0x2c] sm:$0xf0]  ;;  %v1040_v30 = vrot.slane %v1038_v25, 5  ;;  %v852_v38 = vld [vmem:[#allocation2 + $0x44] sm:$0x8]  ;;  %v763_v43 = vor.u32 %v762_v36, %v759_v28  ;;  %v5670_v10 = vld [vmem:[#allocation6 + $0x228] sm:$0xff] }
  0x67   : > { %2259 = vmatmul.bf16.gmra.mxu0 %v4710_v47  ;;  %v4686_v34 = vor.u32 %v5566_v53, %v4683_v11  ;;  %v754_v35 = vrot.slane %v752_v27, 5  ;;  %v702_v39 = vld [vmem:[#allocation2 + $0x3c] sm:$0x1]  ;;  %v750_v40 = vrot.slane %v749_v13, 4  ;;  %v853_v41 = vld [vmem:[#allocation2 + $0x48] sm:$0xf] }
  0x68   : > { %v1041_v15 = vsel %vm6366_vm8, %v1036_v24, %v1040_v30  ;;  %v766_v44 = vshll.u32 %v702_v39, 16  ;;  %v894_v47 = vshrl.u32 %v851_v37, 16  ;;  %v4689_v45 = vld [vmem:[#allocation4 + $0x10] sm:$0xf]  ;;  %v5571_v51 = vld [vmem:[#allocation4 + $0x30] sm:$0xf0] }
  0x69   : > { %2341 = vmatmul.bf16.vlgmr.msrb.gmra.mxu3 %v4686_v34  ;;  %1135 = vst [vmem:[#allocation4 + $0x38] sm:$0xf] %v1041_v15  ;;  %v755_v52 = vsel %vm6366_vm8, %v750_v40, %v754_v35  ;;  %v902_v55 = vshrl.u32 %v852_v38, 16  ;;  %v907_v58 = vshrl.u32 %v853_v41, 16  ;;  %v910_v59 = vshll.u32 %v853_v41, 16  ;;  %v5653_v60 = vld [vmem:[#allocation6 + $0x1a0] sm:$0xff]  ;;  %2480 = vmatpush.bf16.msra.mxu0 %v5670_v10 }
  0x6a   : > { %2312 = vmatmul.bf16.vlgmr.msrb.gmra.mxu2 %v4682_v49  ;;  %v984_v57 = vld [vmem:[#allocation2 + $0x38] sm:$0xf]  ;;  %v764_v62 = vrot.slane %v763_v43, 4  ;;  %v768_v63 = vrot.slane %v766_v44, 5  ;;  %836 = vst [vmem:[#allocation4 + $0x50] sm:$0xf] %v755_v52  ;;  %v4690_v16 = vor.u32 %v5571_v51, %v4689_v45 }
  0x6b   : > { %v896_v1 = vrot.slane %v894_v47, 7  ;;  %v5661_v2 = vld [vmem:[#allocation6 + $0x1e0] sm:$0xff]  ;;  %v4658_v3 = vrot.slane %v902_v55, 11  ;;  %v909_v4 = vrot.slane %v907_v58, 7  ;;  %v985_v5 = vld [vmem:[#allocation2 + $0x48] sm:$0xf]  ;;  %2423 = vmatpush.bf16.msra.mxu2 %v5653_v60 }
  0x6c   : > { %992 = vst [vmem:[#allocation4 + $0x58] sm:$0xf] %v984_v57  ;;  %v5567_v8 = vld [vmem:[#allocation4 + $0x14] sm:$0xf]  ;;  %v769_v9 = vsel %vm6366_vm8, %v764_v62, %v768_v63  ;;  %2452 = vmatpush.bf16.msra.mxu3 %v5661_v2  ;;  %v288_v0 = vld [vmem:[#allocation2 + $0x4c] sm:$0x1] }
  0x6d   : > { %v899_v61 = vor.u32 %v897_v48, %v896_v1  ;;  %993 = vst [vmem:[#allocation4 + $0x7c] sm:$0xf] %v985_v5  ;;  %v912_v12 = vor.u32 %v910_v59, %v909_v4  ;;  %v1002_v14 = vld [vmem:[#allocation2 + $0x38] sm:$0xf]  ;;  %v289_v17 = vsel %vm6333_vm5, 0, %v288_v0  ;;  %v5669_v47 = vld [vmem:[#allocation6 + $0x220] sm:$0xff] }
  0x6e   : > { %837 = vst [vmem:[#allocation4 + $0x74] sm:$0xf] %v769_v9  ;;  %v1003_v20 = vld [vmem:[#allocation2 + $0x3c] sm:$0x1]  ;;  %v1004_v21 = vld [vmem:[#allocation2 + $0x48] sm:$0xf]  ;;  %2481 = vmatpush.bf16.msra.mxu0 %v5669_v47 }
  0x6f   : > { %v900_v49 = vsel %vm6307_vm3, %v4657_v18, %v899_v61  ;;  %v1043_v19 = vshrl.u32 %v1002_v14, 16  ;;  %v913_v53 = vsel %vm6307_vm3, %v4658_v3, %v912_v12  ;;  %v1046_v24 = vshll.u32 %v1002_v14, 16  ;;  %v5652_v28 = vld [vmem:[#allocation6 + $0x198] sm:$0xff]  ;;  %290 = vst [vmem:[#allocation2 + $0x4c] sm:$0x1] %v289_v17  ;;  %v5651_v61 = vld [vmem:[#allocation6 + $0x190] sm:$0xff] }
  0x70   : > { %v4691_v23 = vld [vmem:[#allocation4 + $0x34] sm:$0xf0]  ;;  %976 = vst [vmem:[#allocation4 + $0x54] sm:$0xf] %v900_v49  ;;  %v1052_v25 = vshll.u32 %v1003_v20, 16  ;;  %v1057_v54 = vshrl.u32 %v1004_v21, 16  ;;  %2424 = vmatpush.bf16.msra.mxu2 %v5652_v28 }
  0x71   : > { %v4694_v7 = vor.u32 %v5567_v8, %v4691_v23  ;;  %977 = vst [vmem:[#allocation4 + $0x78] sm:$0xf] %v913_v53  ;;  %v1045_v26 = vrot.slane %v1043_v19, 4  ;;  %v1060_v27 = vshll.u32 %v1004_v21, 16  ;;  %v4717_v6 = vld [vmem:[#allocation4 + $0x50] sm:$0xf] }
  0x72   : > { %v1048_v29 = vrot.slane %v1046_v24, 5  ;;  %v1054_v56 = vrot.slane %v1052_v25, 5  ;;  %v1059_v11 = vrot.slane %v1057_v54, 4  ;;  %v294_v13 = vld [vmem:[#allocation2 + $0x5c] sm:$0x1] }
  0x73   : > { %2399 = vmatmul.bf16.vlgmr.msrb.gmra.mxu1 %v4694_v7  ;;  %v1062_v30 = vrot.slane %v1060_v27, 5  ;;  %v6405_v32 = vld [vmem:[#allocation4 + $0x58] sm:$0xf]  ;;  %v295_v35 = vsel %vm6333_vm5, 0, %v294_v13  ;;  %v703_v36 = vld [vmem:[#allocation2 + $0x48] sm:$0xf] }
  0x74   : > { %v6407_v33 = vld [vmem:[#allocation4 + $0x78] sm:$0xf0]  ;;  %v1049_v34 = vor.u32 %v1048_v29, %v1045_v26  ;;  %296 = vst [vmem:[#allocation2 + $0x5c] sm:$0x1] %v295_v35  ;;  %v705_v39 = vld [vmem:[#allocation2 + $0x58] sm:$0xf]  ;;  %2425 = vmatpush.bf16.msra.mxu2 %v5651_v61 }
  0x75   : > { %v5660_v37 = vld [vmem:[#allocation6 + $0x1d8] sm:$0xff]  ;;  %v5579_v38 = vld [vmem:[#allocation4 + $0x70] sm:$0xf0]  ;;  %v1063_v15 = vor.u32 %v1062_v30, %v1059_v11  ;;  %v771_v18 = vshrl.u32 %v703_v36, 16  ;;  %v774_v43 = vshll.u32 %v703_v36, 16  ;;  %v785_v45 = vshrl.u32 %v705_v39, 16 }
  0x76   : > { %v4718_v40 = vor.u32 %v5579_v38, %v4717_v6  ;;  %v1050_v41 = vrot.slane %v1049_v34, 4  ;;  %v854_v44 = vld [vmem:[#allocation2 + $0x54] sm:$0x8]  ;;  %2453 = vmatpush.bf16.msra.mxu3 %v5660_v37  ;;  %v788_v51 = vshll.u32 %v705_v39, 16  ;;  %v855_v60 = vld [vmem:[#allocation2 + $0x58] sm:$0xf]  ;;  %v4726_v63 = vor.u32 %v6407_v33, %v6405_v32 }
  0x77   : > { %2370 = vmatmul.bf16.vlgmr.msrb.gmra.mxu0 %v4690_v16  ;;  %v5575_v48 = vld [vmem:[#allocation4 + $0x54] sm:$0xf]  ;;  %v1064_v50 = vrot.slane %v1063_v15, 4  ;;  %v915_v52 = vshrl.u32 %v854_v44, 16  ;;  %v773_v59 = vrot.slane %v771_v18, 4  ;;  %v776_v57 = vrot.slane %v774_v43, 5 }
  0x78   : > { %v4719_v55 = vld [vmem:[#allocation4 + $0x74] sm:$0xf0]  ;;  %v1055_v58 = vsel %vm6366_vm8, %v1050_v41, %v1054_v56  ;;  %v1005_v1 = vld [vmem:[#allocation2 + $0x4c] sm:$0x1]  ;;  %v787_v8 = vrot.slane %v785_v45, 4  ;;  %v790_v10 = vrot.slane %v788_v51, 5 }
  0x79   : > { %v4722_v62 = vor.u32 %v5575_v48, %v4719_v55  ;;  %1136 = vst [vmem:[#allocation4 + $0x5c] sm:$0xf] %v1055_v58  ;;  %v704_v2 = vld [vmem:[#allocation2 + $0x4c] sm:$0x1]  ;;  %v1066_v3 = vshll.u32 %v1005_v1, 16  ;;  %v777_v4 = vor.u32 %v776_v57, %v773_v59  ;;  %v4659_v0 = vrot.slane %v915_v52, 11 }
  0x7a   : > { %2317 = vmatmul.bf16.gmra.mxu2 %v4718_v40  ;;  %v780_v5 = vshll.u32 %v704_v2, 16  ;;  %v856_v9 = vld [vmem:[#allocation2 + $0x64] sm:$0x8]  ;;  %v857_v12 = vld [vmem:[#allocation2 + $0x68] sm:$0xf]  ;;  %v920_v14 = vshrl.u32 %v855_v60, 16  ;;  %v791_v23 = vor.u32 %v790_v10, %v787_v8  ;;  %v527_v2 = vpack.c.bf16 %v6393_v42, %v6393_v42 }
  0x7b   : > { %2346 = vmatmul.bf16.gmra.mxu3 %v4722_v62  ;;  %v923_v16 = vshll.u32 %v855_v60, 16  ;;  %v1068_v49 = vrot.slane %v1066_v3, 5  ;;  %v706_v17 = vld [vmem:[#allocation2 + $0x5c] sm:$0x1]  ;;  %v778_v20 = vrot.slane %v777_v4, 4  ;;  %v928_v19 = vshrl.u32 %v856_v9, 16 }
  0x7c   : > { %v782_v21 = vrot.slane %v780_v5, 5  ;;  %v794_v53 = vshll.u32 %v706_v17, 16  ;;  %v922_v24 = vrot.slane %v920_v14, 7  ;;  %v933_v25 = vshrl.u32 %v857_v12, 16  ;;  %v986_v7 = vld [vmem:[#allocation2 + $0x58] sm:$0xf] }
  0x7d   : > { %v5659_v26 = vld [vmem:[#allocation6 + $0x1d0] sm:$0xff]  ;;  %v1069_v54 = vsel %vm6366_vm8, %v1064_v50, %v1068_v49  ;;  %v4660_v28 = vrot.slane %v928_v19, 11  ;;  %v936_v6 = vshll.u32 %v857_v12, 16  ;;  %v987_v29 = vld [vmem:[#allocation2 + $0x68] sm:$0xf]  ;;  %v792_v56 = vrot.slane %v791_v23, 4 }
  0x7e   : > { %v783_v27 = vsel %vm6366_vm8, %v778_v20, %v782_v21  ;;  %994 = vst [vmem:[#allocation4 + $0xa0] sm:$0xf] %v986_v7  ;;  %v796_v11 = vrot.slane %v794_v53, 5  ;;  %v925_v30 = vor.u32 %v923_v16, %v922_v24  ;;  %v935_v13 = vrot.slane %v933_v25, 7  ;;  %2454 = vmatpush.bf16.msra.mxu3 %v5659_v26  ;;  %v5668_v32 = vld [vmem:[#allocation6 + $0x218] sm:$0xff]  ;;  %v5650_v16 = vld [vmem:[#allocation6 + $0x188] sm:$0xff] }
  0x7f   : > { %1137 = vst [vmem:[#allocation4 + $0x80] sm:$0xf] %v1069_v54  ;;  %v300_v33 = vld [vmem:[#allocation2 + $0x6c] sm:$0x1]  ;;  %2482 = vmatpush.bf16.msra.mxu0 %v5668_v32  ;;  %v1006_v38 = vld [vmem:[#allocation2 + $0x58] sm:$0xf]  ;;  %2426 = vmatpush.bf16.msra.mxu2 %v5650_v16 }
  0x80   : > { %838 = vst [vmem:[#allocation4 + $0x98] sm:$0xf] %v783_v27  ;;  %v797_v34 = vsel %vm6366_vm8, %v792_v56, %v796_v11  ;;  %v926_v35 = vsel %vm6307_vm3, %v4659_v0, %v925_v30  ;;  %v938_v36 = vor.u32 %v936_v6, %v935_v13  ;;  %v301_v37 = vsel %vm6333_vm5, 0, %v300_v33  ;;  %v5576_v15 = vld [vmem:[#allocation4 + $0x5c] sm:$0xf]  ;;  %v5658_v23 = vld [vmem:[#allocation6 + $0x1c8] sm:$0xff] }
  0x81   : > { %995 = vst [vmem:[#allocation4 + $0xc4] sm:$0xf] %v987_v29  ;;  %v1007_v39 = vld [vmem:[#allocation2 + $0x5c] sm:$0x1]  ;;  %v1008_v40 = vld [vmem:[#allocation2 + $0x68] sm:$0xf] }
  0x82   : > { %839 = vst [vmem:[#allocation4 + $0xbc] sm:$0xf] %v797_v34  ;;  %v939_v41 = vsel %vm6307_vm3, %v4660_v28, %v938_v36  ;;  %v1071_v18 = vshrl.u32 %v1006_v38, 16  ;;  %v1074_v43 = vshll.u32 %v1006_v38, 16  ;;  %v1080_v44 = vshll.u32 %v1007_v39, 16  ;;  %2455 = vmatpush.bf16.msra.mxu3 %v5658_v23 }
  0x83   : > { %978 = vst [vmem:[#allocation4 + $0x9c] sm:$0xf] %v926_v35  ;;  %v1085_v47 = vshrl.u32 %v1008_v40, 16  ;;  %v1088_v48 = vshll.u32 %v1008_v40, 16  ;;  %v306_v50 = vld [vmem:[#allocation2 + $0x7c] sm:$0x1] }
  0x84   : > { %979 = vst [vmem:[#allocation4 + $0xc0] sm:$0xf] %v939_v41  ;;  %v1073_v45 = vrot.slane %v1071_v18, 4  ;;  %v1076_v51 = vrot.slane %v1074_v43, 5  ;;  %v1082_v55 = vrot.slane %v1080_v44, 5  ;;  %v307_v57 = vsel %vm6333_vm5, 0, %v306_v50 }
  0x85   : > { %302 = vst [vmem:[#allocation2 + $0x6c] sm:$0x1] %v301_v37  ;;  %v1087_v58 = vrot.slane %v1085_v47, 4  ;;  %v1090_v59 = vrot.slane %v1088_v48, 5  ;;  %v707_v1 = vld [vmem:[#allocation2 + $0x68] sm:$0xf] }
  0x86   : > { %v4727_v52 = vld [vmem:[#allocation4 + $0x7c] sm:$0xf0]  ;;  %308 = vst [vmem:[#allocation2 + $0x7c] sm:$0x1] %v307_v57  ;;  %v709_v4 = vld [vmem:[#allocation2 + $0x78] sm:$0xf] }
  0x87   : > { %2375 = vmatmul.bf16.gmra.mxu0 %v4726_v63  ;;  %v4730_v60 = vor.u32 %v5576_v15, %v4727_v52  ;;  %v4753_v62 = vld [vmem:[#allocation4 + $0x98] sm:$0xf]  ;;  %v1077_v63 = vor.u32 %v1076_v51, %v1073_v45  ;;  %v1091_v3 = vor.u32 %v1090_v59, %v1087_v58  ;;  %v799_v5 = vshrl.u32 %v707_v1, 16  ;;  %v4761_v61 = vld [vmem:[#allocation4 + $0xa0] sm:$0xf]  ;;  %v5667_v47 = vld [vmem:[#allocation6 + $0x210] sm:$0xff] }
  0x88   : > { %v802_v8 = vshll.u32 %v707_v1, 16  ;;  %v5589_v10 = vld [vmem:[#allocation4 + $0xc0] sm:$0xf0]  ;;  %v813_v0 = vshrl.u32 %v709_v4, 16  ;;  %v816_v14 = vshll.u32 %v709_v4, 16  ;;  %2483 = vmatpush.bf16.msra.mxu0 %v5667_v47 }
  0x89   : > { %2404 = vmatmul.bf16.gmra.mxu1 %v4730_v60  ;;  %v5588_v9 = vld [vmem:[#allocation4 + $0xb8] sm:$0xf0]  ;;  %v1078_v12 = vrot.slane %v1077_v63, 4  ;;  %v1092_v20 = vrot.slane %v1091_v3, 4  ;;  %v801_v21 = vrot.slane %v799_v5, 4  ;;  %v4762_v30 = vor.u32 %v5589_v10, %v4761_v61  ;;  %v5649_v48 = vld [vmem:[#allocation6 + $0x180] sm:$0xff] }
  0x8a   : > { %v4754_v49 = vor.u32 %v5588_v9, %v4753_v62  ;;  %v5584_v17 = vld [vmem:[#allocation4 + $0x9c] sm:$0xf]  ;;  %v804_v19 = vrot.slane %v802_v8, 5  ;;  %v815_v24 = vrot.slane %v813_v0, 4  ;;  %v818_v25 = vrot.slane %v816_v14, 5  ;;  %v5657_v50 = vld [vmem:[#allocation6 + $0x1c0] sm:$0xff]  ;;  %2427 = vmatpush.bf16.msra.mxu2 %v5649_v48 }
  0x8b   : > { %v4755_v53 = vld [vmem:[#allocation4 + $0xbc] sm:$0xf0]  ;;  %v1083_v42 = vsel %vm6366_vm8, %v1078_v12, %v1082_v55  ;;  %537 = vst.msk [vmem:[#allocation2 + $0x88] sm:$0xf] %vm529_vm0, %v527_v2  ;;  %v858_v56 = vld [vmem:[#allocation2 + $0x74] sm:$0x8]  ;;  %2456 = vmatpush.bf16.msra.mxu3 %v5657_v50 }
  0x8c   : > { %2322 = vmatmul.bf16.gmra.mxu2 %v4754_v49  ;;  %v4758_v7 = vor.u32 %v5584_v17, %v4755_v53  ;;  %v1009_v26 = vld [vmem:[#allocation2 + $0x6c] sm:$0x1]  ;;  %1138 = vst [vmem:[#allocation4 + $0xa4] sm:$0xf] %v1083_v42  ;;  %v805_v27 = vor.u32 %v804_v19, %v801_v21  ;;  %v819_v29 = vor.u32 %v818_v25, %v815_v24  ;;  %v859_v11 = vld [vmem:[#allocation2 + $0x78] sm:$0xf] }
  0x8d   : > { %v708_v54 = vld [vmem:[#allocation2 + $0x6c] sm:$0x1]  ;;  %v1094_v28 = vshll.u32 %v1009_v26, 16  ;;  %v710_v13 = vld [vmem:[#allocation2 + $0x7c] sm:$0x1]  ;;  %v941_v34 = vshrl.u32 %v858_v56, 16 }
  0x8e   : > { %v808_v6 = vshll.u32 %v708_v54, 16  ;;  %2351 = vmatmul.bf16.gmra.mxu3 %v4758_v7  ;;  %v806_v32 = vrot.slane %v805_v27, 4  ;;  %v860_v33 = vld [vmem:[#allocation2 + $0x84] sm:$0x8]  ;;  %v820_v37 = vrot.slane %v819_v29, 4  ;;  %v822_v38 = vshll.u32 %v710_v13, 16 }
  0x8f   : > { %v1096_v35 = vrot.slane %v1094_v28, 5  ;;  %v988_v15 = vld [vmem:[#allocation2 + $0x78] sm:$0xf]  ;;  %v946_v39 = vshrl.u32 %v859_v11, 16  ;;  %v949_v40 = vshll.u32 %v859_v11, 16  ;;  %v954_v44 = vshrl.u32 %v860_v33, 16 }
  0x90   : > { %v810_v36 = vrot.slane %v808_v6, 5  ;;  %996 = vst [vmem:[#allocation4 + $0xe8] sm:$0xf] %v988_v15  ;;  %v824_v43 = vrot.slane %v822_v38, 5  ;;  %v4661_v51 = vrot.slane %v941_v34, 11  ;;  %v5666_v62 = vld [vmem:[#allocation6 + $0x208] sm:$0xff] }
  0x91   : > { %v1097_v41 = vsel %vm6366_vm8, %v1092_v20, %v1096_v35  ;;  %v948_v52 = vrot.slane %v946_v39, 7  ;;  %v4662_v1 = vrot.slane %v954_v44, 11  ;;  %v312_v3 = vld [vmem:[#allocation2 + $0x8c] sm:$0x1]  ;;  %v1010_v8 = vld [vmem:[#allocation2 + $0x78] sm:$0xf]  ;;  %2484 = vmatpush.bf16.msra.mxu0 %v5666_v62 }
  0x92   : > { %v811_v18 = vsel %vm6366_vm8, %v806_v32, %v810_v36  ;;  %1139 = vst [vmem:[#allocation4 + $0xc8] sm:$0xf] %v1097_v41  ;;  %v861_v45 = vld [vmem:[#allocation2 + $0x88] sm:$0xf]  ;;  %v825_v55 = vsel %vm6366_vm8, %v820_v37, %v824_v43  ;;  %v313_v5 = vsel %vm6333_vm5, 0, %v312_v3  ;;  %v5665_v12 = vld [vmem:[#allocation6 + $0x200] sm:$0xff] }
  0x93   : > { %840 = vst [vmem:[#allocation4 + $0xe0] sm:$0xf] %v811_v18  ;;  %v959_v58 = vshrl.u32 %v861_v45, 16  ;;  %v962_v59 = vshll.u32 %v861_v45, 16  ;;  %v951_v57 = vor.u32 %v949_v40, %v948_v52  ;;  %v989_v60 = vld [vmem:[#allocation2 + $0x88] sm:$0xf] }
  0x94   : > { %841 = vst [vmem:[#allocation4 + $0x104] sm:$0xf] %v825_v55  ;;  %v5585_v63 = vld [vmem:[#allocation4 + $0xa4] sm:$0xf]  ;;  %v1011_v9 = vld [vmem:[#allocation2 + $0x7c] sm:$0x1] }
  0x95   : > { %v961_v2 = vrot.slane %v959_v58, 7  ;;  %997 = vst [vmem:[#allocation4 + $0x10c] sm:$0xf] %v989_v60  ;;  %v952_v4 = vsel %vm6307_vm3, %v4661_v51, %v951_v57  ;;  %v1012_v10 = vld [vmem:[#allocation2 + $0x88] sm:$0xf]  ;;  %v1099_v14 = vshrl.u32 %v1010_v8, 16  ;;  %2485 = vmatpush.bf16.msra.mxu0 %v5665_v12 }
  0x96   : > { %980 = vst [vmem:[#allocation4 + $0xe4] sm:$0xf] %v952_v4  ;;  %v1102_v16 = vshll.u32 %v1010_v8, 16  ;;  %v1108_v49 = vshll.u32 %v1011_v9, 16  ;;  %v1113_v17 = vshrl.u32 %v1012_v10, 16  ;;  %v1116_v19 = vshll.u32 %v1012_v10, 16 }
  0x97   : > { %2380 = vmatmul.bf16.gmra.mxu0 %v4762_v30  ;;  %v964_v61 = vor.u32 %v962_v59, %v961_v2  ;;  %v4797_v0 = vld [vmem:[#allocation4 + $0xe8] sm:$0xf]  ;;  %314 = vst [vmem:[#allocation2 + $0x8c] sm:$0x1] %v313_v5  ;;  %v1146_v23 = vld [vmem:[#allocation2 + $0x24] sm:$0x8] }
  0x98   : > { %v1101_v24 = vrot.slane %v1099_v14, 4  ;;  %v1104_v25 = vrot.slane %v1102_v16, 5  ;;  %v1110_v26 = vrot.slane %v1108_v49, 5  ;;  %v1115_v54 = vrot.slane %v1113_v17, 4  ;;  %v1147_v11 = vld [vmem:[#allocation2 + $0x28] sm:$0xf] }
  0x99   : > { %v4763_v20 = vld [vmem:[#allocation4 + $0xc4] sm:$0xf0]  ;;  %v965_v21 = vsel %vm6307_vm3, %v4662_v1, %v964_v61  ;;  %v1118_v27 = vrot.slane %v1116_v19, 5  ;;  %v1163_v28 = vshrl.u32 %v1146_v23, 16  ;;  %v1148_v30 = vld [vmem:[#allocation2 + $0x34] sm:$0x8] }
  0x9a   : > { %v4766_v53 = vor.u32 %v5585_v63, %v4763_v20  ;;  %v4789_v42 = vld [vmem:[#allocation4 + $0xe0] sm:$0xf]  ;;  %981 = vst [vmem:[#allocation4 + $0x108] sm:$0xf] %v965_v21  ;;  %v1105_v56 = vor.u32 %v1104_v25, %v1101_v24  ;;  %v1149_v33 = vld [vmem:[#allocation2 + $0x38] sm:$0xf] }
  0x9b   : > { %v5597_v7 = vld [vmem:[#allocation4 + $0x100] sm:$0xf0]  ;;  %v1119_v32 = vor.u32 %v1118_v27, %v1115_v54  ;;  %v1168_v34 = vshrl.u32 %v1147_v11, 16  ;;  %v1282_v35 = vld [vmem:[#allocation2 + $0x28] sm:$0xf]  ;;  %v1171_v38 = vshll.u32 %v1147_v11, 16 }
  0x9c   : > { %2409 = vmatmul.bf16.gmra.mxu1 %v4766_v53  ;;  %v4790_v6 = vor.u32 %v5597_v7, %v4789_v42  ;;  %v5598_v29 = vld [vmem:[#allocation4 + $0x108] sm:$0xf0]  ;;  %v1106_v37 = vrot.slane %v1105_v56, 4  ;;  %v1176_v15 = vshrl.u32 %v1148_v30, 16  ;;  %v1181_v39 = vshrl.u32 %v1149_v33, 16 }
  0x9d   : > { %v4798_v13 = vor.u32 %v5598_v29, %v4797_v0  ;;  %v5593_v36 = vld [vmem:[#allocation4 + $0xe4] sm:$0xf]  ;;  %v1120_v41 = vrot.slane %v1119_v32, 4  ;;  %v4663_v18 = vrot.slane %v1163_v28, 11  ;;  %v1170_v43 = vrot.slane %v1168_v34, 7 }
  0x9e   : > { %2327 = vmatmul.bf16.gmra.mxu2 %v4790_v6  ;;  %v1013_v40 = vld [vmem:[#allocation2 + $0x8c] sm:$0x1]  ;;  %v1184_v44 = vshll.u32 %v1149_v33, 16  ;;  %v1111_v47 = vsel %vm6366_vm8, %v1106_v37, %v1110_v26  ;;  %v4664_v50 = vrot.slane %v1176_v15, 11  ;;  %v1183_v45 = vrot.slane %v1181_v39, 7 }
  0x9f   : > { %v1122_v48 = vshll.u32 %v1013_v40, 16  ;;  %v1283_v51 = vld [vmem:[#allocation2 + $0x38] sm:$0xf]  ;;  %1140 = vst [vmem:[#allocation4 + $0xec] sm:$0xf] %v1111_v47  ;;  %v1173_v55 = vor.u32 %v1171_v38, %v1170_v43 }
  0xa0   : > { %v1298_v58 = vld [vmem:[#allocation2 + $0x28] sm:$0xf]  ;;  %v1186_v60 = vor.u32 %v1184_v44, %v1183_v45  ;;  %1290 = vst [vmem:[#allocation4 + $0x1c] sm:$0xf] %v1282_v35  ;;  %v1299_v62 = vld [vmem:[#allocation2 + $0x2c] sm:$0x1] }
  0xa1   : > { %v4791_v52 = vld [vmem:[#allocation4 + $0x104] sm:$0xf0]  ;;  %v1124_v57 = vrot.slane %v1122_v48, 5  ;;  %v1315_v63 = vshrl.u32 %v1298_v58, 16  ;;  %v1174_v1 = vsel %vm6307_vm3, %v4663_v18, %v1173_v55  ;;  %1291 = vst [vmem:[#allocation4 + $0x40] sm:$0xf] %v1283_v51 }
  0xa2   : > { %v4794_v59 = vor.u32 %v5593_v36, %v4791_v52  ;;  %v1300_v2 = vld [vmem:[#allocation2 + $0x38] sm:$0xf]  ;;  %v1301_v3 = vld [vmem:[#allocation2 + $0x3c] sm:$0x1]  ;;  %v1187_v5 = vsel %vm6307_vm3, %v4664_v50, %v1186_v60  ;;  %1274 = vst [vmem:[#allocation4 + $0x18] sm:$0xf] %v1174_v1 }
  0xa3   : > { %v1125_v4 = vsel %vm6366_vm8, %v1120_v41, %v1124_v57  ;;  %v1317_v8 = vrot.slane %v1315_v63, 4  ;;  %v1318_v9 = vshll.u32 %v1298_v58, 16  ;;  %v1150_v61 = vld [vmem:[#allocation2 + $0x44] sm:$0x8]  ;;  %v1324_v10 = vshll.u32 %v1299_v62, 16 }
  0xa4   : > { %2356 = vmatmul.bf16.gmra.mxu3 %v4794_v59  ;;  %1141 = vst [vmem:[#allocation4 + $0x110] sm:$0xf] %v1125_v4  ;;  %v1329_v12 = vshrl.u32 %v1300_v2, 16  ;;  %v1332_v0 = vshll.u32 %v1300_v2, 16  ;;  %v1338_v14 = vshll.u32 %v1301_v3, 16  ;;  %v1189_v17 = vshrl.u32 %v1150_v61, 16 }
  0xa5   : > { %1275 = vst [vmem:[#allocation4 + $0x3c] sm:$0xf] %v1187_v5  ;;  %v1320_v16 = vrot.slane %v1318_v9, 5  ;;  %v1151_v49 = vld [vmem:[#allocation2 + $0x48] sm:$0xf]  ;;  %v1326_v53 = vrot.slane %v1324_v10, 5 }
  0xa6   : > { %v1331_v20 = vrot.slane %v1329_v12, 4  ;;  %v1334_v21 = vrot.slane %v1332_v0, 5  ;;  %v1152_v19 = vld [vmem:[#allocation2 + $0x54] sm:$0x8]  ;;  %v1340_v42 = vrot.slane %v1338_v14, 5  ;;  %v1194_v25 = vshrl.u32 %v1151_v49, 16 }
  0xa7   : > { %2385 = vmatmul.bf16.gmra.mxu0 %v4798_v13  ;;  %v1321_v23 = vor.u32 %v1320_v16, %v1317_v8  ;;  %v1153_v24 = vld [vmem:[#allocation2 + $0x58] sm:$0xf]  ;;  %v5594_v7 = vld [vmem:[#allocation4 + $0xec] sm:$0xf]  ;;  %v1197_v54 = vshll.u32 %v1151_v49, 16  ;;  %v1202_v27 = vshrl.u32 %v1152_v19, 16 }
  0xa8   : > { %v1335_v26 = vor.u32 %v1334_v21, %v1331_v20  ;;  %v1207_v28 = vshrl.u32 %v1153_v24, 16  ;;  %v5568_v6 = vld [vmem:[#allocation4 + $0x1c] sm:$0xf]  ;;  %v4665_v56 = vrot.slane %v1189_v17, 11  ;;  %v1196_v11 = vrot.slane %v1194_v25, 7 }
  0xa9   : > { %v1322_v29 = vrot.slane %v1321_v23, 4  ;;  %v1210_v30 = vshll.u32 %v1153_v24, 16  ;;  %v4697_v13 = vld [vmem:[#allocation4 + $0x18] sm:$0xf]  ;;  %v4666_v33 = vrot.slane %v1202_v27, 11 }
  0xaa   : > { %v1336_v32 = vrot.slane %v1335_v26, 4  ;;  %v1209_v34 = vrot.slane %v1207_v28, 7  ;;  %v4699_v36 = vld [vmem:[#allocation4 + $0x3c] sm:$0xf0]  ;;  %v1199_v38 = vor.u32 %v1197_v54, %v1196_v11  ;;  %v1284_v15 = vld [vmem:[#allocation2 + $0x48] sm:$0xf] }
  0xab   : > { %v4799_v35 = vld [vmem:[#allocation4 + $0x10c] sm:$0xf0]  ;;  %v1327_v37 = vsel %vm6366_vm8, %v1322_v29, %v1326_v53  ;;  %v1285_v43 = vld [vmem:[#allocation2 + $0x58] sm:$0xf]  ;;  %v1302_v44 = vld [vmem:[#allocation2 + $0x48] sm:$0xf]  ;;  %v4702_v51 = vor.u32 %v5568_v6, %v4699_v36 }
  0xac   : > { %v4802_v39 = vor.u32 %v5594_v7, %v4799_v35  ;;  %v5572_v40 = vld [vmem:[#allocation4 + $0x38] sm:$0xf0]  ;;  %v1341_v41 = vsel %vm6366_vm8, %v1336_v32, %v1340_v42  ;;  %1434 = vst [vmem:[#allocation4 + $0x20] sm:$0xf] %v1327_v37  ;;  %v1212_v18 = vor.u32 %v1210_v30, %v1209_v34  ;;  %v1200_v48 = vsel %vm6307_vm3, %v4665_v56, %v1199_v38  ;;  %v1303_v50 = vld [vmem:[#allocation2 + $0x4c] sm:$0x1] }
  0xad   : > { %v4698_v47 = vor.u32 %v5572_v40, %v4697_v13  ;;  %1435 = vst [vmem:[#allocation4 + $0x44] sm:$0xf] %v1341_v41  ;;  %v1304_v45 = vld [vmem:[#allocation2 + $0x58] sm:$0xf]  ;;  %v1305_v55 = vld [vmem:[#allocation2 + $0x5c] sm:$0x1] }
  0xae   : > { %2414 = vmatmul.bf16.gmra.mxu1 %v4802_v39  ;;  %v1213_v52 = vsel %vm6307_vm3, %v4666_v33, %v1212_v18  ;;  %1276 = vst [vmem:[#allocation4 + $0x60] sm:$0xf] %v1200_v48  ;;  %v1343_v58 = vshrl.u32 %v1302_v44, 16  ;;  %v1346_v59 = vshll.u32 %v1302_v44, 16  ;;  %v1352_v57 = vshll.u32 %v1303_v50, 16 }
  0xaf   : > { %2428 = vmatmul.bf16.vlgmr.msra.gmra.mxu2 %v4698_v47  ;;  %1277 = vst [vmem:[#allocation4 + $0x84] sm:$0xf] %v1213_v52  ;;  %v1357_v60 = vshrl.u32 %v1304_v45, 16  ;;  %v1360_v62 = vshll.u32 %v1304_v45, 16  ;;  %v1366_v63 = vshll.u32 %v1305_v55, 16 }
  0xb0   : > { %1292 = vst [vmem:[#allocation4 + $0x64] sm:$0xf] %v1284_v15  ;;  %v1345_v1 = vrot.slane %v1343_v58, 4  ;;  %v1348_v2 = vrot.slane %v1346_v59, 5  ;;  %v1354_v3 = vrot.slane %v1352_v57, 5 }
  0xb1   : > { %1293 = vst [vmem:[#allocation4 + $0x88] sm:$0xf] %v1285_v43  ;;  %v1359_v4 = vrot.slane %v1357_v60, 4  ;;  %v1362_v5 = vrot.slane %v1360_v62, 5  ;;  %v1368_v8 = vrot.slane %v1366_v63, 5 }
  0xb2   : > { %v1349_v9 = vor.u32 %v1348_v2, %v1345_v1  ;;  %v1154_v61 = vld [vmem:[#allocation2 + $0x64] sm:$0x8]  ;;  %v1155_v10 = vld [vmem:[#allocation2 + $0x68] sm:$0xf]  ;;  %v1156_v12 = vld [vmem:[#allocation2 + $0x74] sm:$0x8] }
  0xb3   : > { %v4705_v0 = vld [vmem:[#allocation4 + $0x20] sm:$0xf]  ;;  %v1363_v14 = vor.u32 %v1362_v5, %v1359_v4  ;;  %v1157_v16 = vld [vmem:[#allocation2 + $0x78] sm:$0xf]  ;;  %v1215_v49 = vshrl.u32 %v1154_v61, 16  ;;  %v1220_v17 = vshrl.u32 %v1155_v10, 16 }
  0xb4   : > { %2457 = vmatmul.bf16.vlgmr.msra.gmra.mxu3 %v4702_v51  ;;  %v5573_v20 = vld [vmem:[#allocation4 + $0x40] sm:$0xf0]  ;;  %v1350_v21 = vrot.slane %v1349_v9, 4  ;;  %v1223_v19 = vshll.u32 %v1155_v10, 16  ;;  %v1228_v23 = vshrl.u32 %v1156_v12, 16  ;;  %v1233_v53 = vshrl.u32 %v1157_v16, 16 }
  0xb5   : > { %v4706_v42 = vor.u32 %v5573_v20, %v4705_v0  ;;  %v1364_v24 = vrot.slane %v1363_v14, 4  ;;  %v4667_v25 = vrot.slane %v1215_v49, 11  ;;  %v1222_v7 = vrot.slane %v1220_v17, 7  ;;  %v4733_v26 = vld [vmem:[#allocation4 + $0x60] sm:$0xf] }
  0xb6   : > { %v1355_v54 = vsel %vm6366_vm8, %v1350_v21, %v1354_v3  ;;  %v4668_v27 = vrot.slane %v1228_v23, 11  ;;  %v1235_v28 = vrot.slane %v1233_v53, 7  ;;  %v1236_v6 = vshll.u32 %v1157_v16, 16  ;;  %v5581_v29 = vld [vmem:[#allocation4 + $0x80] sm:$0xf0] }
  0xb7   : > { %2486 = vmatmul.bf16.vlgmr.msra.gmra.mxu0 %v4706_v42  ;;  %v1369_v56 = vsel %vm6366_vm8, %v1364_v24, %v1368_v8  ;;  %1436 = vst [vmem:[#allocation4 + $0x68] sm:$0xf] %v1355_v54  ;;  %v1225_v11 = vor.u32 %v1223_v19, %v1222_v7  ;;  %v1286_v30 = vld [vmem:[#allocation2 + $0x68] sm:$0xf]  ;;  %v1287_v32 = vld [vmem:[#allocation2 + $0x78] sm:$0xf]  ;;  %v4734_v36 = vor.u32 %v5581_v29, %v4733_v26 }
  0xb8   : > { %1437 = vst [vmem:[#allocation4 + $0x8c] sm:$0xf] %v1369_v56  ;;  %v1238_v13 = vor.u32 %v1236_v6, %v1235_v28  ;;  %v1306_v34 = vld [vmem:[#allocation2 + $0x68] sm:$0xf]  ;;  %v1307_v35 = vld [vmem:[#allocation2 + $0x6c] sm:$0x1] }
  0xb9   : > { %v1226_v33 = vsel %vm6307_vm3, %v4667_v25, %v1225_v11  ;;  %1294 = vst [vmem:[#allocation4 + $0xac] sm:$0xf] %v1286_v30  ;;  %v5577_v37 = vld [vmem:[#allocation4 + $0x64] sm:$0xf]  ;;  %v4735_v38 = vld [vmem:[#allocation4 + $0x84] sm:$0xf0] }
  0xba   : > { %v1239_v15 = vsel %vm6307_vm3, %v4668_v27, %v1238_v13  ;;  %1278 = vst [vmem:[#allocation4 + $0xa8] sm:$0xf] %v1226_v33  ;;  %v1308_v39 = vld [vmem:[#allocation2 + $0x78] sm:$0xf]  ;;  %v1309_v40 = vld [vmem:[#allocation2 + $0x7c] sm:$0x1]  ;;  %v4738_v62 = vor.u32 %v5577_v37, %v4735_v38 }
  0xbb   : > { %1279 = vst [vmem:[#allocation4 + $0xcc] sm:$0xf] %v1239_v15  ;;  %v1371_v41 = vshrl.u32 %v1306_v34, 16  ;;  %v1374_v18 = vshll.u32 %v1306_v34, 16  ;;  %v1380_v43 = vshll.u32 %v1307_v35, 16  ;;  %v1385_v44 = vshrl.u32 %v1308_v39, 16 }
  0xbc   : > { %1295 = vst [vmem:[#allocation4 + $0xd0] sm:$0xf] %v1287_v32  ;;  %v1388_v47 = vshll.u32 %v1308_v39, 16  ;;  %v1394_v48 = vshll.u32 %v1309_v40, 16  ;;  %v1158_v50 = vld [vmem:[#allocation2 + $0x84] sm:$0x8] }
  0xbd   : > { %v1373_v45 = vrot.slane %v1371_v41, 4  ;;  %v1376_v51 = vrot.slane %v1374_v18, 5  ;;  %v1387_v52 = vrot.slane %v1385_v44, 4  ;;  %v1159_v55 = vld [vmem:[#allocation2 + $0x88] sm:$0xf]  ;;  %v1382_v59 = vrot.slane %v1380_v43, 5 }
  0xbe   : > { %v6473_v58 = vld [vmem:[%s7112_s2] ss:$0 sm:$0xff]  ;;  %v1390_v57 = vrot.slane %v1388_v47, 5  ;;  %v1160_v60 = vld [vmem:[#allocation2 + $0x94] sm:$0x8]  ;;  %v1241_v3 = vshrl.u32 %v1158_v50, 16 }
  0xbf   : > { %2433 = vmatmul.bf16.gmra.mxu2 %v4734_v36  ;;  %v4741_v63 = vld [vmem:[#allocation4 + $0x68] sm:$0xf]  ;;  %v1377_v1 = vor.u32 %v1376_v51, %v1373_v45  ;;  %v1161_v2 = vld [vmem:[#allocation2 + $0x98] sm:$0xf]  ;;  %v1246_v4 = vshrl.u32 %v1159_v55, 16  ;;  %v1396_v9 = vrot.slane %v1394_v48, 5 }
  0xc0   : > { %v5582_v5 = vld [vmem:[#allocation4 + $0x88] sm:$0xf0]  ;;  %v1391_v8 = vor.u32 %v1390_v57, %v1387_v52  ;;  %v1249_v61 = vshll.u32 %v1159_v55, 16  ;;  %v1254_v10 = vshrl.u32 %v1160_v60, 16  ;;  %v4669_v0 = vrot.slane %v1241_v3, 11 }
  0xc1   : > { %v1378_v12 = vrot.slane %v1377_v1, 4  ;;  %v1248_v14 = vrot.slane %v1246_v4, 7  ;;  %v1259_v16 = vshrl.u32 %v1161_v2, 16  ;;  %v1262_v20 = vshll.u32 %v1161_v2, 16  ;;  %v1288_v42 = vld [vmem:[#allocation2 + $0x88] sm:$0xf] }
  0xc2   : > { %v1392_v49 = vrot.slane %v1391_v8, 4  ;;  %v4742_v21 = vor.u32 %v5582_v5, %v4741_v63  ;;  %v1289_v24 = vld [vmem:[#allocation2 + $0x98] sm:$0xf]  ;;  %v318_v25 = vld [vmem:[#allocation2 + $0x9c] sm:$0x1]  ;;  %v4670_v26 = vrot.slane %v1254_v10, 11 }
  0xc3   : > { %v1383_v19 = vsel %vm6366_vm8, %v1378_v12, %v1382_v59  ;;  %v1251_v53 = vor.u32 %v1249_v61, %v1248_v14  ;;  %v1261_v54 = vrot.slane %v1259_v16, 7  ;;  %v1310_v27 = vld [vmem:[#allocation2 + $0x88] sm:$0xf]  ;;  %v1311_v29 = vld [vmem:[#allocation2 + $0x8c] sm:$0x1]  ;;  %v319_v34 = vsel %vm6333_vm5, 0, %v318_v25 }
  0xc4   : > { %2462 = vmatmul.bf16.gmra.mxu3 %v4738_v62  ;;  %v1397_v7 = vsel %vm6366_vm8, %v1392_v49, %v1396_v9  ;;  %1438 = vst [vmem:[#allocation4 + $0xb0] sm:$0xf] %v1383_v19  ;;  %v1312_v56 = vld [vmem:[#allocation2 + $0x98] sm:$0xf]  ;;  %v4769_v11 = vld [vmem:[#allocation4 + $0xa8] sm:$0xf] }
  0xc5   : > { %1439 = vst [vmem:[#allocation4 + $0xd4] sm:$0xf] %v1397_v7  ;;  %v2294_v28 = vpop.f32.mrf.mxu3  ;;  %v1252_v6 = vsel %vm6307_vm3, %v4669_v0, %v1251_v53  ;;  %v1264_v13 = vor.u32 %v1262_v20, %v1261_v54  ;;  %v1399_v32 = vshrl.u32 %v1310_v27, 16  ;;  %v1402_v33 = vshll.u32 %v1310_v27, 16  ;;  %v5590_v38 = vld [vmem:[#allocation4 + $0xc8] sm:$0xf0] }
  0xc6   : > { %1280 = vst [vmem:[#allocation4 + $0xf0] sm:$0xf] %v1252_v6  ;;  %v1408_v35 = vshll.u32 %v1311_v29, 16  ;;  %v1413_v36 = vshrl.u32 %v1312_v56, 16  ;;  %v1416_v37 = vshll.u32 %v1312_v56, 16  ;;  %v4770_v47 = vor.u32 %v5590_v38, %v4769_v11  ;;  %v5716_v56 = vld [vmem:[#allocation9 + $0x38] sm:$0xff] }
  0xc7   : > { %2491 = vmatmul.bf16.gmra.mxu0 %v4742_v21  ;;  %1296 = vst [vmem:[#allocation4 + $0xf4] sm:$0xf] %v1288_v42  ;;  %v1265_v15 = vsel %vm6307_vm3, %v4670_v26, %v1264_v13  ;;  %v1401_v39 = vrot.slane %v1399_v32, 4  ;;  %v1404_v40 = vrot.slane %v1402_v33, 5  ;;  %v5586_v48 = vld [vmem:[#allocation4 + $0xac] sm:$0xf]  ;;  %4229 = vmatpush.bf16.msra.mxu1 %v5716_v56 }
  0xc8   : > { %1297 = vst [vmem:[#allocation4 + $0x118] sm:$0xf] %v1289_v24  ;;  %v1410_v18 = vrot.slane %v1408_v35, 5  ;;  %v1415_v43 = vrot.slane %v1413_v36, 4  ;;  %v1418_v44 = vrot.slane %v1416_v37, 5  ;;  %v5715_v33 = vld [vmem:[#allocation9 + $0x30] sm:$0xff] }
  0xc9   : > { %1281 = vst [vmem:[#allocation4 + $0x114] sm:$0xf] %v1265_v15  ;;  %v1405_v41 = vor.u32 %v1404_v40, %v1401_v39  ;;  %v4771_v50 = vld [vmem:[#allocation4 + $0xcc] sm:$0xf0]  ;;  %v5714_v38 = vld [vmem:[#allocation9 + $0x28] sm:$0xff] }
  0xca   : > { %v2265_v17 = vpop.f32.mrf.mxu2  ;;  %320 = vst [vmem:[#allocation2 + $0x9c] sm:$0x1] %v319_v34  ;;  %v1419_v55 = vor.u32 %v1418_v44, %v1415_v43  ;;  %v4774_v57 = vor.u32 %v5586_v48, %v4771_v50  ;;  %v5724_v48 = vld [vmem:[#allocation9 + $0x78] sm:$0xff]  ;;  %v343_v56 = vld [vmem:[#allocation3 + $0x24] sm:$0x8] }
  0xcb   : > { %v2266_v23 = vadd.f32 %v6473_v58, %v2265_v17  ;;  %v1406_v45 = vrot.slane %v1405_v41, 4  ;;  %v4777_v62 = vld [vmem:[#allocation4 + $0xb0] sm:$0xf]  ;;  %4230 = vmatpush.bf16.msra.mxu1 %v5715_v33  ;;  %4258 = vmatpush.bf16.msrb.mxu2 %v5724_v48  ;;  %v344_v33 = vsel %vm6552_vm11, 0, %v343_v56 }
  0xcc   : > { %v5591_v63 = vld [vmem:[#allocation4 + $0xd0] sm:$0xf0]  ;;  %v1420_v2 = vrot.slane %v1419_v55, 4  ;;  %345 = vst [vmem:[#allocation3 + $0x24] sm:$0x8] %v344_v33 }
  0xcd   : > { %v6482_v30 = vadd.f32 %v2294_v28, %v2266_v23  ;;  %v6488_v51 = vpop.f32.mrf.mxu3  ;;  %v1411_v52 = vsel %vm6366_vm8, %v1406_v45, %v1410_v18  ;;  %v4778_v4 = vor.u32 %v5591_v63, %v4777_v62  ;;  %v4805_v10 = vld [vmem:[#allocation4 + $0xf0] sm:$0xf]  ;;  %v5722_v62 = vld [vmem:[#allocation9 + $0x68] sm:$0xff] }
  0xce   : > { %1440 = vst [vmem:[#allocation4 + $0xf8] sm:$0xf] %v1411_v52  ;;  %v5595_v49 = vld [vmem:[#allocation4 + $0xf4] sm:$0xf]  ;;  %v2284_v34 = vpop.f32.mrf.mxu1 }
  0xcf   : > { %2438 = vmatmul.bf16.gmra.mxu2 %v4770_v47  ;;  %v4807_v17 = vld [vmem:[#allocation4 + $0x114] sm:$0xf0]  ;;  %4231 = vmatpush.bf16.msra.mxu1 %v5714_v38  ;;  %v5713_v47 = vld [vmem:[#allocation9 + $0x20] sm:$0xff]  ;;  %v5723_v55 = vld [vmem:[#allocation9 + $0x70] sm:$0xff] }
  0xd0   : > { %v5599_v12 = vld [vmem:[#allocation4 + $0x110] sm:$0xf0]  ;;  %v4810_v19 = vor.u32 %v5595_v49, %v4807_v17  ;;  %4259 = vmatpush.bf16.msrb.mxu2 %v5723_v55  ;;  %v5718_v55 = vld [vmem:[#allocation9 + $0x48] sm:$0xff] }
  0xd1   : > { %v1313_v1 = vld [vmem:[#allocation2 + $0x9c] sm:$0x1]  ;;  %v4806_v16 = vor.u32 %v5599_v12, %v4805_v10  ;;  %v5731_v12 = vld [vmem:[#allocation9 + $0xb0] sm:$0xff] }
  0xd2   : > { %v6494_v60 = vpop.f32.mrf.mxu2  ;;  %v1422_v3 = vshll.u32 %v1313_v1, 16 }
  0xd3   : > { %4232 = vmatpush.bf16.msra.mxu1 %v5713_v47  ;;  %v5738_v47 = vld [vmem:[#allocation9 + $0xe8] sm:$0xff] }
  0xd4   : > { %v6492_v59 = vpop.f32.mrf.mxu0  ;;  %2467 = vmatmul.bf16.gmra.mxu3 %v4774_v57  ;;  %v1424_v5 = vrot.slane %v1422_v3, 5  ;;  %4260 = vmatpush.bf16.msrb.mxu2 %v5722_v62 }
  0xd5   : > { %v4813_v23 = vld [vmem:[#allocation4 + $0xf8] sm:$0xf]  ;;  %v2256_v63 = vadd.f32 %v6473_v58, %v6492_v59 }
  0xd6   : > { %v1425_v8 = vsel %vm6366_vm8, %v1420_v2, %v1424_v5  ;;  %v2299_v61 = vpop.f32.mrf.mxu3  ;;  %v2286_v15 = vpop.f32.mrf.mxu1  ;;  %v5740_v59 = vld [vmem:[#allocation9 + $0xf8] sm:$0xff] }
  0xd7   : > { %2496 = vmatmul.bf16.gmra.mxu0 %v4778_v4  ;;  %1441 = vst [vmem:[#allocation4 + $0x11c] sm:$0xf] %v1425_v8  ;;  %v2285_v5 = vadd.f32 %v2284_v34, %v2256_v63  ;;  %v324_v34 = vld [vmem:[#allocation3 + $0xc] sm:$0x1] }
  0xd8   : > { %4316 = vmatpush.bf16.msrb.mxu0 %v5740_v59 }
  0xdc   : > { %v6498_v9 = vpop.f32.mrf.mxu0 }
  0xdd   : > { %v2270_v0 = vpop.f32.mrf.mxu2 }
  0xde   : > { %v2271_v14 = vadd.f32 %v6473_v58, %v2270_v0  ;;  %v5600_v53 = vld [vmem:[#allocation4 + $0x118] sm:$0xf0]  ;;  %v6505_v24 = vpop.f32.mrf.mxu3  ;;  %v6532_v50 = vpop.f32.mrf.mxu1  ;;  %v2258_v0 = vadd.f32 %v6473_v58, %v6498_v9 }
  0xdf   : > { %2443 = vmatmul.bf16.gmra.mxu2 %v4806_v16  ;;  %v4814_v25 = vor.u32 %v5600_v53, %v4813_v23  ;;  %v5730_v53 = vld [vmem:[#allocation9 + $0xa8] sm:$0xff] }
  0xe0   : > { %v2300_v20 = vadd.f32 %v2299_v61, %v2271_v14  ;;  %v5721_v61 = vld [vmem:[#allocation9 + $0x60] sm:$0xff] }
  0xe1   : > { %4261 = vmatpush.bf16.msrb.mxu2 %v5721_v61  ;;  %v5711_v61 = vld [vmem:[#allocation9 + $0x10] sm:$0xff] }
  0xe4   : > { %v6501_v21 = vpop.f32.mrf.mxu0  ;;  %2472 = vmatmul.bf16.gmra.mxu3 %v4810_v19 }
  0xe5   : > { %v6503_v42 = vpop.f32.mrf.mxu2 }
  0xe6   : > { %v6542_v1 = vpop.f32.mrf.mxu1 }
  0xe7   : > { %2501 = vmatmul.bf16.gmra.mxu0 %v4814_v25  ;;  %v2287_v25 = vadd.f32 %v2286_v15, %v2258_v0  ;;  %v5719_v15 = vld [vmem:[#allocation9 + $0x50] sm:$0xff]  ;;  %v370_v0 = vld [vmem:[#allocation3 + $0x1c] sm:$0x1] }
  0xec   : > { %v6507_v7 = vpop.f32.mrf.mxu0  ;;  %v2342_v54 = vpop.f32.mrf.mxu3 }
  0xed   : > { %v2313_v26 = vpop.f32.mrf.mxu2 }
  0xee   : > { %v2314_v8 = vadd.f32 %v2313_v26, %v2285_v5  ;;  %v5712_v26 = vld [vmem:[#allocation9 + $0x18] sm:$0xff] }
  0xef   : > { %4233 = vmatpush.bf16.msra.mxu1 %v5712_v26 }
  0xf0   : > { %v2400_v14 = vpop.f32.mrf.mxu1  ;;  %v2343_v17 = vadd.f32 %v2342_v54, %v2314_v8  ;;  %v5739_v54 = vld [vmem:[#allocation9 + $0xf0] sm:$0xff] }
  0xf1   : > { %4317 = vmatpush.bf16.msrb.mxu0 %v5739_v54 }
  0xf3   : > { %4234 = vmatpush.bf16.msra.mxu1 %v5711_v61 }
  0xf4   : > { %v6509_v27 = vpop.f32.mrf.mxu0  ;;  %v6513_v6 = vpop.f32.mrf.mxu3 }
  0xf5   : > { %v6511_v28 = vpop.f32.mrf.mxu2  ;;  %v2372_v38 = vadd.f32 %v6509_v27, %v2343_v17  ;;  %4318 = vmatpush.bf16.msrb.mxu0 %v5738_v47  ;;  %v371_v17 = vsel %vm6333_vm5, 0, %v370_v0  ;;  %v2687_v47 = vld [vmem:[#allocation3 + $0x8] sm:$0xf]  ;;  %v5709_v0 = vld [vmem:[#allocation9] sm:$0xff] }
  0xf6   : > { %372 = vst [vmem:[#allocation3 + $0x1c] sm:$0x1] %v371_v17 }
  0xf7   : > { %v2401_v27 = vadd.f32 %v2400_v14, %v2372_v38  ;;  %v2263_v14 = vadd.f32 %v6473_v58, %v6507_v7  ;;  %v5727_v38 = vld [vmem:[#allocation9 + $0x90] sm:$0xff] }
  0xf8   : > { %v2402_v48 = vpop.f32.mrf.mxu1 }
  0xf9   : > { %v2292_v33 = vadd.f32 %v6542_v1, %v2263_v14 }
  0xfc   : > { %v6515_v29 = vpop.f32.mrf.mxu0 }
  0xfd   : > { %v6517_v11 = vpop.f32.mrf.mxu2 }
  0xfe   : > { %v6519_v13 = vpop.f32.mrf.mxu3 }
 0x104   : > { %v6521_v32 = vpop.f32.mrf.mxu0 }
 0x105   : > { %v6523_v35 = vpop.f32.mrf.mxu2 }
 0x106   : > { %v6525_v36 = vpop.f32.mrf.mxu3 }
 0x10c   : > { %v6527_v37 = vpop.f32.mrf.mxu0 }
 0x10f   : > { %v2323_v39 = vpop.f32.mrf.mxu2 }
 0x110   : > { %v2324_v41 = vadd.f32 %v2323_v39, %v6482_v30  ;;  %v5732_v30 = vld [vmem:[#allocation9 + $0xb8] sm:$0xff]  ;;  %v2316_v39 = vadd.f32 %v6511_v28, %v2287_v25  ;;  %v5737_v25 = vld [vmem:[#allocation9 + $0xe0] sm:$0xff] }
 0x111   : > { %v2352_v18 = vpop.f32.mrf.mxu3  ;;  %4287 = vmatpush.bf16.msrb.mxu3 %v5732_v30  ;;  %v5728_v30 = vld [vmem:[#allocation9 + $0x98] sm:$0xff]  ;;  %4319 = vmatpush.bf16.msrb.mxu0 %v5737_v25 }
 0x112   : > { %v2353_v43 = vadd.f32 %v2352_v18, %v2324_v41  ;;  %v5729_v18 = vld [vmem:[#allocation9 + $0xa0] sm:$0xff]  ;;  %v2345_v28 = vadd.f32 %v6513_v6, %v2316_v39  ;;  %v2536_v39 = vld [vmem:[#allocation3 + $0x8] sm:$0xf] }
 0x114   : > { %v2381_v40 = vpop.f32.mrf.mxu0 }
 0x115   : > { %v6530_v44 = vadd.f32 %v2381_v40, %v2353_v43  ;;  %4288 = vmatpush.bf16.msrb.mxu3 %v5731_v12  ;;  %v325_v40 = vsel %vm6333_vm5, 0, %v324_v34  ;;  %v2261_v43 = vadd.f32 %v6473_v58, %v6501_v21 }
 0x116   : > { %326 = vst [vmem:[#allocation3 + $0xc] sm:$0x1] %v325_v40 }
 0x117   : > { %v6534_v45 = vpop.f32.mrf.mxu2  ;;  %v2290_v5 = vadd.f32 %v6532_v50, %v2261_v43  ;;  %v2557_v43 = vshrl.u32 %v2536_v39, 16 }
 0x119   : > { %v6538_v57 = vpop.f32.mrf.mxu3  ;;  %4289 = vmatpush.bf16.msrb.mxu3 %v5730_v53  ;;  %v2319_v50 = vadd.f32 %v6517_v11, %v2290_v5  ;;  %v5710_v53 = vld [vmem:[#allocation9 + $0x8] sm:$0xff]  ;;  %v5717_v11 = vld [vmem:[#allocation9 + $0x40] sm:$0xff] }
 0x11a   : > { %4235 = vmatpush.bf16.msra.mxu1 %v5710_v53  ;;  %v5726_v5 = vld [vmem:[#allocation9 + $0x88] sm:$0xff] }
 0x11b   : > { %v2348_v54 = vadd.f32 %v6519_v13, %v2319_v50  ;;  %v2707_v13 = vshll.u32 %v2687_v47, 16 }
 0x11c   : > { %v6536_v52 = vpop.f32.mrf.mxu0 }
 0x11d   : > { %4290 = vmatpush.bf16.msrb.mxu3 %v5729_v18  ;;  %v367_v12 = vld [vmem:[#allocation3 + $0xc] sm:$0x1] }
 0x11e   : > { %v368_v59 = vsel %vm6333_vm5, 0, %v367_v12  ;;  %4236 = vmatpush.bf16.msra.mxu1 %v5709_v0 }
 0x11f   : > { %369 = vst [vmem:[#allocation3 + $0xc] sm:$0x1] %v368_v59 }
 0x121   : > { %v2328_v3 = vpop.f32.mrf.mxu2  ;;  %4291 = vmatpush.bf16.msrb.mxu3 %v5728_v30 }
 0x122   : > { %v2329_v4 = vadd.f32 %v2328_v3, %v2300_v20  ;;  %v5720_v20 = vld [vmem:[#allocation9 + $0x58] sm:$0xff]  ;;  %v337_v3 = vld [vmem:[#allocation3 + $0x4] sm:$0x8] }
 0x123   : > { %4262 = vmatpush.bf16.msrb.mxu2 %v5720_v20  ;;  %v338_v21 = vsel %vm6552_vm11, 0, %v337_v3  ;;  %v2377_v3 = vadd.f32 %v6521_v32, %v2348_v54 }
 0x124   : > { %v2386_v2 = vpop.f32.mrf.mxu0  ;;  %339 = vst [vmem:[#allocation3 + $0x4] sm:$0x8] %v338_v21  ;;  %v2709_v21 = vrot.slane %v2707_v13, 5  ;;  %v5735_v13 = vld [vmem:[#allocation9 + $0xd0] sm:$0xff] }
 0x125   : > { %4292 = vmatpush.bf16.msrb.mxu3 %v5727_v38 }
 0x127   : > { %v2357_v10 = vpop.f32.mrf.mxu3  ;;  %4263 = vmatpush.bf16.msrb.mxu2 %v5719_v15  ;;  %v2405_v15 = vpop.f32.mrf.mxu1 }
 0x128   : > { %v2358_v16 = vadd.f32 %v2357_v10, %v2329_v4  ;;  %v340_v4 = vld [vmem:[#allocation3 + $0x14] sm:$0x8]  ;;  %v2374_v10 = vadd.f32 %v6515_v29, %v2345_v28  ;;  %v2406_v17 = vadd.f32 %v2405_v15, %v2377_v3  ;;  %v2268_v15 = vadd.f32 %v6473_v58, %v6494_v60 }
 0x129   : > { %v6546_v49 = vpop.f32.mrf.mxu2  ;;  %v341_v6 = vsel %vm6552_vm11, 0, %v340_v4  ;;  %v346_v29 = vld [vmem:[#allocation3 + $0x34] sm:$0x8]  ;;  %4293 = vmatpush.bf16.msrb.mxu3 %v5726_v5 }
 0x12a   : > { %v6548_v19 = vadd.f32 %v2386_v2, %v2358_v16  ;;  %v2671_v2 = vld [vmem:[#allocation3 + $0x8] sm:$0xf]  ;;  %342 = vst [vmem:[#allocation3 + $0x14] sm:$0x8] %v341_v6  ;;  %v2403_v26 = vadd.f32 %v2402_v48, %v2374_v10  ;;  %v347_v7 = vsel %vm6552_vm11, 0, %v346_v29  ;;  %v5736_v48 = vld [vmem:[#allocation9 + $0xd8] sm:$0xff] }
 0x12b   : > { %4264 = vmatpush.bf16.msrb.mxu2 %v5718_v55  ;;  %2679 = vst [vmem:[#allocation5 + $0x4] sm:$0xf] %v2671_v2  ;;  %v2535_v1 = vld [vmem:[#allocation3 + $0x4] sm:$0x8]  ;;  %v2704_v55 = vshrl.u32 %v2687_v47, 16  ;;  %v2560_v2 = vshll.u32 %v2536_v39, 16  ;;  %4320 = vmatpush.bf16.msrb.mxu0 %v5736_v48 }
 0x12c   : > { %v6550_v23 = vpop.f32.mrf.mxu0  ;;  %348 = vst [vmem:[#allocation3 + $0x34] sm:$0x8] %v347_v7  ;;  %v2552_v30 = vshrl.u32 %v2535_v1, 16 }
 0x12d   : > { %v2706_v61 = vrot.slane %v2704_v55, 4 }
 0x12e   : > { %v5103_v6 = vrot.slane %v2552_v30, 11 }
 0x12f   : > { %v6562_v41 = vpop.f32.mrf.mxu3  ;;  %4265 = vmatpush.bf16.msrb.mxu2 %v5717_v11  ;;  %v2710_v14 = vor.u32 %v2709_v21, %v2706_v61  ;;  %4321 = vmatpush.bf16.msrb.mxu0 %v5735_v13 }
 0x131   : > { %v2537_v29 = vld [vmem:[#allocation3 + $0x14] sm:$0x8]  ;;  %v2711_v53 = vrot.slane %v2710_v14, 4  ;;  %v3129_v14 = vld [vmem:[#allocation3 + $0x24] sm:$0x8] }
 0x132   : > { %v2429_v62 = vpop.f32.mrf.mxu2  ;;  %v5673_v3 = vld [vmem:[#allocation5 + $0x4] sm:$0xf] }
 0x133   : > { %v2430_v63 = vadd.f32 %v2429_v62, %v2401_v27  ;;  %v2321_v27 = vadd.f32 %v6523_v35, %v2292_v33  ;;  %v2565_v33 = vshrl.u32 %v2537_v29, 16 }
 0x134   : > { %v2487_v8 = vpop.f32.mrf.mxu0 }
 0x135   : > { %v2350_v50 = vadd.f32 %v6525_v36, %v2321_v27  ;;  %v2407_v36 = vpop.f32.mrf.mxu1  ;;  %v5104_v48 = vrot.slane %v2565_v33, 11 }
 0x137   : > { %v2458_v16 = vpop.f32.mrf.mxu3  ;;  %v2379_v11 = vadd.f32 %v6527_v37, %v2350_v50 }
 0x138   : > { %v2459_v20 = vadd.f32 %v2458_v16, %v2430_v63  ;;  %v2559_v63 = vrot.slane %v2557_v43, 7 }
 0x139   : > { %v2408_v47 = vadd.f32 %v2407_v36, %v2379_v11  ;;  %v2831_v11 = vld [vmem:[#allocation3 + $0x14] sm:$0x8] }
 0x13a   : > { %v2488_v56 = vadd.f32 %v2487_v8, %v2459_v20  ;;  %v2431_v34 = vpop.f32.mrf.mxu2  ;;  %v2688_v8 = vld [vmem:[#allocation3 + $0xc] sm:$0x1]  ;;  %v2562_v10 = vor.u32 %v2560_v2, %v2559_v63  ;;  %v5725_v2 = vld [vmem:[#allocation9 + $0x80] sm:$0xff] }
 0x13b   : > { %v2432_v18 = vadd.f32 %v2431_v34, %v2403_v26  ;;  %v2713_v12 = vshll.u32 %v2688_v8, 16  ;;  %4294 = vmatpush.bf16.msrb.mxu3 %v5725_v2 }
 0x13c   : > { %v2507_v40 = vmax.f32 %v2488_v56, 0.0  ;;  %v2489_v28 = vpop.f32.mrf.mxu0  ;;  %v2563_v32 = vsel %vm6307_vm3, %v5103_v6, %v2562_v10 }
 0x13d   : > { %v2715_v59 = vrot.slane %v2713_v12, 5  ;;  %2663 = vst [vmem:[#allocation5] sm:$0xf] %v2563_v32 }
 0x13e   : > { %v2515_v62 = vpack.c.bf16 %v2507_v40, %v2507_v40 }
 0x13f   : > { %v2460_v4 = vpop.f32.mrf.mxu3  ;;  %v2716_v7 = vsel %vm6366_vm8, %v2711_v53, %v2715_v59 }
 0x140   : > { %2525 = vst [vmem:[#allocation3 + $0x18] sm:$0xf] %v2515_v62  ;;  %v2461_v35 = vadd.f32 %v2460_v4, %v2432_v18  ;;  %v2297_v62 = vadd.f32 %v6488_v51, %v2268_v15  ;;  %v5734_v4 = vld [vmem:[#allocation9 + $0xc8] sm:$0xff]  ;;  %v2410_v51 = vpop.f32.mrf.mxu1 }
 0x141   : > { %2823 = vst [vmem:[#allocation5 + $0x8] sm:$0xf] %v2716_v7  ;;  %4322 = vmatpush.bf16.msrb.mxu0 %v5734_v4 }
 0x142   : > { %v2490_v16 = vadd.f32 %v2489_v28, %v2461_v35  ;;  %v2434_v20 = vpop.f32.mrf.mxu2  ;;  %v2326_v5 = vadd.f32 %v6534_v45, %v2297_v62  ;;  %v5733_v62 = vld [vmem:[#allocation9 + $0xc0] sm:$0xff] }
 0x143   : > { %v2435_v56 = vadd.f32 %v2434_v20, %v2406_v17  ;;  %v2690_v20 = vld [vmem:[#allocation3 + $0x1c] sm:$0x1] }
 0x144   : > { %v2508_v25 = vmax.f32 %v2490_v16, 0.0  ;;  %v2492_v26 = vpop.f32.mrf.mxu0  ;;  %v2355_v45 = vadd.f32 %v6538_v57, %v2326_v5  ;;  %v2727_v33 = vshll.u32 %v2690_v20, 16  ;;  %v5129_v20 = vld [vmem:[#allocation5] sm:$0xf] }
 0x145   : > { %4323 = vmatpush.bf16.msrb.mxu0 %v5733_v62  ;;  %v2539_v62 = vld [vmem:[#allocation3 + $0x24] sm:$0x8] }
 0x146   : > { %v2516_v38 = vpack.c.bf16 %v2508_v25, %v2508_v25  ;;  %v3146_v25 = vshrl.u32 %v3129_v14, 16  ;;  %v2384_v57 = vadd.f32 %v6536_v52, %v2355_v45  ;;  %v2729_v2 = vrot.slane %v2727_v33, 5 }
 0x147   : > { %v2538_v54 = vld [vmem:[#allocation3 + $0x18] sm:$0xf]  ;;  %v2463_v39 = vpop.f32.mrf.mxu3 }
 0x148   : > { %v2672_v34 = vld [vmem:[#allocation3 + $0x18] sm:$0xf]  ;;  %v2570_v40 = vshrl.u32 %v2538_v54, 16  ;;  %v2464_v43 = vadd.f32 %v2463_v39, %v2435_v56  ;;  %v2573_v28 = vshll.u32 %v2538_v54, 16  ;;  %2526 = vst [vmem:[#allocation3 + $0x28] sm:$0xf] %v2516_v38 }
 0x149   : > { %2680 = vst [vmem:[#allocation5 + $0x28] sm:$0xf] %v2672_v34  ;;  %v2967_v18 = vld [vmem:[#allocation3 + $0x18] sm:$0xf]  ;;  %v2833_v54 = vld [vmem:[#allocation3 + $0x24] sm:$0x8]  ;;  %v2411_v34 = vadd.f32 %v2410_v51, %v6530_v44 }
 0x14a   : > { %v2572_v27 = vrot.slane %v2570_v40, 7  ;;  %2975 = vst [vmem:[#allocation5 + $0x10] sm:$0xf] %v2967_v18  ;;  %v2689_v37 = vld [vmem:[#allocation3 + $0x18] sm:$0xf]  ;;  %v2493_v1 = vadd.f32 %v2492_v26, %v2464_v43  ;;  %v2436_v55 = vpop.f32.mrf.mxu2 }
 0x14b   : > { %v2437_v63 = vadd.f32 %v2436_v55, %v2408_v47  ;;  %v2718_v8 = vshrl.u32 %v2689_v37, 16  ;;  %v2721_v61 = vshll.u32 %v2689_v37, 16  ;;  %v2832_v0 = vld [vmem:[#allocation3 + $0x18] sm:$0xf]  ;;  %v3131_v18 = vld [vmem:[#allocation3 + $0x34] sm:$0x8] }
 0x14c   : > { %v2575_v30 = vor.u32 %v2573_v28, %v2572_v27  ;;  %v2509_v60 = vmax.f32 %v2493_v1, 0.0  ;;  %v2494_v21 = vpop.f32.mrf.mxu0  ;;  %v2853_v29 = vshrl.u32 %v2832_v0, 16  ;;  %v2983_v39 = vld [vmem:[#allocation3 + $0x18] sm:$0xf]  ;;  %v5119_v47 = vrot.slane %v3146_v25, 11 }
 0x14d   : > { %v2720_v32 = vrot.slane %v2718_v8, 4  ;;  %v2723_v59 = vrot.slane %v2721_v61, 5  ;;  %v2856_v44 = vshll.u32 %v2832_v0, 16  ;;  %v3003_v52 = vshll.u32 %v2983_v39, 16 }
 0x14e   : > { %v2576_v35 = vsel %vm6307_vm3, %v5104_v48, %v2575_v30  ;;  %v2517_v6 = vpack.c.bf16 %v2509_v60, %v2509_v60  ;;  %v2855_v43 = vrot.slane %v2853_v29, 7  ;;  %v2848_v48 = vshrl.u32 %v2831_v11, 16  ;;  %v2412_v60 = vpop.f32.mrf.mxu1 }
 0x14f   : > { %v2465_v10 = vpop.f32.mrf.mxu3  ;;  %2664 = vst [vmem:[#allocation5 + $0x24] sm:$0xf] %v2576_v35  ;;  %v2834_v17 = vld [vmem:[#allocation3 + $0x28] sm:$0xf]  ;;  %v2724_v38 = vor.u32 %v2723_v59, %v2720_v32  ;;  %v2861_v30 = vshrl.u32 %v2833_v54, 16  ;;  %v3159_v35 = vshrl.u32 %v3131_v18, 16 }
 0x150   : > { %v5131_v12 = vld [vmem:[#allocation5 + $0x24] sm:$0xf0]  ;;  %v2466_v50 = vadd.f32 %v2465_v10, %v2437_v63  ;;  %2527 = vst [vmem:[#allocation3 + $0x38] sm:$0xf] %v2517_v6  ;;  %v2866_v7 = vshrl.u32 %v2834_v17, 16  ;;  %v3000_v63 = vshrl.u32 %v2983_v39, 16  ;;  %v2858_v61 = vor.u32 %v2856_v44, %v2855_v43 }
 0x151   : > { %v5134_v16 = vor.u32 %v5673_v3, %v5131_v12  ;;  %v2968_v53 = vld [vmem:[#allocation3 + $0x28] sm:$0xf]  ;;  %v2725_v3 = vrot.slane %v2724_v38, 4  ;;  %v2869_v4 = vshll.u32 %v2834_v17, 16  ;;  %v5111_v10 = vrot.slane %v2848_v48, 11 }
 0x152   : > { %v2495_v26 = vadd.f32 %v2494_v21, %v2466_v50  ;;  %v2439_v56 = vpop.f32.mrf.mxu2  ;;  %2976 = vst [vmem:[#allocation5 + $0x34] sm:$0xf] %v2968_v53  ;;  %v3130_v36 = vld [vmem:[#allocation3 + $0x28] sm:$0xf]  ;;  %v2868_v37 = vrot.slane %v2866_v7, 7  ;;  %v5112_v50 = vrot.slane %v2861_v30, 11 }
 0x153   : > { %4266 = vmatmul.bf16.vlgmr.msrb.gmra.mxu2 %v5134_v16  ;;  %v3151_v15 = vshrl.u32 %v3130_v36, 16  ;;  %v3265_v40 = vld [vmem:[#allocation3 + $0x28] sm:$0xf]  ;;  %v3154_v55 = vshll.u32 %v3130_v36, 16  ;;  %v2440_v8 = vadd.f32 %v2439_v56, %v2411_v34  ;;  %v2413_v16 = vadd.f32 %v2412_v60, %v2384_v57 }
 0x154   : > { %3273 = vst [vmem:[#allocation5 + $0x1c] sm:$0xf] %v3265_v40  ;;  %v2510_v27 = vmax.f32 %v2495_v26, 0.0  ;;  %v2497_v13 = vpop.f32.mrf.mxu0  ;;  %v2871_v12 = vor.u32 %v2869_v4, %v2868_v37  ;;  %v3002_v45 = vrot.slane %v3000_v63, 4  ;;  %v3005_v32 = vrot.slane %v3003_v52, 5  ;;  %v5748_v37 = vld [vmem:[#allocation9 + $0x138] sm:$0xff] }
 0x155   : > { %v3153_v1 = vrot.slane %v3151_v15, 7  ;;  %v2730_v29 = vsel %vm6366_vm8, %v2725_v3, %v2729_v2  ;;  %v2540_v53 = vld [vmem:[#allocation3 + $0x28] sm:$0xf]  ;;  %v5120_v25 = vrot.slane %v3159_v35, 11  ;;  %v2859_v56 = vsel %vm6307_vm3, %v5111_v10, %v2858_v61  ;;  %4345 = vmatpush.bf16.msrb.mxu1 %v5748_v37  ;;  %v2541_v35 = vld [vmem:[#allocation3 + $0x34] sm:$0x8] }
 0x156   : > { %v2518_v6 = vpack.c.bf16 %v2510_v27, %v2510_v27  ;;  %v6607_v7 = vld [vmem:[#allocation3 + $0x28] sm:$0xf]  ;;  %v5677_v33 = vld [vmem:[#allocation5 + $0x20] sm:$0xf0]  ;;  %v2872_v34 = vsel %vm6307_vm3, %v5112_v50, %v2871_v12  ;;  %v2273_v57 = vadd.f32 %v6473_v58, %v6503_v42  ;;  %v3006_v38 = vor.u32 %v3005_v32, %v3002_v45  ;;  %2824 = vst [vmem:[#allocation5 + $0x2c] sm:$0xf] %v2730_v29 }
 0x157   : > { %v2468_v28 = vpop.f32.mrf.mxu3  ;;  %v3156_v5 = vor.u32 %v3154_v55, %v3153_v1  ;;  %v3132_v21 = vld [vmem:[#allocation3 + $0x38] sm:$0xf]  ;;  %v2985_v39 = vld [vmem:[#allocation3 + $0x28] sm:$0xf]  ;;  %v5130_v15 = vor.u32 %v5677_v33, %v5129_v20  ;;  %v2583_v43 = vshrl.u32 %v2540_v53, 16  ;;  %v2732_v1 = vshrl.u32 %v6607_v7, 16 }
 0x158   : > { %v3266_v14 = vld [vmem:[#allocation3 + $0x38] sm:$0xf]  ;;  %v3164_v59 = vshrl.u32 %v3132_v21, 16  ;;  %v2469_v17 = vadd.f32 %v2468_v28, %v2440_v8  ;;  %2528 = vst [vmem:[#allocation3 + $0x48] sm:$0xf] %v2518_v6  ;;  %v3167_v36 = vshll.u32 %v3132_v21, 16  ;;  %v2302_v42 = vadd.f32 %v6505_v24, %v2273_v57 }
 0x159   : > { %v3157_v51 = vsel %vm6307_vm3, %v5119_v47, %v3156_v5  ;;  %3274 = vst [vmem:[#allocation5 + $0x40] sm:$0xf] %v3266_v14  ;;  %v2673_v18 = vld [vmem:[#allocation3 + $0x28] sm:$0xf]  ;;  %v2542_v47 = vld [vmem:[#allocation3 + $0x38] sm:$0xf]  ;;  %4237 = vmatmul.bf16.vlgmr.msra.gmra.mxu1 %v5130_v15 }
 0x15a   : > { %v2441_v0 = vpop.f32.mrf.mxu2  ;;  %3257 = vst [vmem:[#allocation5 + $0x18] sm:$0xf] %v3157_v51  ;;  %v3166_v11 = vrot.slane %v3164_v59, 7  ;;  %v2498_v28 = vadd.f32 %v2497_v13, %v2469_v17  ;;  %v6617_v30 = vrot.slane %v3006_v38, 4  ;;  %v3014_v44 = vshrl.u32 %v2985_v39, 16  ;;  %v5747_v29 = vld [vmem:[#allocation9 + $0x130] sm:$0xff] }
 0x15b   : > { %v2442_v26 = vadd.f32 %v2441_v0, %v2413_v16  ;;  %2959 = vst [vmem:[#allocation5 + $0xc] sm:$0xf] %v2859_v56  ;;  %v2596_v13 = vshrl.u32 %v2542_v47, 16  ;;  %v2585_v63 = vrot.slane %v2583_v43, 7  ;;  %v3017_v52 = vshll.u32 %v2985_v39, 16  ;;  %4346 = vmatpush.bf16.msrb.mxu1 %v5747_v29 }
 0x15c   : > { %v3169_v27 = vor.u32 %v3167_v36, %v3166_v11  ;;  %v2499_v48 = vpop.f32.mrf.mxu0  ;;  %2960 = vst [vmem:[#allocation5 + $0x30] sm:$0xf] %v2872_v34  ;;  %v2511_v2 = vmax.f32 %v2498_v28, 0.0  ;;  %v2578_v60 = vshrl.u32 %v2539_v62, 16  ;;  %v2586_v3 = vshll.u32 %v2540_v53, 16 }
 0x15d   : > { %2681 = vst [vmem:[#allocation5 + $0x4c] sm:$0xf] %v2673_v18  ;;  %v6619_v4 = vrot.slane %v2732_v1, 4  ;;  %v2735_v5 = vshll.u32 %v6607_v7, 16  ;;  %v3281_v61 = vld [vmem:[#allocation3 + $0x28] sm:$0xf]  ;;  %v2331_v24 = vadd.f32 %v6546_v49, %v2302_v42 }
 0x15e   : > { %v3170_v58 = vsel %vm6307_vm3, %v5120_v25, %v3169_v27  ;;  %v6622_v21 = vld [vmem:[#allocation3 + $0x38] sm:$0xf]  ;;  %v6625_v6 = vrot.slane %v3014_v44, 4  ;;  %v2598_v10 = vrot.slane %v2596_v13, 7  ;;  %v6627_v14 = vrot.slane %v3017_v52, 5 }
 0x15f   : > { %v2470_v54 = vpop.f32.mrf.mxu3  ;;  %3258 = vst [vmem:[#allocation5 + $0x3c] sm:$0xf] %v3170_v58  ;;  %v3283_v12 = vld [vmem:[#allocation3 + $0x38] sm:$0xf]  ;;  %v2675_v51 = vld [vmem:[#allocation3 + $0x48] sm:$0xf]  ;;  %v2519_v50 = vpack.c.bf16 %v2511_v2, %v2511_v2  ;;  %v2588_v32 = vor.u32 %v2586_v3, %v2585_v63  ;;  %v2360_v57 = vadd.f32 %v6562_v41, %v2331_v24 }
 0x160   : > { %v2471_v40 = vadd.f32 %v2470_v54, %v2442_v26  ;;  %v3267_v0 = vld [vmem:[#allocation3 + $0x48] sm:$0xf]  ;;  %v5105_v45 = vrot.slane %v2578_v60, 11  ;;  %v3298_v59 = vshrl.u32 %v3281_v61, 16  ;;  %v2599_v17 = vshll.u32 %v2542_v47, 16  ;;  %v2415_v26 = vpop.f32.mrf.mxu1 }
 0x161   : > { %v5137_v16 = vld [vmem:[#allocation5 + $0x8] sm:$0xf]  ;;  %v2591_v53 = vshrl.u32 %v2541_v35, 16  ;;  %v373_v25 = vld [vmem:[#allocation3 + $0x2c] sm:$0x1]  ;;  %v3301_v49 = vshll.u32 %v3281_v61, 16  ;;  %v2416_v18 = vadd.f32 %v2415_v26, %v6548_v19  ;;  %v2389_v13 = vadd.f32 %v6550_v23, %v2360_v57 }
 0x162   : > { %v2500_v55 = vadd.f32 %v2499_v48, %v2471_v40  ;;  %v3028_v56 = vshrl.u32 %v6622_v21, 16  ;;  %v3031_v7 = vshll.u32 %v6622_v21, 16  ;;  %v3312_v11 = vshrl.u32 %v3283_v12, 16  ;;  %2683 = vst [vmem:[#allocation5 + $0x94] sm:$0xf] %v2675_v51  ;;  %v2444_v39 = vpop.f32.mrf.mxu2 }
 0x163   : > { %v6631_v36 = vld [vmem:[#allocation3 + $0x38] sm:$0xf]  ;;  %3275 = vst [vmem:[#allocation5 + $0x64] sm:$0xf] %v3267_v0  ;;  %v5678_v33 = vld [vmem:[#allocation5 + $0x28] sm:$0xf0]  ;;  %v2601_v34 = vor.u32 %v2599_v17, %v2598_v10  ;;  %v2589_v15 = vsel %vm6307_vm3, %v5105_v45, %v2588_v32  ;;  %v2445_v42 = vadd.f32 %v2444_v39, %v2416_v18  ;;  %v3020_v63 = vor.u32 %v6627_v14, %v6625_v6 }
 0x164   : > { %v2512_v8 = vmax.f32 %v2500_v55, 0.0  ;;  %v2674_v54 = vld [vmem:[#allocation3 + $0x38] sm:$0xf]  ;;  %2529 = vst [vmem:[#allocation3 + $0x58] sm:$0xf] %v2519_v50  ;;  %v3315_v43 = vshll.u32 %v3283_v12, 16  ;;  %v5138_v47 = vor.u32 %v5678_v33, %v5137_v16 }
 0x165   : > { %v5674_v38 = vld [vmem:[#allocation5 + $0xc] sm:$0xf]  ;;  %v376_v40 = vld [vmem:[#allocation3 + $0x3c] sm:$0x1]  ;;  %v5139_v27 = vld [vmem:[#allocation5 + $0x2c] sm:$0xf0] }
 0x166   : > { %v2520_v20 = vpack.c.bf16 %v2512_v8, %v2512_v8  ;;  %v5106_v28 = vrot.slane %v2591_v53, 11  ;;  %v6637_v48 = vrot.slane %v2735_v5, 5  ;;  %v2695_v37 = vld [vmem:[#allocation3 + $0x48] sm:$0xf]  ;;  %v5142_v1 = vor.u32 %v5674_v38, %v5139_v27  ;;  %2682 = vst [vmem:[#allocation5 + $0x70] sm:$0xf] %v2674_v54  ;;  %4295 = vmatmul.bf16.vlgmr.msrb.gmra.mxu3 %v5138_v47 }
 0x167   : > { %v374_v41 = vsel %vm6333_vm5, 0, %v373_v25  ;;  %v3300_v55 = vrot.slane %v3298_v59, 4  ;;  %v6641_v62 = vld [vmem:[#allocation3 + $0x38] sm:$0xf]  ;;  %v2989_v58 = vld [vmem:[#allocation3 + $0x48] sm:$0xf]  ;;  %v2473_v12 = vpop.f32.mrf.mxu3 }
 0x168   : > { %2530 = vst [vmem:[#allocation3 + $0x68] sm:$0xf] %v2520_v20  ;;  %v2602_v19 = vsel %vm6307_vm3, %v5106_v28, %v2601_v34  ;;  %v377_v44 = vsel %vm6333_vm5, 0, %v376_v40  ;;  %v3303_v52 = vrot.slane %v3301_v49, 5  ;;  %v2746_v2 = vshrl.u32 %v6631_v36, 16  ;;  %4324 = vmatmul.bf16.vlgmr.msrb.gmra.mxu0 %v5142_v1  ;;  %v2417_v32 = vpop.f32.mrf.mxu1 }
 0x169   : > { %2665 = vst [vmem:[#allocation5 + $0x48] sm:$0xf] %v2589_v15  ;;  %v3285_v60 = vld [vmem:[#allocation3 + $0x48] sm:$0xf]  ;;  %v3030_v3 = vrot.slane %v3028_v56, 4  ;;  %v3033_v5 = vrot.slane %v3031_v7, 5  ;;  %v2474_v14 = vadd.f32 %v2473_v12, %v2445_v42  ;;  %v2418_v39 = vadd.f32 %v2417_v32, %v2389_v13 }
 0x16a   : > { %2666 = vst [vmem:[#allocation5 + $0x6c] sm:$0xf] %v2602_v19  ;;  %v3314_v8 = vrot.slane %v3312_v11, 4  ;;  %v3317_v61 = vrot.slane %v3315_v43, 5  ;;  %v2760_v21 = vshrl.u32 %v2695_v37, 16  ;;  %v2763_v35 = vshll.u32 %v2695_v37, 16 }
 0x16b   : > { %375 = vst [vmem:[#allocation3 + $0x2c] sm:$0x1] %v374_v41  ;;  %v3042_v24 = vshrl.u32 %v2989_v58, 16  ;;  %v3045_v10 = vshll.u32 %v2989_v58, 16  ;;  %v2749_v23 = vshll.u32 %v6631_v36, 16  ;;  %v3326_v6 = vshrl.u32 %v3285_v60, 16  ;;  %v2502_v36 = vpop.f32.mrf.mxu0 }
 0x16c   : > { %378 = vst [vmem:[#allocation3 + $0x3c] sm:$0x1] %v377_v44  ;;  %v3329_v51 = vshll.u32 %v3285_v60, 16  ;;  %v6652_v0 = vrot.slane %v3020_v63, 4  ;;  %v6654_v50 = vrot.slane %v2746_v2, 4  ;;  %v2879_v16 = vshrl.u32 %v6641_v62, 16 }
 0x16d   : > { %v2882_v45 = vshll.u32 %v6641_v62, 16  ;;  %v3304_v59 = vor.u32 %v3303_v52, %v3300_v55  ;;  %v3034_v17 = vor.u32 %v3033_v5, %v3030_v3  ;;  %v3318_v20 = vor.u32 %v3317_v61, %v3314_v8  ;;  %v6658_v29 = vld [vmem:[#allocation3 + $0x48] sm:$0xf]  ;;  %v2676_v25 = vld [vmem:[#allocation3 + $0x58] sm:$0xf] }
 0x16e   : > { %v6660_v53 = vld [vmem:[#allocation3 + $0x48] sm:$0xf]  ;;  %v2762_v26 = vrot.slane %v2760_v21, 4  ;;  %v2765_v49 = vrot.slane %v2763_v35, 5  ;;  %v3044_v56 = vrot.slane %v3042_v24, 4  ;;  %v3047_v7 = vrot.slane %v3045_v10, 5  ;;  %v2446_v24 = vpop.f32.mrf.mxu2 }
 0x16f   : > { %v2971_v11 = vld [vmem:[#allocation3 + $0x58] sm:$0xf]  ;;  %v6662_v33 = vld [vmem:[#allocation3 + $0x48] sm:$0xf]  ;;  %v3328_v54 = vrot.slane %v3326_v6, 4  ;;  %v3331_v34 = vrot.slane %v3329_v51, 5  ;;  %v2503_v38 = vadd.f32 %v2502_v36, %v2474_v14  ;;  %v2738_v63 = vor.u32 %v6637_v48, %v6619_v4  ;;  %v2475_v32 = vpop.f32.mrf.mxu3 }
 0x170   : > { %v3268_v57 = vld [vmem:[#allocation3 + $0x58] sm:$0xf]  ;;  %v2751_v15 = vrot.slane %v2749_v23, 5  ;;  %v2609_v40 = vshrl.u32 %v6658_v29, 16  ;;  %v2892_v18 = vshrl.u32 %v6660_v53, 16  ;;  %v5746_v43 = vld [vmem:[#allocation9 + $0x128] sm:$0xff]  ;;  %v2766_v41 = vor.u32 %v2765_v49, %v2762_v26 }
 0x171   : > { %2684 = vst [vmem:[#allocation5 + $0xb8] sm:$0xf] %v2676_v25  ;;  %v6666_v47 = vrot.slane %v3304_v59, 4  ;;  %v6668_v27 = vrot.slane %v2879_v16, 7  ;;  %v6670_v28 = vrot.slane %v3034_v17, 4  ;;  %v6672_v37 = vrot.slane %v3318_v20, 4  ;;  %4347 = vmatpush.bf16.msrb.mxu1 %v5746_v43 }
 0x172   : > { %2979 = vst [vmem:[#allocation5 + $0xa0] sm:$0xf] %v2971_v11  ;;  %v2612_v1 = vshll.u32 %v6658_v29, 16  ;;  %v3048_v55 = vor.u32 %v3047_v7, %v3044_v56  ;;  %v3177_v58 = vshrl.u32 %v6662_v33, 16  ;;  %v2697_v42 = vld [vmem:[#allocation3 + $0x58] sm:$0xf]  ;;  %v3332_v44 = vor.u32 %v3331_v34, %v3328_v54 }
 0x173   : > { %3276 = vst [vmem:[#allocation5 + $0x88] sm:$0xf] %v3268_v57  ;;  %v2895_v19 = vshll.u32 %v6660_v53, 16  ;;  %v2513_v13 = vmax.f32 %v2503_v38, 0.0  ;;  %v6679_v52 = vrot.slane %v2609_v40, 7  ;;  %v6681_v2 = vrot.slane %v2892_v18, 7  ;;  %v2504_v11 = vpop.f32.mrf.mxu0 }
 0x174   : > { %v2752_v3 = vor.u32 %v2751_v15, %v6654_v50  ;;  %v349_v5 = vld [vmem:[#allocation3 + $0x44] sm:$0x8]  ;;  %v6685_v8 = vld [vmem:[#allocation3 + $0x58] sm:$0xf]  ;;  %v2774_v61 = vshrl.u32 %v2697_v42, 16  ;;  %v2777_v21 = vshll.u32 %v2697_v42, 16  ;;  %v2447_v23 = vadd.f32 %v2446_v24, %v2418_v39 }
 0x175   : > { %v2677_v35 = vld [vmem:[#allocation3 + $0x68] sm:$0xf]  ;;  %v6687_v10 = vrot.slane %v2766_v41, 4  ;;  %v6689_v12 = vrot.slane %v3048_v55, 4  ;;  %v6691_v4 = vrot.slane %v3177_v58, 7  ;;  %v6693_v6 = vrot.slane %v3332_v44, 4 }
 0x176   : > { %v2972_v48 = vld [vmem:[#allocation3 + $0x68] sm:$0xf]  ;;  %v2991_v51 = vld [vmem:[#allocation3 + $0x58] sm:$0xf]  ;;  %v2521_v50 = vpack.c.bf16 %v2513_v13, %v2513_v13  ;;  %v6695_v16 = vrot.slane %v2738_v63, 4  ;;  %v2622_v59 = vshrl.u32 %v6685_v8, 16  ;;  %v2476_v20 = vadd.f32 %v2475_v32, %v2447_v23 }
 0x177   : > { %v3269_v14 = vld [vmem:[#allocation3 + $0x68] sm:$0xf]  ;;  %2685 = vst [vmem:[#allocation5 + $0xdc] sm:$0xf] %v2677_v35  ;;  %v6698_v17 = vrot.slane %v2752_v3, 4  ;;  %v350_v25 = vsel %vm6552_vm11, 0, %v349_v5 }
 0x178   : > { %v2776_v26 = vrot.slane %v2774_v61, 4  ;;  %v2779_v49 = vrot.slane %v2777_v21, 5  ;;  %v6702_v56 = vld [vmem:[#allocation3 + $0x58] sm:$0xf]  ;;  %2980 = vst [vmem:[#allocation5 + $0xc4] sm:$0xf] %v2972_v48  ;;  %v2505_v57 = vadd.f32 %v2504_v11, %v2476_v20 }
 0x179   : > { %v5682_v7 = vld [vmem:[#allocation5 + $0x4c] sm:$0xf]  ;;  %v3056_v36 = vshrl.u32 %v2991_v51, 16  ;;  %v3059_v54 = vshll.u32 %v2991_v51, 16  ;;  %v6704_v34 = vld [vmem:[#allocation3 + $0x58] sm:$0xf] }
 0x17a   : > { %3277 = vst [vmem:[#allocation5 + $0xac] sm:$0xf] %v3269_v14  ;;  %v3287_v38 = vld [vmem:[#allocation3 + $0x58] sm:$0xf]  ;;  %v5167_v39 = vld [vmem:[#allocation5 + $0x6c] sm:$0xf0]  ;;  %v2780_v61 = vor.u32 %v2779_v49, %v2776_v26 }
 0x17b   : > { %2531 = vst [vmem:[#allocation3 + $0x78] sm:$0xf] %v2521_v50  ;;  %v5170_v15 = vor.u32 %v5682_v7, %v5167_v39  ;;  %v5165_v40 = vld [vmem:[#allocation5 + $0x48] sm:$0xf]  ;;  %v5686_v18 = vld [vmem:[#allocation5 + $0x68] sm:$0xf0] }
 0x17c   : > { %v2692_v43 = vld [vmem:[#allocation3 + $0x2c] sm:$0x1]  ;;  %v2625_v41 = vshll.u32 %v6685_v8, 16  ;;  %v2699_v55 = vld [vmem:[#allocation3 + $0x68] sm:$0xf]  ;;  %v5166_v58 = vor.u32 %v5686_v18, %v5165_v40  ;;  %v2514_v44 = vmax.f32 %v2505_v57, 0.0 }
 0x17d   : > { %v2694_v42 = vld [vmem:[#allocation3 + $0x3c] sm:$0x1]  ;;  %v2905_v13 = vshrl.u32 %v6702_v56, 16  ;;  %v2908_v63 = vshll.u32 %v6702_v56, 16  ;;  %v3058_v3 = vrot.slane %v3056_v36, 4  ;;  %v3061_v5 = vrot.slane %v3059_v54, 5  ;;  %4271 = vmatmul.bf16.gmra.mxu2 %v5170_v15 }
 0x17e   : > { %351 = vst [vmem:[#allocation3 + $0x44] sm:$0x8] %v350_v25  ;;  %v3190_v21 = vshrl.u32 %v6704_v34, 16  ;;  %4242 = vmatmul.bf16.gmra.mxu1 %v5166_v58  ;;  %v2741_v35 = vshll.u32 %v2692_v43, 16  ;;  %v2522_v24 = vpack.c.bf16 %v2514_v44, %v2514_v44  ;;  %v6710_v48 = vrot.slane %v2622_v59, 7  ;;  %v5745_v50 = vld [vmem:[#allocation9 + $0x120] sm:$0xff] }
 0x17f   : > { %v3340_v23 = vshrl.u32 %v3287_v38, 16  ;;  %v2788_v51 = vshrl.u32 %v2699_v55, 16  ;;  %v2755_v14 = vshll.u32 %v2694_v42, 16  ;;  %v6712_v32 = vld [vmem:[#allocation3 + $0x68] sm:$0xf]  ;;  %v2791_v20 = vshll.u32 %v2699_v55, 16  ;;  %4348 = vmatpush.bf16.msrb.mxu1 %v5745_v50 }
 0x180   : > { %2532 = vst [vmem:[#allocation3 + $0x88] sm:$0xf] %v2522_v24  ;;  %v5756_v7 = vld [vmem:[#allocation9 + $0x178] sm:$0xff]  ;;  %v6714_v11 = vrot.slane %v2905_v13, 7  ;;  %v3062_v25 = vor.u32 %v3061_v5, %v3058_v3  ;;  %v3343_v49 = vshll.u32 %v3287_v38, 16  ;;  %v6717_v54 = vrot.slane %v2780_v61, 4 }
 0x181   : > { %v2835_v36 = vld [vmem:[#allocation3 + $0x34] sm:$0x8]  ;;  %v6719_v59 = vrot.slane %v3190_v21, 7  ;;  %v6721_v57 = vld [vmem:[#allocation3 + $0x68] sm:$0xf]  ;;  %v2743_v39 = vrot.slane %v2741_v35, 5  ;;  %4374 = vmatpush.bf16.msra.mxu2 %v5756_v7 }
 0x182   : > { %v5755_v15 = vld [vmem:[#allocation9 + $0x170] sm:$0xff]  ;;  %v6723_v40 = vrot.slane %v3340_v23, 4  ;;  %v2635_v18 = vshrl.u32 %v6712_v32, 16  ;;  %v2790_v43 = vrot.slane %v2788_v51, 4  ;;  %v2678_v55 = vld [vmem:[#allocation3 + $0x78] sm:$0xf] }
 0x183   : > { %v2757_v58 = vrot.slane %v2755_v14, 5  ;;  %v2793_v42 = vrot.slane %v2791_v20, 5  ;;  %v2993_v38 = vld [vmem:[#allocation3 + $0x68] sm:$0xf]  ;;  %v2973_v44 = vld [vmem:[#allocation3 + $0x78] sm:$0xf]  ;;  %v2744_v23 = vsel %vm6366_vm8, %v6695_v16, %v2743_v39  ;;  %v2884_v16 = vor.u32 %v2882_v45, %v6668_v27 }
 0x184   : > { %v2874_v13 = vshrl.u32 %v2835_v36, 16  ;;  %v6726_v3 = vrot.slane %v3062_v25, 4  ;;  %v6728_v5 = vrot.slane %v3343_v49, 5  ;;  %v2918_v21 = vshrl.u32 %v6721_v57, 16  ;;  %v3270_v35 = vld [vmem:[#allocation3 + $0x78] sm:$0xf] }
 0x185   : > { %v6732_v24 = vld [vmem:[#allocation3 + $0x68] sm:$0xf]  ;;  %2686 = vst [vmem:[#allocation5 + $0x100] sm:$0xf] %v2678_v55  ;;  %v5203_v51 = vld [vmem:[#allocation5 + $0xb4] sm:$0xf0]  ;;  %4375 = vmatpush.bf16.msra.mxu2 %v5755_v15  ;;  %v2758_v7 = vsel %vm6366_vm8, %v6698_v17, %v2757_v58  ;;  %v2794_v36 = vor.u32 %v2793_v42, %v2790_v43 }
 0x186   : > { %v6737_v14 = vrot.slane %v2635_v18, 7  ;;  %v3070_v50 = vshrl.u32 %v2993_v38, 16  ;;  %v3073_v20 = vshll.u32 %v2993_v38, 16  ;;  %2981 = vst [vmem:[#allocation5 + $0xe8] sm:$0xf] %v2973_v44  ;;  %v5744_v25 = vld [vmem:[#allocation9 + $0x118] sm:$0xff] }
 0x187   : > { %v6742_v49 = vld [vmem:[#allocation3 + $0x1c] sm:$0x1]  ;;  %3278 = vst [vmem:[#allocation5 + $0xd0] sm:$0xf] %v3270_v35  ;;  %v5113_v26 = vrot.slane %v2874_v13, 11  ;;  %v6748_v15 = vrot.slane %v2918_v21, 7  ;;  %4349 = vmatpush.bf16.msrb.mxu1 %v5744_v25 }
 0x188   : > { %v5691_v39 = vld [vmem:[#allocation5 + $0x94] sm:$0xf]  ;;  %2825 = vst [vmem:[#allocation5 + $0x50] sm:$0xf] %v2744_v23  ;;  %v2974_v58 = vld [vmem:[#allocation3 + $0x88] sm:$0xf] }
 0x189   : > { %v5206_v38 = vor.u32 %v5691_v39, %v5203_v51  ;;  %v352_v17 = vld [vmem:[#allocation3 + $0x54] sm:$0x8]  ;;  %2826 = vst [vmem:[#allocation5 + $0x74] sm:$0xf] %v2758_v7  ;;  %v379_v43 = vld [vmem:[#allocation3 + $0x4c] sm:$0x1]  ;;  %v2885_v21 = vsel %vm6307_vm3, %v5113_v26, %v2884_v16 }
 0x18a   : > { %v6751_v42 = vrot.slane %v3070_v50, 4  ;;  %v6753_v44 = vrot.slane %v3073_v20, 5  ;;  %v6755_v13 = vld [vmem:[#allocation3 + $0x78] sm:$0xf]  ;;  %v6757_v45 = vrot.slane %v2794_v36, 4  ;;  %v353_v35 = vsel %vm6552_vm11, 0, %v352_v17 }
 0x18b   : > { %v2701_v62 = vld [vmem:[#allocation3 + $0x78] sm:$0xf]  ;;  %v3271_v27 = vld [vmem:[#allocation3 + $0x88] sm:$0xf]  ;;  %v3009_v23 = vshll.u32 %v6742_v49, 16  ;;  %v380_v50 = vsel %vm6333_vm5, 0, %v379_v43  ;;  %v2897_v43 = vor.u32 %v2895_v19, %v6681_v2 }
 0x18c   : > { %v6764_v51 = vld [vmem:[#allocation3 + $0x78] sm:$0xf]  ;;  %2982 = vst [vmem:[#allocation5 + $0x10c] sm:$0xf] %v2974_v58  ;;  %v5754_v20 = vld [vmem:[#allocation9 + $0x168] sm:$0xff]  ;;  %v2648_v7 = vshrl.u32 %v6755_v13, 16 }
 0x18d   : > { %4276 = vmatmul.bf16.gmra.mxu2 %v5206_v38  ;;  %v2802_v36 = vshrl.u32 %v2701_v62, 16  ;;  %3279 = vst [vmem:[#allocation5 + $0xf4] sm:$0xf] %v3271_v27  ;;  %v5764_v26 = vld [vmem:[#allocation9 + $0x1b8] sm:$0xff]  ;;  %v2805_v16 = vshll.u32 %v2701_v62, 16  ;;  %v5753_v49 = vld [vmem:[#allocation9 + $0x160] sm:$0xff] }
 0x18e   : > { %v2837_v39 = vld [vmem:[#allocation3 + $0x44] sm:$0x8]  ;;  %2961 = vst [vmem:[#allocation5 + $0x54] sm:$0xf] %v2885_v21  ;;  %4376 = vmatpush.bf16.msra.mxu2 %v5754_v20  ;;  %v2931_v17 = vshrl.u32 %v6764_v51, 16  ;;  %4403 = vmatpush.bf16.msra.mxu3 %v5764_v26  ;;  %v2934_v60 = vshll.u32 %v6764_v51, 16  ;;  %v2614_v20 = vor.u32 %v2612_v1, %v6679_v52 }
 0x18f   : > { %v5173_v58 = vld [vmem:[#allocation5 + $0x50] sm:$0xf]  ;;  %v2887_v38 = vshrl.u32 %v2837_v39, 16  ;;  %354 = vst [vmem:[#allocation3 + $0x54] sm:$0x8] %v353_v35  ;;  %v6778_v55 = vrot.slane %v2648_v7, 7 }
 0x190   : > { %v5687_v18 = vld [vmem:[#allocation5 + $0x70] sm:$0xf0]  ;;  %v2543_v27 = vld [vmem:[#allocation3 + $0x44] sm:$0x8]  ;;  %381 = vst [vmem:[#allocation3 + $0x4c] sm:$0x1] %v380_v50 }
 0x191   : > { %v5763_v25 = vld [vmem:[#allocation9 + $0x1b0] sm:$0xff]  ;;  %v5174_v62 = vor.u32 %v5687_v18, %v5173_v58  ;;  %v5114_v61 = vrot.slane %v2887_v38, 11  ;;  %v2604_v21 = vshrl.u32 %v2543_v27, 16  ;;  %v382_v39 = vld [vmem:[#allocation3 + $0x5c] sm:$0x1]  ;;  %v6780_v53 = vrot.slane %v2802_v36, 4 }
 0x192   : > { %v383_v19 = vsel %vm6333_vm5, 0, %v382_v39  ;;  %4377 = vmatpush.bf16.msra.mxu2 %v5753_v49  ;;  %v355_v2 = vld [vmem:[#allocation3 + $0x64] sm:$0x8]  ;;  %v5743_v35 = vld [vmem:[#allocation9 + $0x110] sm:$0xff]  ;;  %v6784_v26 = vrot.slane %v2805_v16, 5  ;;  %v5772_v52 = vld [vmem:[#allocation9 + $0x1f8] sm:$0xff]  ;;  %4404 = vmatpush.bf16.msra.mxu3 %v5763_v25  ;;  %v2910_v25 = vor.u32 %v2908_v63, %v6714_v11 }
 0x193   : > { %4300 = vmatmul.bf16.gmra.mxu3 %v5174_v62  ;;  %v2898_v18 = vsel %vm6307_vm3, %v5114_v61, %v2897_v43  ;;  %v5107_v29 = vrot.slane %v2604_v21, 11  ;;  %384 = vst [vmem:[#allocation3 + $0x5c] sm:$0x1] %v383_v19  ;;  %v356_v1 = vsel %vm6552_vm11, 0, %v355_v2  ;;  %v6790_v50 = vrot.slane %v2931_v17, 7  ;;  %4350 = vmatpush.bf16.msrb.mxu1 %v5743_v35  ;;  %v5752_v7 = vld [vmem:[#allocation9 + $0x158] sm:$0xff] }
 0x194   : > { %2962 = vst [vmem:[#allocation5 + $0x78] sm:$0xf] %v2898_v18  ;;  %v5762_v36 = vld [vmem:[#allocation9 + $0x1a8] sm:$0xff]  ;;  %v6792_v49 = vrot.slane %v3009_v23, 5  ;;  %v5700_v61 = vld [vmem:[#allocation5 + $0xdc] sm:$0xf]  ;;  %4432 = vmatpush.bf16.msra.mxu0 %v5772_v52  ;;  %v2627_v23 = vor.u32 %v2625_v41, %v6710_v48 }
 0x195   : > { %v2615_v16 = vsel %vm6307_vm3, %v5107_v29, %v2614_v20  ;;  %357 = vst [vmem:[#allocation3 + $0x64] sm:$0x8] %v356_v1  ;;  %v5239_v58 = vld [vmem:[#allocation5 + $0xfc] sm:$0xf0]  ;;  %v5771_v38 = vld [vmem:[#allocation9 + $0x1f0] sm:$0xff]  ;;  %v5742_v19 = vld [vmem:[#allocation9 + $0x108] sm:$0xff] }
 0x196   : > { %v5751_v43 = vld [vmem:[#allocation9 + $0x150] sm:$0xff]  ;;  %2667 = vst [vmem:[#allocation5 + $0x90] sm:$0xf] %v2615_v16  ;;  %4378 = vmatpush.bf16.msra.mxu2 %v5752_v7  ;;  %v5761_v20 = vld [vmem:[#allocation9 + $0x1a0] sm:$0xff]  ;;  %v6802_v2 = vld [vmem:[#allocation3 + $0x88] sm:$0xf]  ;;  %v5242_v18 = vor.u32 %v5700_v61, %v5239_v58  ;;  %4405 = vmatpush.bf16.msra.mxu3 %v5762_v36 }
 0x197   : > { %v2545_v27 = vld [vmem:[#allocation3 + $0x54] sm:$0x8]  ;;  %v2696_v35 = vld [vmem:[#allocation3 + $0x4c] sm:$0x1]  ;;  %4351 = vmatpush.bf16.msrb.mxu1 %v5742_v19  ;;  %v388_v48 = vld [vmem:[#allocation3 + $0x7c] sm:$0x1] }
 0x198   : > { %v2839_v17 = vld [vmem:[#allocation3 + $0x54] sm:$0x8]  ;;  %v2617_v62 = vshrl.u32 %v2545_v27, 16  ;;  %v5770_v1 = vld [vmem:[#allocation9 + $0x1e8] sm:$0xff]  ;;  %v2769_v52 = vshll.u32 %v2696_v35, 16  ;;  %4433 = vmatpush.bf16.msra.mxu0 %v5771_v38  ;;  %v5760_v38 = vld [vmem:[#allocation9 + $0x198] sm:$0xff] }
 0x199   : > { %v2900_v21 = vshrl.u32 %v2839_v17, 16  ;;  %v358_v39 = vld [vmem:[#allocation3 + $0x74] sm:$0x8]  ;;  %v385_v56 = vld [vmem:[#allocation3 + $0x6c] sm:$0x1]  ;;  %v2944_v35 = vshrl.u32 %v6802_v2, 16 }
 0x19a   : > { %v359_v29 = vsel %vm6552_vm11, 0, %v358_v39  ;;  %v5683_v63 = vld [vmem:[#allocation5 + $0x54] sm:$0xf]  ;;  %v5108_v11 = vrot.slane %v2617_v62, 11  ;;  %v386_v8 = vsel %vm6333_vm5, 0, %v385_v56  ;;  %4379 = vmatpush.bf16.msra.mxu2 %v5751_v43  ;;  %v2771_v61 = vrot.slane %v2769_v52, 5  ;;  %4406 = vmatpush.bf16.msra.mxu3 %v5761_v20 }
 0x19b   : > { %v5115_v7 = vrot.slane %v2900_v21, 11  ;;  %360 = vst [vmem:[#allocation3 + $0x74] sm:$0x8] %v359_v29  ;;  %v2698_v41 = vld [vmem:[#allocation3 + $0x5c] sm:$0x1]  ;;  %v5750_v17 = vld [vmem:[#allocation9 + $0x148] sm:$0xff] }
 0x19c   : > { %387 = vst [vmem:[#allocation3 + $0x6c] sm:$0x1] %v386_v8  ;;  %v5175_v36 = vld [vmem:[#allocation5 + $0x74] sm:$0xf0]  ;;  %v2628_v16 = vsel %vm6307_vm3, %v5108_v11, %v2627_v23  ;;  %v2783_v58 = vshll.u32 %v2698_v41, 16  ;;  %v7127_v62 = vshll.u32 %v6721_v57, 16  ;;  %v2772_v23 = vsel %vm6366_vm8, %v6687_v10, %v2771_v61  ;;  %4434 = vmatpush.bf16.msra.mxu0 %v5770_v1 }
 0x19d   : > { %v2911_v27 = vsel %vm6307_vm3, %v5115_v7, %v2910_v25  ;;  %v5178_v39 = vor.u32 %v5683_v63, %v5175_v36  ;;  %2668 = vst [vmem:[#allocation5 + $0xb4] sm:$0xf] %v2628_v16  ;;  %v2841_v43 = vld [vmem:[#allocation3 + $0x64] sm:$0x8]  ;;  %4281 = vmatmul.bf16.gmra.mxu2 %v5242_v18  ;;  %v389_v20 = vsel %vm6333_vm5, 0, %v388_v48  ;;  %v5759_v1 = vld [vmem:[#allocation9 + $0x190] sm:$0xff]  ;;  %v2808_v7 = vor.u32 %v6784_v26, %v6780_v53 }
 0x19e   : > { %v2923_v21 = vor.u32 %v7127_v62, %v6748_v15  ;;  %v2547_v19 = vld [vmem:[#allocation3 + $0x64] sm:$0x8]  ;;  %v2785_v29 = vrot.slane %v2783_v58, 5  ;;  %v2913_v25 = vshrl.u32 %v2841_v43, 16  ;;  %2963 = vst [vmem:[#allocation5 + $0x9c] sm:$0xf] %v2911_v27  ;;  %4380 = vmatpush.bf16.msra.mxu2 %v5750_v17  ;;  %4407 = vmatpush.bf16.msra.mxu3 %v5760_v38  ;;  %v3012_v17 = vsel %vm6366_vm8, %v6617_v30, %v6792_v49 }
 0x19f   : > { %4329 = vmatmul.bf16.gmra.mxu0 %v5178_v39  ;;  %2827 = vst [vmem:[#allocation5 + $0x98] sm:$0xf] %v2772_v23  ;;  %v2630_v57 = vshrl.u32 %v2547_v19, 16  ;;  %v7128_v15 = vshll.u32 %v6712_v32, 16  ;;  %v5769_v18 = vld [vmem:[#allocation9 + $0x1e0] sm:$0xff]  ;;  %v5768_v38 = vld [vmem:[#allocation9 + $0x1d8] sm:$0xff] }
 0x1a0   : > { %v5749_v63 = vld [vmem:[#allocation9 + $0x140] sm:$0xff]  ;;  %v2786_v10 = vsel %vm6366_vm8, %v6717_v54, %v2785_v29  ;;  %v5116_v11 = vrot.slane %v2913_v25, 11  ;;  %390 = vst [vmem:[#allocation3 + $0x7c] sm:$0x1] %v389_v20  ;;  %v5201_v41 = vld [vmem:[#allocation5 + $0x90] sm:$0xf]  ;;  %4435 = vmatpush.bf16.msra.mxu0 %v5769_v18  ;;  %v3346_v20 = vor.u32 %v6728_v5, %v6723_v40 }
 0x1a1   : > { %v2640_v56 = vor.u32 %v7128_v15, %v6737_v14  ;;  %v361_v52 = vld [vmem:[#allocation3 + $0x84] sm:$0x8]  ;;  %2828 = vst [vmem:[#allocation5 + $0xbc] sm:$0xf] %v2786_v10  ;;  %v5109_v14 = vrot.slane %v2630_v57, 11  ;;  %v7129_v54 = vshll.u32 %v6755_v13, 16 }
 0x1a2   : > { %v2549_v32 = vld [vmem:[#allocation3 + $0x74] sm:$0x8]  ;;  %v362_v8 = vsel %vm6552_vm11, 0, %v361_v52  ;;  %v2924_v48 = vsel %vm6307_vm3, %v5116_v11, %v2923_v21  ;;  %v5741_v53 = vld [vmem:[#allocation9 + $0x100] sm:$0xff]  ;;  %4381 = vmatpush.bf16.msra.mxu2 %v5749_v63  ;;  %v6845_v13 = vld [vmem:[#allocation3 + $0x78] sm:$0xf]  ;;  %4408 = vmatpush.bf16.msra.mxu3 %v5759_v1  ;;  %v3076_v1 = vor.u32 %v6753_v44, %v6751_v42 }
 0x1a3   : > { %v2643_v36 = vshrl.u32 %v2549_v32, 16  ;;  %v2653_v16 = vor.u32 %v7129_v54, %v6778_v55  ;;  %v2700_v61 = vld [vmem:[#allocation3 + $0x6c] sm:$0x1]  ;;  %363 = vst [vmem:[#allocation3 + $0x84] sm:$0x8] %v362_v8  ;;  %v2641_v26 = vsel %vm6307_vm3, %v5109_v14, %v2640_v56  ;;  %v2936_v55 = vor.u32 %v2934_v60, %v6790_v50  ;;  %4352 = vmatpush.bf16.msrb.mxu1 %v5741_v53  ;;  %v5767_v56 = vld [vmem:[#allocation9 + $0x1d0] sm:$0xff] }
 0x1a4   : > { %2964 = vst [vmem:[#allocation5 + $0xc0] sm:$0xf] %v2924_v48  ;;  %v2797_v58 = vshll.u32 %v2700_v61, 16  ;;  %v2843_v27 = vld [vmem:[#allocation3 + $0x74] sm:$0x8]  ;;  %v2809_v43 = vrot.slane %v2808_v7, 4  ;;  %4436 = vmatpush.bf16.msra.mxu0 %v5768_v38 }
 0x1a5   : > { %v5695_v62 = vld [vmem:[#allocation5 + $0xb0] sm:$0xf0]  ;;  %v5110_v21 = vrot.slane %v2643_v36, 11  ;;  %2669 = vst [vmem:[#allocation5 + $0xd8] sm:$0xf] %v2641_v26  ;;  %v2926_v39 = vshrl.u32 %v2843_v27, 16 }
 0x1a6   : > { %v2946_v19 = vrot.slane %v2944_v35, 7  ;;  %v5202_v23 = vor.u32 %v5695_v62, %v5201_v41  ;;  %v2799_v29 = vrot.slane %v2797_v58, 5  ;;  %v2986_v25 = vld [vmem:[#allocation3 + $0x2c] sm:$0x1]  ;;  %v5209_v30 = vld [vmem:[#allocation5 + $0x98] sm:$0xf] }
 0x1a7   : > { %v5758_v57 = vld [vmem:[#allocation9 + $0x188] sm:$0xff]  ;;  %v2654_v49 = vsel %vm6307_vm3, %v5110_v21, %v2653_v16  ;;  %v5117_v51 = vrot.slane %v2926_v39, 11  ;;  %v3023_v60 = vshll.u32 %v2986_v25, 16  ;;  %3119 = vst [vmem:[#allocation5 + $0x14] sm:$0xf] %v3012_v17  ;;  %v2947_v50 = vshll.u32 %v6802_v2, 16 }
 0x1a8   : > { %4247 = vmatmul.bf16.gmra.mxu1 %v5202_v23  ;;  %2670 = vst [vmem:[#allocation5 + $0xfc] sm:$0xf] %v2654_v49  ;;  %v2702_v15 = vld [vmem:[#allocation3 + $0x7c] sm:$0x1]  ;;  %v2800_v35 = vsel %vm6366_vm8, %v6757_v45, %v2799_v29  ;;  %v6855_v18 = vld [vmem:[#allocation3 + $0x68] sm:$0xf]  ;;  %4409 = vmatpush.bf16.msra.mxu3 %v5758_v57 }
 0x1a9   : > { %v5696_v63 = vld [vmem:[#allocation5 + $0xb8] sm:$0xf0]  ;;  %v2811_v10 = vshll.u32 %v2702_v15, 16  ;;  %2829 = vst [vmem:[#allocation5 + $0xe0] sm:$0xf] %v2800_v35  ;;  %v2937_v11 = vsel %vm6307_vm3, %v5117_v51, %v2936_v55  ;;  %v3025_v2 = vrot.slane %v3023_v60, 5  ;;  %v2949_v40 = vor.u32 %v2947_v50, %v2946_v19  ;;  %4437 = vmatpush.bf16.msra.mxu0 %v5767_v56 }
 0x1aa   : > { %v3084_v52 = vshrl.u32 %v6845_v13, 16  ;;  %v5210_v7 = vor.u32 %v5696_v63, %v5209_v30  ;;  %v2845_v45 = vld [vmem:[#allocation3 + $0x84] sm:$0x8]  ;;  %2965 = vst [vmem:[#allocation5 + $0xe4] sm:$0xf] %v2937_v11  ;;  %v5780_v44 = vld [vmem:[#allocation9 + $0x238] sm:$0xff] }
 0x1ab   : > { %v5757_v32 = vld [vmem:[#allocation9 + $0x180] sm:$0xff]  ;;  %v5692_v5 = vld [vmem:[#allocation5 + $0x9c] sm:$0xf]  ;;  %v2813_v8 = vrot.slane %v2811_v10, 5  ;;  %v2939_v41 = vshrl.u32 %v2845_v45, 16  ;;  %v3026_v48 = vsel %vm6366_vm8, %v6652_v0, %v3025_v2  ;;  %v5766_v54 = vld [vmem:[#allocation9 + $0x1c8] sm:$0xff]  ;;  %4461 = vmatpush.bf16.msra.mxu1 %v5780_v44 }
 0x1ac   : > { %v5211_v14 = vld [vmem:[#allocation5 + $0xbc] sm:$0xf0]  ;;  %v6865_v36 = vld [vmem:[#allocation3 + $0x78] sm:$0xf]  ;;  %4305 = vmatmul.bf16.gmra.mxu3 %v5210_v7  ;;  %3120 = vst [vmem:[#allocation5 + $0x38] sm:$0xf] %v3026_v48 }
 0x1ad   : > { %v5214_v42 = vor.u32 %v5692_v5, %v5211_v14  ;;  %v6867_v16 = vrot.slane %v3346_v20, 4  ;;  %v3206_v61 = vshll.u32 %v6732_v24, 16  ;;  %v2814_v53 = vsel %vm6366_vm8, %v2809_v43, %v2813_v8  ;;  %4410 = vmatpush.bf16.msra.mxu3 %v5757_v32  ;;  %4438 = vmatpush.bf16.msra.mxu0 %v5766_v54  ;;  %v5765_v43 = vld [vmem:[#allocation9 + $0x1c0] sm:$0xff]  ;;  %v2988_v19 = vld [vmem:[#allocation3 + $0x3c] sm:$0x1]  ;;  %v5779_v25 = vld [vmem:[#allocation9 + $0x230] sm:$0xff] }
 0x1ae   : > { %v5118_v26 = vrot.slane %v2939_v41, 11  ;;  %v6872_v58 = vrot.slane %v3076_v1, 4  ;;  %v7130_v0 = vshrl.u32 %v6732_v24, 16  ;;  %v3354_v17 = vshrl.u32 %v6855_v18, 16  ;;  %2830 = vst [vmem:[#allocation5 + $0x104] sm:$0xf] %v2814_v53 }
 0x1af   : > { %v3357_v38 = vshll.u32 %v6855_v18, 16  ;;  %v6880_v55 = vrot.slane %v3084_v52, 4  ;;  %v3087_v62 = vshll.u32 %v6845_v13, 16  ;;  %v3216_v21 = vshrl.u32 %v6865_v36, 16  ;;  %4334 = vmatmul.bf16.gmra.mxu0 %v5214_v42  ;;  %v5237_v23 = vld [vmem:[#allocation5 + $0xd8] sm:$0xf]  ;;  %4462 = vmatpush.bf16.msra.mxu1 %v5779_v25 }
 0x1b0   : > { %v6876_v27 = vrot.slane %v7130_v0, 7  ;;  %v2950_v39 = vsel %vm6307_vm3, %v5118_v26, %v2949_v40  ;;  %v5704_v29 = vld [vmem:[#allocation5 + $0xf8] sm:$0xf0]  ;;  %v3037_v57 = vshll.u32 %v2988_v19, 16  ;;  %v5675_v30 = vld [vmem:[#allocation5 + $0x14] sm:$0xf] }
 0x1b1   : > { %2966 = vst [vmem:[#allocation5 + $0x108] sm:$0xf] %v2950_v39  ;;  %v2990_v49 = vld [vmem:[#allocation3 + $0x4c] sm:$0x1]  ;;  %v2969_v51 = vld [vmem:[#allocation3 + $0x38] sm:$0xf]  ;;  %v5238_v56 = vor.u32 %v5704_v29, %v5237_v23  ;;  %4439 = vmatpush.bf16.msra.mxu0 %v5765_v43 }
 0x1b2   : > { %v3039_v60 = vrot.slane %v3037_v57, 5  ;;  %v3051_v13 = vshll.u32 %v2990_v49, 16  ;;  %v2970_v50 = vld [vmem:[#allocation3 + $0x48] sm:$0xf]  ;;  %2977 = vst [vmem:[#allocation5 + $0x58] sm:$0xf] %v2969_v51 }
 0x1b3   : > { %v7131_v15 = vshll.u32 %v6662_v33, 16  ;;  %v5147_v20 = vld [vmem:[#allocation5 + $0x34] sm:$0xf0]  ;;  %2978 = vst [vmem:[#allocation5 + $0x7c] sm:$0xf] %v2970_v50  ;;  %v7132_v7 = vshll.u32 %v6704_v34, 16 }
 0x1b4   : > { %v3133_v63 = vld [vmem:[#allocation3 + $0x44] sm:$0x8]  ;;  %v5150_v10 = vor.u32 %v5675_v30, %v5147_v20  ;;  %v3040_v11 = vsel %vm6366_vm8, %v6670_v28, %v3039_v60  ;;  %v3053_v2 = vrot.slane %v3051_v13, 5  ;;  %v3135_v1 = vld [vmem:[#allocation3 + $0x54] sm:$0x8]  ;;  %v3089_v32 = vrot.slane %v3087_v62, 5 }
 0x1b5   : > { %v3182_v35 = vor.u32 %v7131_v15, %v6691_v4  ;;  %v3172_v52 = vshrl.u32 %v3133_v63, 16  ;;  %v3195_v45 = vor.u32 %v7132_v7, %v6719_v59  ;;  %v6895_v33 = vld [vmem:[#allocation3 + $0x78] sm:$0xf]  ;;  %v5705_v4 = vld [vmem:[#allocation5 + $0x100] sm:$0xf0]  ;;  %v3185_v40 = vshrl.u32 %v3135_v1, 16 }
 0x1b6   : > { %3121 = vst [vmem:[#allocation5 + $0x5c] sm:$0xf] %v3040_v11  ;;  %v3218_v5 = vrot.slane %v3216_v21, 7  ;;  %v2997_v14 = vld [vmem:[#allocation3 + $0x88] sm:$0xf]  ;;  %4382 = vmatmul.bf16.vlgmr.msra.gmra.mxu2 %v5150_v10  ;;  %v3054_v28 = vsel %vm6366_vm8, %v6689_v12, %v3053_v2  ;;  %v3219_v59 = vshll.u32 %v6865_v36, 16  ;;  %v3208_v36 = vor.u32 %v3206_v61, %v6876_v27 }
 0x1b7   : > { %v5121_v8 = vrot.slane %v3172_v52, 11  ;;  %v2992_v41 = vld [vmem:[#allocation3 + $0x5c] sm:$0x1]  ;;  %v5245_v48 = vld [vmem:[#allocation5 + $0xe0] sm:$0xf]  ;;  %v5122_v42 = vrot.slane %v3185_v40, 11  ;;  %v3090_v43 = vor.u32 %v3089_v32, %v6880_v55 }
 0x1b8   : > { %3122 = vst [vmem:[#allocation5 + $0x80] sm:$0xf] %v3054_v28  ;;  %v3065_v34 = vshll.u32 %v2992_v41, 16  ;;  %v6901_v44 = vld [vmem:[#allocation3 + $0x88] sm:$0xf]  ;;  %4252 = vmatmul.bf16.gmra.mxu1 %v5238_v56  ;;  %v5246_v54 = vor.u32 %v5705_v4, %v5245_v48  ;;  %v3368_v19 = vshrl.u32 %v6895_v33, 16  ;;  %v3221_v25 = vor.u32 %v3219_v59, %v3218_v5 }
 0x1b9   : > { %v5778_v53 = vld [vmem:[#allocation9 + $0x228] sm:$0xff]  ;;  %v3183_v26 = vsel %vm6307_vm3, %v5121_v8, %v3182_v35  ;;  %v3196_v12 = vsel %vm6307_vm3, %v5122_v42, %v3195_v45  ;;  %v3098_v23 = vshrl.u32 %v2997_v14, 16  ;;  %v5701_v29 = vld [vmem:[#allocation5 + $0xe4] sm:$0xf]  ;;  %v3101_v57 = vshll.u32 %v2997_v14, 16 }
 0x1ba   : > { %v2994_v0 = vld [vmem:[#allocation3 + $0x6c] sm:$0x1]  ;;  %v5247_v62 = vld [vmem:[#allocation5 + $0x104] sm:$0xf0]  ;;  %3259 = vst [vmem:[#allocation5 + $0x60] sm:$0xf] %v3183_v26  ;;  %4463 = vmatpush.bf16.msra.mxu1 %v5778_v53 }
 0x1bb   : > { %v3067_v21 = vrot.slane %v3065_v34, 5  ;;  %v3079_v39 = vshll.u32 %v2994_v0, 16  ;;  %3260 = vst [vmem:[#allocation5 + $0x84] sm:$0xf] %v3196_v12  ;;  %v3137_v51 = vld [vmem:[#allocation3 + $0x64] sm:$0x8]  ;;  %v5250_v61 = vor.u32 %v5701_v29, %v5247_v62 }
 0x1bc   : > { %v3139_v60 = vld [vmem:[#allocation3 + $0x74] sm:$0x8]  ;;  %v3229_v24 = vshrl.u32 %v6901_v44, 16  ;;  %4310 = vmatmul.bf16.gmra.mxu3 %v5246_v54  ;;  %v3198_v27 = vshrl.u32 %v3137_v51, 16  ;;  %v6918_v13 = vrot.slane %v3354_v17, 4  ;;  %v6922_v50 = vrot.slane %v3357_v38, 5 }
 0x1bd   : > { %v3068_v30 = vsel %vm6366_vm8, %v6726_v3, %v3067_v21  ;;  %v3081_v49 = vrot.slane %v3079_v39, 5  ;;  %v3211_v55 = vshrl.u32 %v3139_v60, 16  ;;  %v3371_v3 = vshll.u32 %v6895_v33, 16  ;;  %v391_v35 = vld [vmem:[#allocation3 + $0x8c] sm:$0x1]  ;;  %v5777_v52 = vld [vmem:[#allocation9 + $0x220] sm:$0xff] }
 0x1be   : > { %3123 = vst [vmem:[#allocation5 + $0xa4] sm:$0xf] %v3068_v30  ;;  %v3091_v56 = vrot.slane %v3090_v43, 4  ;;  %v6928_v20 = vrot.slane %v3368_v19, 4  ;;  %v5123_v63 = vrot.slane %v3198_v27, 11  ;;  %v3100_v11 = vrot.slane %v3098_v23, 4  ;;  %4464 = vmatpush.bf16.msra.mxu1 %v5777_v52 }
 0x1bf   : > { %v3082_v15 = vsel %vm6366_vm8, %v6872_v58, %v3081_v49  ;;  %v5124_v10 = vrot.slane %v3211_v55, 11  ;;  %v3103_v17 = vrot.slane %v3101_v57, 5  ;;  %v3232_v2 = vshll.u32 %v6901_v44, 16  ;;  %v2996_v38 = vld [vmem:[#allocation3 + $0x7c] sm:$0x1]  ;;  %4339 = vmatmul.bf16.gmra.mxu0 %v5250_v61 }
 0x1c0   : > { %3124 = vst [vmem:[#allocation5 + $0xc8] sm:$0xf] %v3082_v15  ;;  %v392_v18 = vsel %vm6333_vm5, 0, %v391_v35  ;;  %v3231_v1 = vrot.slane %v3229_v24, 7  ;;  %v3209_v58 = vsel %vm6307_vm3, %v5123_v63, %v3208_v36  ;;  %v3093_v45 = vshll.u32 %v2996_v38, 16 }
 0x1c1   : > { %v3222_v7 = vsel %vm6307_vm3, %v5124_v10, %v3221_v25  ;;  %393 = vst [vmem:[#allocation3 + $0x8c] sm:$0x1] %v392_v18  ;;  %v5183_v32 = vld [vmem:[#allocation5 + $0x7c] sm:$0xf0]  ;;  %v364_v33 = vld [vmem:[#allocation3 + $0x94] sm:$0x8]  ;;  %v3104_v14 = vor.u32 %v3103_v17, %v3100_v11  ;;  %v3360_v23 = vor.u32 %v6922_v50, %v6918_v13 }
 0x1c2   : > { %3261 = vst [vmem:[#allocation5 + $0xa8] sm:$0xf] %v3209_v58  ;;  %v5679_v4 = vld [vmem:[#allocation5 + $0x30] sm:$0xf0]  ;;  %v3095_v40 = vrot.slane %v3093_v45, 5  ;;  %v365_v5 = vsel %vm6552_vm11, 0, %v364_v33  ;;  %v3234_v41 = vor.u32 %v3232_v2, %v3231_v1 }
 0x1c3   : > { %3262 = vst [vmem:[#allocation5 + $0xcc] sm:$0xf] %v3222_v7  ;;  %v5684_v28 = vld [vmem:[#allocation5 + $0x5c] sm:$0xf]  ;;  %v3141_v8 = vld [vmem:[#allocation3 + $0x84] sm:$0x8] }
 0x1c4   : > { %366 = vst [vmem:[#allocation3 + $0x94] sm:$0x8] %v365_v5  ;;  %v5186_v48 = vor.u32 %v5684_v28, %v5183_v32  ;;  %v3096_v42 = vsel %vm6366_vm8, %v3091_v56, %v3095_v40  ;;  %v3144_v34 = vld [vmem:[#allocation3 + $0x98] sm:$0xf]  ;;  %v3224_v59 = vshrl.u32 %v3141_v8, 16  ;;  %v6941_v54 = vrot.slane %v3371_v3, 5 }
 0x1c5   : > { %v3272_v44 = vld [vmem:[#allocation3 + $0x98] sm:$0xf]  ;;  %v6943_v53 = vld [vmem:[#allocation3 + $0x88] sm:$0xf]  ;;  %v5145_v26 = vld [vmem:[#allocation5 + $0x10] sm:$0xf] }
 0x1c6   : > { %3125 = vst [vmem:[#allocation5 + $0xec] sm:$0xf] %v3096_v42  ;;  %v3242_v9 = vshrl.u32 %v3144_v34, 16  ;;  %v5146_v0 = vor.u32 %v5679_v4, %v5145_v26  ;;  %v5680_v62 = vld [vmem:[#allocation5 + $0x38] sm:$0xf0]  ;;  %4387 = vmatmul.bf16.gmra.mxu2 %v5186_v48  ;;  %v5125_v12 = vrot.slane %v3224_v59, 11  ;;  %v3374_v32 = vor.u32 %v6941_v54, %v6928_v20 }
 0x1c7   : > { %v3245_v21 = vshll.u32 %v3144_v34, 16  ;;  %3280 = vst [vmem:[#allocation5 + $0x118] sm:$0xf] %v3272_v44  ;;  %v3105_v39 = vrot.slane %v3104_v14, 4  ;;  %v3282_v19 = vld [vmem:[#allocation3 + $0x2c] sm:$0x1] }
 0x1c8   : > { %v2998_v36 = vld [vmem:[#allocation3 + $0x8c] sm:$0x1]  ;;  %v3244_v43 = vrot.slane %v3242_v9, 7  ;;  %4353 = vmatmul.bf16.vlgmr.msrb.gmra.mxu1 %v5146_v0  ;;  %v5153_v29 = vld [vmem:[#allocation5 + $0x18] sm:$0xf]  ;;  %v3235_v30 = vsel %vm6307_vm3, %v5125_v12, %v3234_v41  ;;  %v3307_v60 = vshll.u32 %v3282_v19, 16 }
 0x1c9   : > { %v5776_v25 = vld [vmem:[#allocation9 + $0x218] sm:$0xff]  ;;  %v3107_v57 = vshll.u32 %v2998_v36, 16  ;;  %v5155_v51 = vld [vmem:[#allocation5 + $0x3c] sm:$0xf0]  ;;  %3263 = vst [vmem:[#allocation5 + $0xf0] sm:$0xf] %v3235_v30  ;;  %v5154_v27 = vor.u32 %v5680_v62, %v5153_v29 }
 0x1ca   : > { %v3284_v49 = vld [vmem:[#allocation3 + $0x3c] sm:$0x1]  ;;  %v3382_v61 = vshrl.u32 %v6943_v53, 16  ;;  %4465 = vmatpush.bf16.msra.mxu1 %v5776_v25  ;;  %v3247_v15 = vor.u32 %v3245_v21, %v3244_v43  ;;  %v3286_v13 = vld [vmem:[#allocation3 + $0x4c] sm:$0x1]  ;;  %v3309_v35 = vrot.slane %v3307_v60, 5 }
 0x1cb   : > { %v3321_v24 = vshll.u32 %v3284_v49, 16  ;;  %v3109_v55 = vrot.slane %v3107_v57, 5  ;;  %v3143_v3 = vld [vmem:[#allocation3 + $0x94] sm:$0x8]  ;;  %v3288_v63 = vld [vmem:[#allocation3 + $0x5c] sm:$0x1] }
 0x1cc   : > { %v3237_v50 = vshrl.u32 %v3143_v3, 16  ;;  %v3335_v10 = vshll.u32 %v3286_v13, 16  ;;  %v3361_v11 = vrot.slane %v3360_v23, 4  ;;  %v3385_v17 = vshll.u32 %v6943_v53, 16  ;;  %4411 = vmatmul.bf16.vlgmr.msra.gmra.mxu3 %v5154_v27  ;;  %v3290_v38 = vld [vmem:[#allocation3 + $0x6c] sm:$0x1] }
 0x1cd   : > { %v3323_v56 = vrot.slane %v3321_v24, 5  ;;  %v3110_v2 = vsel %vm6366_vm8, %v3105_v39, %v3109_v55  ;;  %v3349_v18 = vshll.u32 %v3288_v63, 16  ;;  %v5676_v1 = vld [vmem:[#allocation5 + $0x1c] sm:$0xf]  ;;  %v3310_v58 = vsel %vm6366_vm8, %v6666_v47, %v3309_v35  ;;  %v5775_v8 = vld [vmem:[#allocation9 + $0x210] sm:$0xff]  ;;  %v5774_v39 = vld [vmem:[#allocation9 + $0x208] sm:$0xff] }
 0x1ce   : > { %3126 = vst [vmem:[#allocation5 + $0x110] sm:$0xf] %v3110_v2  ;;  %v5126_v52 = vrot.slane %v3237_v50, 11  ;;  %v3337_v45 = vrot.slane %v3335_v10, 5  ;;  %v5158_v33 = vor.u32 %v5676_v1, %v5155_v51  ;;  %v3363_v40 = vshll.u32 %v3290_v38, 16  ;;  %4466 = vmatpush.bf16.msra.mxu1 %v5775_v8 }
 0x1cf   : > { %v3324_v7 = vsel %vm6366_vm8, %v6672_v37, %v3323_v56  ;;  %3417 = vst [vmem:[#allocation5 + $0x20] sm:$0xf] %v3310_v58  ;;  %v3351_v4 = vrot.slane %v3349_v18, 5  ;;  %v331_v5 = vld [vmem:[#allocation3 + $0x9c] sm:$0x1]  ;;  %v3384_v14 = vrot.slane %v3382_v61, 4 }
 0x1d0   : > { %v3248_v28 = vsel %vm6307_vm3, %v5126_v52, %v3247_v15  ;;  %3418 = vst [vmem:[#allocation5 + $0x44] sm:$0xf] %v3324_v7  ;;  %v3338_v47 = vsel %vm6366_vm8, %v6693_v6, %v3337_v45  ;;  %4440 = vmatmul.bf16.vlgmr.msra.gmra.mxu0 %v5158_v33  ;;  %v5219_v37 = vld [vmem:[#allocation5 + $0xc4] sm:$0xf0]  ;;  %v3365_v41 = vrot.slane %v3363_v40, 5  ;;  %v3387_v48 = vrot.slane %v3385_v17, 5 }
 0x1d1   : > { %3264 = vst [vmem:[#allocation5 + $0x114] sm:$0xf] %v3248_v28  ;;  %v3352_v20 = vsel %vm6366_vm8, %v6867_v16, %v3351_v4  ;;  %v3292_v42 = vld [vmem:[#allocation3 + $0x7c] sm:$0x1]  ;;  %v332_v31 = vsel %vm6333_vm5, 0, %v331_v5  ;;  %v3375_v34 = vrot.slane %v3374_v32, 4 }
 0x1d2   : > { %3419 = vst [vmem:[#allocation5 + $0x68] sm:$0xf] %v3338_v47  ;;  %v3366_v6 = vsel %vm6366_vm8, %v3361_v11, %v3365_v41  ;;  %v3377_v59 = vshll.u32 %v3292_v42, 16  ;;  %v5688_v44 = vld [vmem:[#allocation5 + $0x78] sm:$0xf0]  ;;  %v3388_v16 = vor.u32 %v3387_v48, %v3384_v14  ;;  %4467 = vmatpush.bf16.msra.mxu1 %v5774_v39  ;;  %v5773_v15 = vld [vmem:[#allocation9 + $0x200] sm:$0xff] }
 0x1d3   : > { %3420 = vst [vmem:[#allocation5 + $0x8c] sm:$0xf] %v3352_v20  ;;  %v5693_v54 = vld [vmem:[#allocation5 + $0xa4] sm:$0xf]  ;;  %v5181_v9 = vld [vmem:[#allocation5 + $0x58] sm:$0xf] }
 0x1d4   : > { %3421 = vst [vmem:[#allocation5 + $0xb0] sm:$0xf] %v3366_v6  ;;  %v5222_v53 = vor.u32 %v5693_v54, %v5219_v37  ;;  %v3379_v26 = vrot.slane %v3377_v59, 5  ;;  %v5182_v0 = vor.u32 %v5688_v44, %v5181_v9  ;;  %v3295_v12 = vld [vmem:[#allocation3 + $0x98] sm:$0xf]  ;;  %v3389_v43 = vrot.slane %v3388_v16, 4 }
 0x1d5   : > { %333 = vst [vmem:[#allocation3 + $0x9c] sm:$0x1] %v332_v31  ;;  %v5689_v21 = vld [vmem:[#allocation5 + $0x80] sm:$0xf0]  ;;  %v3294_v36 = vld [vmem:[#allocation3 + $0x8c] sm:$0x1] }
 0x1d6   : > { %4392 = vmatmul.bf16.gmra.mxu2 %v5222_v53  ;;  %v3380_v62 = vsel %vm6366_vm8, %v3375_v34, %v3379_v26  ;;  %v5189_v19 = vld [vmem:[#allocation5 + $0x60] sm:$0xf]  ;;  %v3391_v23 = vshll.u32 %v3294_v36, 16  ;;  %v3396_v29 = vshrl.u32 %v3295_v12, 16  ;;  %v3399_v25 = vshll.u32 %v3295_v12, 16  ;;  %4468 = vmatpush.bf16.msra.mxu1 %v5773_v15  ;;  %v4238_v8 = vpop.f32.mrf.mxu1  ;;  %v4267_v54 = vpop.f32.mrf.mxu2 }
 0x1d7   : > { %3422 = vst [vmem:[#allocation5 + $0xd4] sm:$0xf] %v3380_v62  ;;  %v5190_v57 = vor.u32 %v5689_v21, %v5189_v19  ;;  %v5191_v30 = vld [vmem:[#allocation5 + $0x84] sm:$0xf0]  ;;  %v5685_v24 = vld [vmem:[#allocation5 + $0x64] sm:$0xf] }
 0x1d8   : > { %4358 = vmatmul.bf16.gmra.mxu1 %v5182_v0  ;;  %v3393_v51 = vrot.slane %v3391_v23, 5  ;;  %v3398_v27 = vrot.slane %v3396_v29, 4  ;;  %v3401_v55 = vrot.slane %v3399_v25, 5  ;;  %v5194_v3 = vor.u32 %v5685_v24, %v5191_v30  ;;  %v5255_v13 = vld [vmem:[#allocation5 + $0x10c] sm:$0xf0] }
 0x1d9   : > { %v5697_v35 = vld [vmem:[#allocation5 + $0xc0] sm:$0xf0]  ;;  %v5702_v56 = vld [vmem:[#allocation5 + $0xec] sm:$0xf]  ;;  %v5217_v22 = vld [vmem:[#allocation5 + $0xa0] sm:$0xf] }
 0x1da   : > { %v3394_v61 = vsel %vm6366_vm8, %v3389_v43, %v3393_v51  ;;  %v3402_v50 = vor.u32 %v3401_v55, %v3398_v27  ;;  %v5258_v63 = vor.u32 %v5702_v56, %v5255_v13  ;;  %v5218_v2 = vor.u32 %v5697_v35, %v5217_v22  ;;  %v5698_v18 = vld [vmem:[#allocation5 + $0xc8] sm:$0xf0]  ;;  %v5225_v1 = vld [vmem:[#allocation5 + $0xa8] sm:$0xf]  ;;  %v5227_v7 = vld [vmem:[#allocation5 + $0xcc] sm:$0xf0] }
 0x1db   : > { %3423 = vst [vmem:[#allocation5 + $0xf8] sm:$0xf] %v3394_v61  ;;  %v5226_v58 = vor.u32 %v5698_v18, %v5225_v1  ;;  %v5694_v45 = vld [vmem:[#allocation5 + $0xac] sm:$0xf]  ;;  %v5253_v4 = vld [vmem:[#allocation5 + $0xe8] sm:$0xf] }
 0x1dc   : > { %v394_v49 = vld [vmem:[#allocation3 + $0x9c] sm:$0x1]  ;;  %4416 = vmatmul.bf16.gmra.mxu3 %v5190_v57  ;;  %v3403_v11 = vrot.slane %v3402_v50, 4  ;;  %v5230_v32 = vor.u32 %v5694_v45, %v5227_v7  ;;  %v5706_v33 = vld [vmem:[#allocation5 + $0x108] sm:$0xf0] }
 0x1dd   : > { %v395_v60 = vsel %vm6333_vm5, 0, %v394_v49  ;;  %v5254_v40 = vor.u32 %v5706_v33, %v5253_v4  ;;  %v5261_v5 = vld [vmem:[#allocation5 + $0xf0] sm:$0xf]  ;;  %v5707_v14 = vld [vmem:[#allocation5 + $0x110] sm:$0xf0] }
 0x1de   : > { %396 = vst [vmem:[#allocation3 + $0x9c] sm:$0x1] %v395_v60  ;;  %v5262_v28 = vor.u32 %v5707_v14, %v5261_v5  ;;  %v5703_v47 = vld [vmem:[#allocation5 + $0xf4] sm:$0xf]  ;;  %v5263_v37 = vld [vmem:[#allocation5 + $0x114] sm:$0xf0]  ;;  %v4240_v42 = vpop.f32.mrf.mxu1  ;;  %v4269_v12 = vpop.f32.mrf.mxu2 }
 0x1df   : > { %v5266_v46 = vor.u32 %v5703_v47, %v5263_v37  ;;  %v5681_v20 = vld [vmem:[#allocation5 + $0x40] sm:$0xf0]  ;;  %v5161_v41 = vld [vmem:[#allocation5 + $0x20] sm:$0xf]  ;;  %v5690_v34 = vld [vmem:[#allocation5 + $0x88] sm:$0xf0] }
 0x1e0   : > { %4445 = vmatmul.bf16.gmra.mxu0 %v5194_v3  ;;  %v5162_v48 = vor.u32 %v5681_v20, %v5161_v41  ;;  %v5197_v6 = vld [vmem:[#allocation5 + $0x68] sm:$0xf]  ;;  %v5699_v26 = vld [vmem:[#allocation5 + $0xd0] sm:$0xf0]  ;;  %v5233_v0 = vld [vmem:[#allocation5 + $0xb0] sm:$0xf] }
 0x1e1   : > { %v5198_v59 = vor.u32 %v5690_v34, %v5197_v6  ;;  %v5234_v62 = vor.u32 %v5699_v26, %v5233_v0 }
 0x1e2   : > { %v5269_v23 = vld [vmem:[#allocation5 + $0xf8] sm:$0xf] }
 0x1e5   : > { %v3296_v10 = vld [vmem:[#allocation3 + $0x9c] sm:$0x1]  ;;  %v4325_v16 = vpop.f32.mrf.mxu0 }
 0x1e6   : > { %v3405_v17 = vshll.u32 %v3296_v10, 16  ;;  %4397 = vmatmul.bf16.gmra.mxu2 %v5258_v63 }
 0x1e8   : > { %v3407_v38 = vrot.slane %v3405_v17, 5  ;;  %4363 = vmatmul.bf16.gmra.mxu1 %v5218_v2 }
 0x1e9   : > { %v4296_v53 = vpop.f32.mrf.mxu3 }
 0x1ea   : > { %v3408_v52 = vsel %vm6366_vm8, %v3403_v11, %v3407_v38  ;;  %v7022_v38 = vld [vmem:[%s7114_s4] ss:$0 sm:$0xff] }
 0x1eb   : > { %3424 = vst [vmem:[#allocation5 + $0x11c] sm:$0xf] %v3408_v52  ;;  %v4241_v5 = vadd.f32 %v7022_v38, %v4240_v42 }
 0x1ec   : > { %4421 = vmatmul.bf16.gmra.mxu3 %v5226_v58  ;;  %v4239_v58 = vadd.f32 %v7022_v38, %v4238_v8 }
 0x1ed   : > { %v4327_v36 = vpop.f32.mrf.mxu0  ;;  %v4270_v37 = vadd.f32 %v4269_v12, %v4241_v5 }
 0x1f0   : > { %4450 = vmatmul.bf16.gmra.mxu0 %v5230_v32  ;;  %v4268_v32 = vadd.f32 %v4267_v54, %v4239_v58 }
 0x1f1   : > { %v4298_v21 = vpop.f32.mrf.mxu3 }
 0x1f2   : > { %v5708_v29 = vld [vmem:[#allocation5 + $0x118] sm:$0xf0]  ;;  %v4297_v33 = vadd.f32 %v4296_v53, %v4268_v32  ;;  %v4299_v20 = vadd.f32 %v4298_v21, %v4270_v37 }
 0x1f3   : > { %v5270_v57 = vor.u32 %v5708_v29, %v5269_v23 }
 0x1f4   : > { %v4326_v14 = vadd.f32 %v4325_v16, %v4297_v33  ;;  %v4328_v6 = vadd.f32 %v4327_v36, %v4299_v20 }
 0x1f8   : > { %4368 = vmatmul.bf16.gmra.mxu1 %v5254_v40 }
 0x1fb   : > { %v6981_v31 = vpop.f32.mrf.mxu1 }
 0x1fc   : > { %4426 = vmatmul.bf16.gmra.mxu3 %v5262_v28  ;;  %v4244_v8 = vadd.f32 %v7022_v38, %v6981_v31 }
 0x200   : > { %4455 = vmatmul.bf16.gmra.mxu0 %v5266_v46  ;;  %v4272_v43 = vpop.f32.mrf.mxu2 }
 0x201   : > { %v4273_v54 = vadd.f32 %v4272_v43, %v4244_v8 }
 0x203   : > { %v6983_v44 = vpop.f32.mrf.mxu1 }
 0x204   : > { %v4246_v12 = vadd.f32 %v7022_v38, %v6983_v44 }
 0x208   : > { %4469 = vmatmul.bf16.vlgmr.msra.gmra.mxu1 %v5162_v48  ;;  %v4274_v49 = vpop.f32.mrf.mxu2 }
 0x210   : > { %v6995_v27 = vpop.f32.mrf.mxu2 }
 0x216   : > { %v4301_v19 = vpop.f32.mrf.mxu3 }
 0x217   : > { %v4302_v16 = vadd.f32 %v4301_v19, %v4273_v54 }
 0x218   : > { %4474 = vmatmul.bf16.gmra.mxu1 %v5198_v59  ;;  %v7001_v13 = vpop.f32.mrf.mxu2 }
 0x21c   : > { %v4330_v30 = vpop.f32.mrf.mxu0 }
 0x21d   : > { %v4331_v31 = vadd.f32 %v4330_v30, %v4302_v16 }
 0x21e   : > { %v4303_v51 = vpop.f32.mrf.mxu3 }
 0x220   : > { %v7007_v63 = vpop.f32.mrf.mxu2 }
 0x224   : > { %v6993_v24 = vpop.f32.mrf.mxu0 }
 0x225   : > { %v6985_v9 = vpop.f32.mrf.mxu1 }
 0x226   : > { %v4249_v44 = vadd.f32 %v7022_v38, %v6985_v9 }
 0x228   : > { %4479 = vmatmul.bf16.gmra.mxu1 %v5234_v62  ;;  %v7013_v17 = vpop.f32.mrf.mxu2 }
 0x22c   : > { %v6999_v3 = vpop.f32.mrf.mxu0 }
 0x22d   : > { %v6987_v39 = vpop.f32.mrf.mxu1 }
 0x22e   : > { %v4251_v37 = vadd.f32 %v7022_v38, %v6987_v39 }
 0x22f   : > { %v6997_v55 = vpop.f32.mrf.mxu3 }
 0x234   : > { %v7005_v56 = vpop.f32.mrf.mxu0 }
 0x235   : > { %v6989_v25 = vpop.f32.mrf.mxu1 }
 0x236   : > { %v4254_v39 = vadd.f32 %v7022_v38, %v6989_v25 }
 0x237   : > { %v7003_v50 = vpop.f32.mrf.mxu3 }
 0x238   : > { %4484 = vmatmul.bf16.gmra.mxu1 %v5270_v57 }
 0x239   : > { %v4383_v7 = vpop.f32.mrf.mxu2 }
 0x23c   : > { %v7011_v11 = vpop.f32.mrf.mxu0 }
 0x23d   : > { %v6991_v60 = vpop.f32.mrf.mxu1 }
 0x23e   : > { %v4256_v25 = vadd.f32 %v7022_v38, %v6991_v60 }
 0x23f   : > { %v7009_v10 = vpop.f32.mrf.mxu3 }
 0x241   : > { %v4385_v28 = vpop.f32.mrf.mxu2 }
 0x244   : > { %v7024_v1 = vpop.f32.mrf.mxu0 }
 0x245   : > { %v4354_v61 = vpop.f32.mrf.mxu1 }
 0x246   : > { %v4355_v46 = vadd.f32 %v4354_v61, %v4326_v14  ;;  %v4275_v61 = vadd.f32 %v4274_v49, %v4246_v12 }
 0x247   : > { %v7015_v2 = vpop.f32.mrf.mxu3 }
 0x248   : > { %v4384_v48 = vadd.f32 %v4383_v7, %v4355_v46  ;;  %v4304_v43 = vadd.f32 %v4303_v51, %v4275_v61 }
 0x249   : > { %v4388_v42 = vpop.f32.mrf.mxu2 }
 0x24a   : > { %v4333_v33 = vadd.f32 %v6993_v24, %v4304_v43 }
 0x24d   : > { %v4356_v15 = vpop.f32.mrf.mxu1  ;;  %v4441_v4 = vpop.f32.mrf.mxu0 }
 0x24e   : > { %v4357_v53 = vadd.f32 %v4356_v15, %v4328_v6 }
 0x24f   : > { %v4412_v45 = vpop.f32.mrf.mxu3 }
 0x250   : > { %v4413_v59 = vadd.f32 %v4412_v45, %v4384_v48  ;;  %v4386_v21 = vadd.f32 %v4385_v28, %v4357_v53 }
 0x251   : > { %v4390_v15 = vpop.f32.mrf.mxu2 }
 0x252   : > { %v4442_v0 = vadd.f32 %v4441_v4, %v4413_v59 }
 0x255   : > { %v4359_v35 = vpop.f32.mrf.mxu1  ;;  %v4443_v34 = vpop.f32.mrf.mxu0 }
 0x256   : > { %v4360_v58 = vadd.f32 %v4359_v35, %v4331_v31  ;;  %v4278_v35 = vadd.f32 %v6995_v27, %v4249_v44  ;;  %v4280_v27 = vadd.f32 %v7001_v13, %v4251_v37 }
 0x257   : > { %v4414_v47 = vpop.f32.mrf.mxu3 }
 0x258   : > { %v4415_v29 = vadd.f32 %v4414_v47, %v4386_v21  ;;  %v4389_v32 = vadd.f32 %v4388_v42, %v4360_v58  ;;  %v4307_v51 = vadd.f32 %v6997_v55, %v4278_v35  ;;  %v4309_v55 = vadd.f32 %v7003_v50, %v4280_v27 }
 0x259   : > { %v4393_v9 = vpop.f32.mrf.mxu2 }
 0x25a   : > { %v4444_v19 = vadd.f32 %v4443_v34, %v4415_v29  ;;  %v4336_v24 = vadd.f32 %v6999_v3, %v4307_v51  ;;  %v4338_v3 = vadd.f32 %v7005_v56, %v4309_v55 }
 0x25d   : > { %v4361_v22 = vpop.f32.mrf.mxu1  ;;  %v4446_v36 = vpop.f32.mrf.mxu0 }
 0x25e   : > { %v4362_v5 = vadd.f32 %v4361_v22, %v4333_v33 }
 0x25f   : > { %v4417_v26 = vpop.f32.mrf.mxu3 }
 0x260   : > { %v4418_v4 = vadd.f32 %v4417_v26, %v4389_v32  ;;  %v4391_v46 = vadd.f32 %v4390_v15, %v4362_v5 }
 0x261   : > { %v4395_v26 = vpop.f32.mrf.mxu2 }
 0x262   : > { %v4447_v28 = vadd.f32 %v4446_v36, %v4418_v4 }
 0x265   : > { %v7017_v18 = vpop.f32.mrf.mxu1  ;;  %v4448_v14 = vpop.f32.mrf.mxu0 }
 0x266   : > { %v4365_v22 = vadd.f32 %v7017_v18, %v4336_v24  ;;  %v4283_v18 = vadd.f32 %v7007_v63, %v4254_v39  ;;  %v4285_v63 = vadd.f32 %v7013_v17, %v4256_v25 }
 0x267   : > { %v4419_v7 = vpop.f32.mrf.mxu3 }
 0x268   : > { %v4420_v48 = vadd.f32 %v4419_v7, %v4391_v46  ;;  %v4394_v53 = vadd.f32 %v4393_v9, %v4365_v22  ;;  %v4312_v50 = vadd.f32 %v7009_v10, %v4283_v18  ;;  %v4314_v58 = vadd.f32 %v7015_v2, %v4285_v63 }
 0x269   : > { %v4398_v61 = vpop.f32.mrf.mxu2 }
 0x26a   : > { %v4449_v6 = vadd.f32 %v4448_v14, %v4420_v48  ;;  %v4341_v29 = vadd.f32 %v7011_v11, %v4312_v50  ;;  %v4343_v11 = vadd.f32 %v7024_v1, %v4314_v58 }
 0x26d   : > { %v7026_v52 = vpop.f32.mrf.mxu1  ;;  %v4451_v59 = vpop.f32.mrf.mxu0 }
 0x26f   : > { %v4422_v8 = vpop.f32.mrf.mxu3 }
 0x270   : > { %v4423_v16 = vadd.f32 %v4422_v8, %v4394_v53 }
 0x272   : > { %v4452_v12 = vadd.f32 %v4451_v59, %v4423_v16 }
 0x275   : > { %v7029_v40 = vpop.f32.mrf.mxu1  ;;  %v4453_v56 = vpop.f32.mrf.mxu0 }
 0x277   : > { %v4424_v13 = vpop.f32.mrf.mxu3 }
 0x27d   : > { %v7032_v41 = vpop.f32.mrf.mxu1 }
 0x27e   : > { %v4372_v17 = vadd.f32 %v7032_v41, %v4343_v11 }
 0x27f   : > { %v4427_v10 = vpop.f32.mrf.mxu3 }
 0x285   : > { %v4470_v62 = vpop.f32.mrf.mxu1 }
 0x286   : > { %v4471_v23 = vadd.f32 %v4470_v62, %v4442_v0  ;;  %v4367_v62 = vadd.f32 %v7026_v52, %v4338_v3  ;;  %v4370_v52 = vadd.f32 %v7029_v40, %v4341_v29  ;;  %v4400_v40 = vpop.f32.mrf.mxu2 }
 0x287   : > { %v4429_v32 = vpop.f32.mrf.mxu3  ;;  %v4401_v2 = vadd.f32 %v4400_v40, %v4372_v17 }
 0x288   : > { %v4490_v57 = vmax.f32 %v4471_v23, 0.0  ;;  %v4396_v23 = vadd.f32 %v4395_v26, %v4367_v62  ;;  %v4399_v38 = vadd.f32 %v4398_v61, %v4370_v52 }
 0x289   : > { %v4430_v4 = vadd.f32 %v4429_v32, %v4401_v2 }
 0x28a   : > { %4500 = vst [vmem:[%s7041_s13] sm:$0xff] %v4490_v57  ;;  %v4425_v57 = vadd.f32 %v4424_v13, %v4396_v23  ;;  %v4428_v15 = vadd.f32 %v4427_v10, %v4399_v38 }
 0x28c   : > { %v4454_v43 = vadd.f32 %v4453_v56, %v4425_v57 }
 0x28d   : > { %v4472_v45 = vpop.f32.mrf.mxu1 }
 0x28e   : > { %v4473_v30 = vadd.f32 %v4472_v45, %v4444_v19  ;;  %v4456_v45 = vpop.f32.mrf.mxu0 }
 0x28f   : > { %v4457_v44 = vadd.f32 %v4456_v45, %v4428_v15 }
 0x290   : > { %v4491_v49 = vmax.f32 %v4473_v30, 0.0 }
 0x292   : > { %4501 = vst [vmem:[%s7041_s13 + $0x8] sm:$0xff] %v4491_v49 }
 0x295   : > { %v4475_v47 = vpop.f32.mrf.mxu1 }
 0x296   : > { %v4476_v20 = vadd.f32 %v4475_v47, %v4447_v28  ;;  %v4458_v1 = vpop.f32.mrf.mxu0 }
 0x297   : > { %v4459_v41 = vadd.f32 %v4458_v1, %v4430_v4 }
 0x298   : > { %v4492_v34 = vmax.f32 %v4476_v20, 0.0 }
 0x29a   : > { %4502 = vst [vmem:[%s7041_s13 + $0x10] sm:$0xff] %v4492_v34 }
 0x29d   : > { %v4477_v54 = vpop.f32.mrf.mxu1 }
 0x29e   : > { %v4478_v42 = vadd.f32 %v4477_v54, %v4449_v6 }
 0x2a0   : > { %v4493_v0 = vmax.f32 %v4478_v42, 0.0 }
 0x2a2   : > { %4503 = vst [vmem:[%s7041_s13 + $0x18] sm:$0xff] %v4493_v0 }
 0x2a5   : > { %v4480_v21 = vpop.f32.mrf.mxu1 }
 0x2a6   : > { %v4481_v31 = vadd.f32 %v4480_v21, %v4452_v12 }
 0x2a8   : > { %v4494_v36 = vmax.f32 %v4481_v31, 0.0 }
 0x2aa   : > { %4504 = vst [vmem:[%s7041_s13 + $0x20] sm:$0xff] %v4494_v36 }
 0x2ad   : > { %v4482_v60 = vpop.f32.mrf.mxu1 }
 0x2ae   : > { %v4483_v19 = vadd.f32 %v4482_v60, %v4454_v43 }
 0x2b0   : > { %v4495_v7 = vmax.f32 %v4483_v19, 0.0 }
 0x2b2   : > { %4505 = vst [vmem:[%s7041_s13 + $0x28] sm:$0xff] %v4495_v7 }
 0x2b5   : > { %v4485_v30 = vpop.f32.mrf.mxu1 }
 0x2b6   : > { %v4486_v33 = vadd.f32 %v4485_v30, %v4457_v44 }
 0x2b8   : > { %v4496_v49 = vmax.f32 %v4486_v33, 0.0 }
 0x2ba   : > { %4506 = vst [vmem:[%s7041_s13 + $0x30] sm:$0xff] %v4496_v49 }
 0x2bd   : > { %v4487_v35 = vpop.f32.mrf.mxu1 }
 0x2be   : > { %v4488_v5 = vadd.f32 %v4487_v35, %v4459_v41 }
 0x2c0   : > { %v4497_v14 = vmax.f32 %v4488_v5, 0.0 }
 0x2c2   : > { %4507 = vst [vmem:[%s7041_s13 + $0x38] sm:$0xff] %v4497_v14 }
 0x2c3   : > { %6031 = shalt.err (!%p6028_p8)
}
 0x2c4   : > { %s6081_s11 = smov 128   ;;  %s6082_s12 = smov 8  }
 0x2c5   : > { %5885 = dma.vmem_to_hbm [thread:$0]  (%p6151_p5), %s4522_s23, 1024, %s4524_s25, %s4509_s22, %s6081_s11, %s6081_s11, %s6082_s12  }
 0x2c6 PF: > { %p5902_p9 = scmp.ge.s32.totalorder %s6074_s21, 2  ;;  %s4538_s13 = sand.u32 1, %s6062_s18  }
 0x2c7   : > { %s4539_s14 = scalar_lea.sflag [#allocation8], %s4538_s13 }
 0x2c8   : > { %p5895_p10 = pnand %p5902_p9, %p6155_p6 }
 0x2ca   : > { %p5896_p11 = pneg %p5895_p10 }
 0x2cc   : > { %6057 = dma.done.wait (%p5896_p11), %s4539_s14, 1024  }
 0x2cd   : > { %6059 = vsyncadd (%p5896_p11), %s4539_s14, 4294966272  ;;  %p17_p12 = scmp.ge.s32.totalorder %s6138_s24, 4   ;;  %s7133_s18 = smov %s6066_s19 }
 0x2ce   : > { %s7134_s19 = smov %s6070_s20  ;;  %s7135_s20 = smov %s6149_s27 }
 0x2cf   : > { %s7136_s21 = smov %s6138_s24  ;;  %19 = sbr.rel (!%p17_p12) target bundleno = 5 (0x5), region = 96 }
 0x2d4   :  { %4545 = vsyncpa [#allocation7], 1 }
 0x2d5   :  { %4547 = vsyncpa [#allocation7 + $0x1], 1 }
 0x2d6   :  { %4548 = vsyncpa [#allocation10], 1 }
 0x2d7   :  { %4549 = vsyncpa [#allocation8], 1 }
 0x2d8   :  { %4551 = vsyncpa [#allocation8 + $0x1], 1 }

</bundles_post_ra>
